<compile_context>
chip_gen: v5e
topology: v5e:2x2
jax: 0.10.0
libtpu: 0.0.40
codegen_flags: <defaults>
</compile_context>

<pallas_src>
import functools

import numpy as np
import jax
import jax.numpy as jnp
from jax import lax
from jax.experimental import pallas as pl
from jax.experimental.pallas import tpu as pltpu


def _hippi_kernel(w_ref, u0_ref, mask_ref, u_out_ref, *,
                  num_graphs, d, max_iter, sk_iter, sk_tau, sk_unroll):
    """Full HiPPI power iteration, entirely on-chip.

    w_ref    : (B*d, B*d)  graph-block-padded similarity matrix (bf16 or f32)
    u0_ref   : (B*d, d)    padded initial matching (f32, dummy rows are zero)
    mask_ref : (B, d, 1)   1.0 on real rows, 0.0 on Sinkhorn dummy rows
    u_out_ref: (B*d, d)    output ref, doubles as the running U
    """
    B = num_graphs
    Np = B * d
    inv_tau = jnp.float32(1.0 / sk_tau)

    # Running state lives in the output ref.
    u_out_ref[...] = u0_ref[...]

    # Sinkhorn schedule: iterations 0..sk_iter-1, even -> row-norm (axis=2),
    # odd -> col-norm (axis=1).  The last iteration is fused with the exp.
    full_pairs = (sk_iter - 1) // 2
    leftover_row = ((sk_iter - 1) % 2) == 1
    final_axis = 2 if ((sk_iter - 1) % 2 == 0) else 1

    def lse_norm(S, axis):
        m = jnp.max(S, axis=axis, keepdims=True)
        return S - m - jnp.log(jnp.sum(jnp.exp(S - m), axis=axis, keepdims=True))

    def not_done(carry):
        i, conv = carry
        return jnp.logical_and(i < max_iter, conv == 0)

    def power_step(carry):
        i, _ = carry
        U = u_out_ref[...]                                     # (Np, d) f32
        W = w_ref[...]                                         # (Np, Np)

        # WU = W @ U ; V = WU @ (U^T @ WU).  W (and U cast to its dtype) feed
        # the MXU; accumulation stays f32.
        WU = jnp.dot(W, U.astype(W.dtype),
                     preferred_element_type=jnp.float32)       # (Np, d)
        # U^T @ WU without materializing a transpose: contract over rows.
        UtWU = lax.dot_general(
            U, WU, dimension_numbers=(((0,), (0,)), ((), ())),
            preferred_element_type=jnp.float32)                # (d, d)
        V = jnp.dot(WU, UtWU,
                    preferred_element_type=jnp.float32)        # (Np, d)

        # --- batched log-domain Sinkhorn (dummy_row=True), all graphs at
        # once.  ThinkMatch order: divide by tau, THEN dummy rows = -100.
        valid = mask_ref[...] > 0.5                            # (B, d, 1)
        S = jnp.where(valid, V.reshape(B, d, d) * inv_tau, -100.0)

        def sk_pair(_, S):
            S = lse_norm(S, 2)     # row normalization
            S = lse_norm(S, 1)     # column normalization
            return S

        if full_pairs > 0:
            if sk_unroll:
                S = lax.fori_loop(0, full_pairs, sk_pair, S, unroll=True)
            else:
                S = lax.fori_loop(0, full_pairs, sk_pair, S)
        if leftover_row:
            S = lse_norm(S, 2)

        # Fused final normalization + exponentiation (saves one log and one
        # exp pass over (B,d,d)); exact division keeps the 1e-5 criterion.
        m = jnp.max(S, axis=final_axis, keepdims=True)
        P = jnp.exp(S - m)
        Z = jnp.sum(P, axis=final_axis, keepdims=True)
        newU = jnp.where(valid, P / Z, 0.0).reshape(Np, d)

        # Convergence: ||newU - U||_F < 1e-5  <=>  sum of squares < 1e-10.
        delta = newU - U
        sq = jnp.sum(delta * delta)

        u_out_ref[...] = newU
        return i + 1, (sq < 1e-10).astype(jnp.int32)

    lax.while_loop(not_done, power_step, (jnp.int32(0), jnp.int32(0)))


def hippi_pallas(W, U0, ms, d, max_iter=50, sk_iter=20, sk_tau=1.0 / 200.0,
                 w_dtype=jnp.bfloat16):
    """HiPPI forward. W: (N, N), U0: (N, d), ms: static tuple of ints, d: int.

    w_dtype controls only the MXU operand dtype of W (default bf16); use
    jnp.float32 for bit-level parity testing against the PyTorch reference.
    """
    ms = tuple(int(m) for m in ms)
    B = len(ms)
    N = sum(ms)
    d = int(d)
    assert W.shape == (N, N), W.shape
    assert U0.shape == (N, d), U0.shape
    assert all(m <= d for m in ms), "each graph must fit in the universe (m_b <= d)"
    assert int(sk_iter) >= 1

    Np = B * d  # padded row count: each graph gets exactly d rows

    # Static padded-row <-> original-row index maps (numpy, host side).
    row_src = np.zeros((Np,), np.int32)     # padded row -> source row (0 if dummy)
    row_valid = np.zeros((Np,), np.bool_)   # padded row is a real row
    out_src = np.zeros((N,), np.int32)      # original row -> padded row
    s = 0
    for b, m in enumerate(ms):
        row_src[b * d:b * d + m] = s + np.arange(m, dtype=np.int32)
        row_valid[b * d:b * d + m] = True
        out_src[s:s + m] = b * d + np.arange(m, dtype=np.int32)
        s += m
    row_src_j = jnp.asarray(row_src)
    rv = jnp.asarray(row_valid)

    W = W.astype(jnp.float32)
    U0 = U0.astype(jnp.float32)

    # Graph-block-padded layout via two gathers + a mask (no O(B^2) updates).
    # Zero dummy rows/cols make the padded matmuls identical to the unpadded.
    W_pad = jnp.where(rv[:, None] & rv[None, :],
                      jnp.take(jnp.take(W, row_src_j, axis=0), row_src_j, axis=1),
                      0.0).astype(w_dtype)
    U0_pad = jnp.where(rv[:, None], jnp.take(U0, row_src_j, axis=0), 0.0)
    mask = rv.reshape(B, d, 1).astype(jnp.float32)   # (B, d, 1) row mask

    sk_unroll = (B * d * d * 4) <= 65536   # fully unroll Sinkhorn only if tiny

    kernel = functools.partial(
        _hippi_kernel, num_graphs=B, d=d, max_iter=int(max_iter),
        sk_iter=int(sk_iter), sk_tau=float(sk_tau), sk_unroll=sk_unroll)

    # VMEM budget: single program, no grid => each operand is placed in VMEM
    # exactly once (no double-buffering of W).  Resident: W + U0 + out + mask
    # plus a handful of (Np,d)/(B,d,d) f32 temporaries; capped by the physical
    # VMEM of the current chip (64 MiB on v7x, 128 MiB on v5e/v6e).
    w_bytes = Np * Np * jnp.dtype(w_dtype).itemsize
    u_bytes = Np * d * 4
    mask_bytes = B * d * 4
    work_bytes = 16 * Np * d * 4 + 8 * d * d * 4
    need = w_bytes + 2 * u_bytes + mask_bytes + work_bytes + (4 << 20)
    try:
        cap = int(getattr(pltpu.get_tpu_info(), "vmem_capacity_bytes", 64 << 20))
    except Exception:
        cap = 64 << 20
    vmem_limit = int(min(max(need, 32 << 20), cap - (4 << 20)))

    u_pad = pl.pallas_call(
        kernel,
        out_shape=jax.ShapeDtypeStruct((Np, d), jnp.float32),
        # No grid: every operand lives in VMEM once, resident for all iters.
        in_specs=[pl.BlockSpec(memory_space=pltpu.MemorySpace.VMEM)] * 3,
        out_specs=pl.BlockSpec(memory_space=pltpu.MemorySpace.VMEM),
        compiler_params=pltpu.CompilerParams(vmem_limit_bytes=vmem_limit),
    )(W_pad, U0_pad, mask)

    # Gather the real rows back into the original (N, d) row convention.
    return jnp.take(u_pad, jnp.asarray(out_src), axis=0)


# TODO(synk): projector='hungarian' (linear assignment) has no clean Pallas
# equivalent; only the default 'sinkhorn' projector is implemented.
# TODO(synk): small-d lane packing (placing 128//d graphs side-by-side along
# the lane axis during the Sinkhorn) is not implemented; at d<=32 the Sinkhorn
# vregs remain lane-underoccupied.
# TODO(synk): v7x dual-TensorCore row split (core_map) and a streamed-W
# emit_pipeline fallback for Np too large to keep W resident are not
# implemented; one TC with fully-resident W is used.


if __name__ == "__main__":
    key = jax.random.PRNGKey(0)
    ms = (8, 16, 8)      # number of nodes in each of the 3 graphs
    d = 16               # size of the universe
    N = sum(ms)

    k1, k2 = jax.random.split(key)
    A = jax.random.uniform(k1, (N, N), dtype=jnp.float32)
    W = (A + A.T) * 0.5 / N                       # symmetric multi-graph similarity
    U0 = jax.random.uniform(k2, (N, d), dtype=jnp.float32)  # initial multi-matching

    U = hippi_pallas(W, U0, ms, d)
    U = jax.block_until_ready(U)

    assert U.shape == (N, d)
    assert U.dtype == jnp.float32
    assert bool(jnp.isfinite(U).all())
    print("KERNEL_OK")
</pallas_src>

<mosaic_0001>
module attributes {stable_mosaic.version = 11 : i64} {
  func.func @_hippi_kernel(%arg0: memref<48x48xbf16, #tpu.memory_space<vmem>>, %arg1: memref<48x16xf32, #tpu.memory_space<vmem>>, %arg2: memref<3x16x1xf32, #tpu.memory_space<vmem>>, %arg3: memref<48x16xf32, #tpu.memory_space<vmem>>) attributes {dimension_semantics = [], scalar_prefetch = 0 : i64, scratch_operands = 0 : i64, tpu.core_type = #tpu.core_type<tc>} {
    %c0 = arith.constant 0 : index
    %c0_0 = arith.constant 0 : index
    %0 = vector.load %arg1[%c0, %c0_0] : memref<48x16xf32, #tpu.memory_space<vmem>>, vector<48x16xf32>
    %c0_1 = arith.constant 0 : index
    %c0_2 = arith.constant 0 : index
    %1 = vector.load %arg3[%c0_1, %c0_2] : memref<48x16xf32, #tpu.memory_space<vmem>>, vector<48x16xf32>
    tpu.vector_store %arg3[%c0_1, %c0_2], %0 {strides = array<i32>} : memref<48x16xf32, #tpu.memory_space<vmem>>, vector<48x16xf32>,
    %cst = arith.constant 2.000000e+02 : f32
    %c0_i32 = arith.constant 0 : i32
    %c0_i32_3 = arith.constant 0 : i32
    %2:2 = scf.while (%arg4 = %c0_i32, %arg5 = %c0_i32_3) : (i32, i32) -> (i32, i32) {
      %c50_i32 = arith.constant 50 : i32
      %3 = arith.cmpi slt, %arg4, %c50_i32 : i32
      %c0_i32_4 = arith.constant 0 : i32
      %4 = arith.cmpi eq, %arg5, %c0_i32_4 : i32
      %5 = arith.andi %3, %4 : i1
      scf.condition(%5) %arg4, %arg5 : i32, i32
    } do {
    ^bb0(%arg4: i32, %arg5: i32):
      %c0_4 = arith.constant 0 : index
      %c0_5 = arith.constant 0 : index
      %3 = vector.load %arg3[%c0_4, %c0_5] : memref<48x16xf32, #tpu.memory_space<vmem>>, vector<48x16xf32>
      %c0_6 = arith.constant 0 : index
      %c0_7 = arith.constant 0 : index
      %4 = vector.load %arg0[%c0_6, %c0_7] : memref<48x48xbf16, #tpu.memory_space<vmem>>, vector<48x48xbf16>
      %5 = arith.truncf %3 : vector<48x16xf32> to vector<48x16xbf16>
      %cst_8 = arith.constant dense<0.000000e+00> : vector<48x16xf32>
      %6 = tpu.matmul %4, %5, %cst_8 {dimension_numbers = #tpu.dot_dimension_numbers<[1], [0], [0], [1], [0, 0, 1, 1], [], []>} : vector<48x48xbf16>, vector<48x16xbf16>, vector<48x16xf32> -> vector<48x16xf32>
      %cst_9 = arith.constant dense<0.000000e+00> : vector<16x16xf32>
      %7 = tpu.matmul %3, %6, %cst_9 {dimension_numbers = #tpu.dot_dimension_numbers<[0], [0], [1], [1], [0, 1, 1, 1], [], []>} : vector<48x16xf32>, vector<48x16xf32>, vector<16x16xf32> -> vector<16x16xf32>
      %cst_10 = arith.constant dense<0.000000e+00> : vector<48x16xf32>
      %8 = tpu.matmul %6, %7, %cst_10 {dimension_numbers = #tpu.dot_dimension_numbers<[1], [0], [0], [1], [0, 0, 1, 1], [], []>} : vector<48x16xf32>, vector<16x16xf32>, vector<48x16xf32> -> vector<48x16xf32>
      %c0_11 = arith.constant 0 : index
      %c0_12 = arith.constant 0 : index
      %c0_13 = arith.constant 0 : index
      %9 = vector.load %arg2[%c0_11, %c0_12, %c0_13] : memref<3x16x1xf32, #tpu.memory_space<vmem>>, vector<3x16x1xf32>
      %cst_14 = arith.constant 5.000000e-01 : f32
      %10 = vector.broadcast %cst_14 : f32 to vector<3x16x1xf32>
      %11 = arith.cmpf ogt, %9, %10 : vector<3x16x1xf32>
      %12 = vector.shape_cast %8 : vector<48x16xf32> to vector<3x16x16xf32>
      %13 = vector.broadcast %cst : f32 to vector<3x16x16xf32>
      %14 = arith.mulf %12, %13 : vector<3x16x16xf32>
      %cst_15 = arith.constant -1.000000e+02 : f32
      %15 = vector.shape_cast %11 : vector<3x16x1xi1> to vector<3x16x1xi1>
      %16 = vector.broadcast %15 : vector<3x16x1xi1> to vector<3x16x16xi1>
      %17 = vector.broadcast %cst_15 : f32 to vector<3x16x16xf32>
      %18 = arith.select %16, %14, %17 : vector<3x16x16xi1>, vector<3x16x16xf32>
      %c0_i32_16 = arith.constant 0 : i32
      %cst_17 = arith.constant dense<0xFF800000> : vector<3x16xf32>
      %19 = vector.multi_reduction <maximumf>, %18, %cst_17 [2] : vector<3x16x16xf32> to vector<3x16xf32>
      %20 = vector.shape_cast %19 : vector<3x16xf32> to vector<3x16x1xf32>
      %21 = vector.broadcast %20 : vector<3x16x1xf32> to vector<3x16x16xf32>
      %22 = arith.subf %18, %21 : vector<3x16x16xf32>
      %23 = vector.broadcast %20 : vector<3x16x1xf32> to vector<3x16x16xf32>
      %24 = arith.subf %18, %23 : vector<3x16x16xf32>
      %25 = math.exp %24 : vector<3x16x16xf32>
      %cst_18 = arith.constant dense<0.000000e+00> : vector<3x16xf32>
      %26 = vector.multi_reduction <add>, %25, %cst_18 [2] : vector<3x16x16xf32> to vector<3x16xf32>
      %27 = vector.shape_cast %26 : vector<3x16xf32> to vector<3x16x1xf32>
      %28 = math.log %27 : vector<3x16x1xf32>
      %29 = vector.broadcast %28 : vector<3x16x1xf32> to vector<3x16x16xf32>
      %30 = arith.subf %22, %29 : vector<3x16x16xf32>
      %cst_19 = arith.constant dense<0xFF800000> : vector<3x16xf32>
      %31 = vector.multi_reduction <maximumf>, %30, %cst_19 [1] : vector<3x16x16xf32> to vector<3x16xf32>
      %32 = vector.shape_cast %31 : vector<3x16xf32> to vector<3x1x16xf32>
      %33 = vector.broadcast %32 : vector<3x1x16xf32> to vector<3x16x16xf32>
      %34 = arith.subf %30, %33 : vector<3x16x16xf32>
      %35 = vector.broadcast %32 : vector<3x1x16xf32> to vector<3x16x16xf32>
      %36 = arith.subf %30, %35 : vector<3x16x16xf32>
      %37 = math.exp %36 : vector<3x16x16xf32>
      %cst_20 = arith.constant dense<0.000000e+00> : vector<3x16xf32>
      %38 = vector.multi_reduction <add>, %37, %cst_20 [1] : vector<3x16x16xf32> to vector<3x16xf32>
      %39 = vector.shape_cast %38 : vector<3x16xf32> to vector<3x1x16xf32>
      %40 = math.log %39 : vector<3x1x16xf32>
      %41 = vector.broadcast %40 : vector<3x1x16xf32> to vector<3x16x16xf32>
      %42 = arith.subf %34, %41 : vector<3x16x16xf32>
      %c1_i32 = arith.constant 1 : i32
      %cst_21 = arith.constant dense<0xFF800000> : vector<3x16xf32>
      %43 = vector.multi_reduction <maximumf>, %42, %cst_21 [2] : vector<3x16x16xf32> to vector<3x16xf32>
      %44 = vector.shape_cast %43 : vector<3x16xf32> to vector<3x16x1xf32>
      %45 = vector.broadcast %44 : vector<3x16x1xf32> to vector<3x16x16xf32>
      %46 = arith.subf %42, %45 : vector<3x16x16xf32>
      %47 = vector.broadcast %44 : vector<3x16x1xf32> to vector<3x16x16xf32>
      %48 = arith.subf %42, %47 : vector<3x16x16xf32>
      %49 = math.exp %48 : vector<3x16x16xf32>
      %cst_22 = arith.constant dense<0.000000e+00> : vector<3x16xf32>
      %50 = vector.multi_reduction <add>, %49, %cst_22 [2] : vector<3x16x16xf32> to vector<3x16xf32>
      %51 = vector.shape_cast %50 : vector<3x16xf32> to vector<3x16x1xf32>
      %52 = math.log %51 : vector<3x16x1xf32>
      %53 = vector.broadcast %52 : vector<3x16x1xf32> to vector<3x16x16xf32>
      %54 = arith.subf %46, %53 : vector<3x16x16xf32>
      %cst_23 = arith.constant dense<0xFF800000> : vector<3x16xf32>
      %55 = vector.multi_reduction <maximumf>, %54, %cst_23 [1] : vector<3x16x16xf32> to vector<3x16xf32>
      %56 = vector.shape_cast %55 : vector<3x16xf32> to vector<3x1x16xf32>
      %57 = vector.broadcast %56 : vector<3x1x16xf32> to vector<3x16x16xf32>
      %58 = arith.subf %54, %57 : vector<3x16x16xf32>
      %59 = vector.broadcast %56 : vector<3x1x16xf32> to vector<3x16x16xf32>
      %60 = arith.subf %54, %59 : vector<3x16x16xf32>
      %61 = math.exp %60 : vector<3x16x16xf32>
      %cst_24 = arith.constant dense<0.000000e+00> : vector<3x16xf32>
      %62 = vector.multi_reduction <add>, %61, %cst_24 [1] : vector<3x16x16xf32> to vector<3x16xf32>
      %63 = vector.shape_cast %62 : vector<3x16xf32> to vector<3x1x16xf32>
      %64 = math.log %63 : vector<3x1x16xf32>
      %65 = vector.broadcast %64 : vector<3x1x16xf32> to vector<3x16x16xf32>
      %66 = arith.subf %58, %65 : vector<3x16x16xf32>
      %c2_i32 = arith.constant 2 : i32
      %cst_25 = arith.constant dense<0xFF800000> : vector<3x16xf32>
      %67 = vector.multi_reduction <maximumf>, %66, %cst_25 [2] : vector<3x16x16xf32> to vector<3x16xf32>
      %68 = vector.shape_cast %67 : vector<3x16xf32> to vector<3x16x1xf32>
      %69 = vector.broadcast %68 : vector<3x16x1xf32> to vector<3x16x16xf32>
      %70 = arith.subf %66, %69 : vector<3x16x16xf32>
      %71 = vector.broadcast %68 : vector<3x16x1xf32> to vector<3x16x16xf32>
      %72 = arith.subf %66, %71 : vector<3x16x16xf32>
      %73 = math.exp %72 : vector<3x16x16xf32>
      %cst_26 = arith.constant dense<0.000000e+00> : vector<3x16xf32>
      %74 = vector.multi_reduction <add>, %73, %cst_26 [2] : vector<3x16x16xf32> to vector<3x16xf32>
      %75 = vector.shape_cast %74 : vector<3x16xf32> to vector<3x16x1xf32>
      %76 = math.log %75 : vector<3x16x1xf32>
      %77 = vector.broadcast %76 : vector<3x16x1xf32> to vector<3x16x16xf32>
      %78 = arith.subf %70, %77 : vector<3x16x16xf32>
      %cst_27 = arith.constant dense<0xFF800000> : vector<3x16xf32>
      %79 = vector.multi_reduction <maximumf>, %78, %cst_27 [1] : vector<3x16x16xf32> to vector<3x16xf32>
      %80 = vector.shape_cast %79 : vector<3x16xf32> to vector<3x1x16xf32>
      %81 = vector.broadcast %80 : vector<3x1x16xf32> to vector<3x16x16xf32>
      %82 = arith.subf %78, %81 : vector<3x16x16xf32>
      %83 = vector.broadcast %80 : vector<3x1x16xf32> to vector<3x16x16xf32>
      %84 = arith.subf %78, %83 : vector<3x16x16xf32>
      %85 = math.exp %84 : vector<3x16x16xf32>
      %cst_28 = arith.constant dense<0.000000e+00> : vector<3x16xf32>
      %86 = vector.multi_reduction <add>, %85, %cst_28 [1] : vector<3x16x16xf32> to vector<3x16xf32>
      %87 = vector.shape_cast %86 : vector<3x16xf32> to vector<3x1x16xf32>
      %88 = math.log %87 : vector<3x1x16xf32>
      %89 = vector.broadcast %88 : vector<3x1x16xf32> to vector<3x16x16xf32>
      %90 = arith.subf %82, %89 : vector<3x16x16xf32>
      %c3_i32 = arith.constant 3 : i32
      %cst_29 = arith.constant dense<0xFF800000> : vector<3x16xf32>
      %91 = vector.multi_reduction <maximumf>, %90, %cst_29 [2] : vector<3x16x16xf32> to vector<3x16xf32>
      %92 = vector.shape_cast %91 : vector<3x16xf32> to vector<3x16x1xf32>
      %93 = vector.broadcast %92 : vector<3x16x1xf32> to vector<3x16x16xf32>
      %94 = arith.subf %90, %93 : vector<3x16x16xf32>
      %95 = vector.broadcast %92 : vector<3x16x1xf32> to vector<3x16x16xf32>
      %96 = arith.subf %90, %95 : vector<3x16x16xf32>
      %97 = math.exp %96 : vector<3x16x16xf32>
      %cst_30 = arith.constant dense<0.000000e+00> : vector<3x16xf32>
      %98 = vector.multi_reduction <add>, %97, %cst_30 [2] : vector<3x16x16xf32> to vector<3x16xf32>
      %99 = vector.shape_cast %98 : vector<3x16xf32> to vector<3x16x1xf32>
      %100 = math.log %99 : vector<3x16x1xf32>
      %101 = vector.broadcast %100 : vector<3x16x1xf32> to vector<3x16x16xf32>
      %102 = arith.subf %94, %101 : vector<3x16x16xf32>
      %cst_31 = arith.constant dense<0xFF800000> : vector<3x16xf32>
      %103 = vector.multi_reduction <maximumf>, %102, %cst_31 [1] : vector<3x16x16xf32> to vector<3x16xf32>
      %104 = vector.shape_cast %103 : vector<3x16xf32> to vector<3x1x16xf32>
      %105 = vector.broadcast %104 : vector<3x1x16xf32> to vector<3x16x16xf32>
      %106 = arith.subf %102, %105 : vector<3x16x16xf32>
      %107 = vector.broadcast %104 : vector<3x1x16xf32> to vector<3x16x16xf32>
      %108 = arith.subf %102, %107 : vector<3x16x16xf32>
      %109 = math.exp %108 : vector<3x16x16xf32>
      %cst_32 = arith.constant dense<0.000000e+00> : vector<3x16xf32>
      %110 = vector.multi_reduction <add>, %109, %cst_32 [1] : vector<3x16x16xf32> to vector<3x16xf32>
      %111 = vector.shape_cast %110 : vector<3x16xf32> to vector<3x1x16xf32>
      %112 = math.log %111 : vector<3x1x16xf32>
      %113 = vector.broadcast %112 : vector<3x1x16xf32> to vector<3x16x16xf32>
      %114 = arith.subf %106, %113 : vector<3x16x16xf32>
      %c4_i32 = arith.constant 4 : i32
      %cst_33 = arith.constant dense<0xFF800000> : vector<3x16xf32>
      %115 = vector.multi_reduction <maximumf>, %114, %cst_33 [2] : vector<3x16x16xf32> to vector<3x16xf32>
      %116 = vector.shape_cast %115 : vector<3x16xf32> to vector<3x16x1xf32>
      %117 = vector.broadcast %116 : vector<3x16x1xf32> to vector<3x16x16xf32>
      %118 = arith.subf %114, %117 : vector<3x16x16xf32>
      %119 = vector.broadcast %116 : vector<3x16x1xf32> to vector<3x16x16xf32>
      %120 = arith.subf %114, %119 : vector<3x16x16xf32>
      %121 = math.exp %120 : vector<3x16x16xf32>
      %cst_34 = arith.constant dense<0.000000e+00> : vector<3x16xf32>
      %122 = vector.multi_reduction <add>, %121, %cst_34 [2] : vector<3x16x16xf32> to vector<3x16xf32>
      %123 = vector.shape_cast %122 : vector<3x16xf32> to vector<3x16x1xf32>
      %124 = math.log %123 : vector<3x16x1xf32>
      %125 = vector.broadcast %124 : vector<3x16x1xf32> to vector<3x16x16xf32>
      %126 = arith.subf %118, %125 : vector<3x16x16xf32>
      %cst_35 = arith.constant dense<0xFF800000> : vector<3x16xf32>
      %127 = vector.multi_reduction <maximumf>, %126, %cst_35 [1] : vector<3x16x16xf32> to vector<3x16xf32>
      %128 = vector.shape_cast %127 : vector<3x16xf32> to vector<3x1x16xf32>
      %129 = vector.broadcast %128 : vector<3x1x16xf32> to vector<3x16x16xf32>
      %130 = arith.subf %126, %129 : vector<3x16x16xf32>
      %131 = vector.broadcast %128 : vector<3x1x16xf32> to vector<3x16x16xf32>
      %132 = arith.subf %126, %131 : vector<3x16x16xf32>
      %133 = math.exp %132 : vector<3x16x16xf32>
      %cst_36 = arith.constant dense<0.000000e+00> : vector<3x16xf32>
      %134 = vector.multi_reduction <add>, %133, %cst_36 [1] : vector<3x16x16xf32> to vector<3x16xf32>
      %135 = vector.shape_cast %134 : vector<3x16xf32> to vector<3x1x16xf32>
      %136 = math.log %135 : vector<3x1x16xf32>
      %137 = vector.broadcast %136 : vector<3x1x16xf32> to vector<3x16x16xf32>
      %138 = arith.subf %130, %137 : vector<3x16x16xf32>
      %c5_i32 = arith.constant 5 : i32
      %cst_37 = arith.constant dense<0xFF800000> : vector<3x16xf32>
      %139 = vector.multi_reduction <maximumf>, %138, %cst_37 [2] : vector<3x16x16xf32> to vector<3x16xf32>
      %140 = vector.shape_cast %139 : vector<3x16xf32> to vector<3x16x1xf32>
      %141 = vector.broadcast %140 : vector<3x16x1xf32> to vector<3x16x16xf32>
      %142 = arith.subf %138, %141 : vector<3x16x16xf32>
      %143 = vector.broadcast %140 : vector<3x16x1xf32> to vector<3x16x16xf32>
      %144 = arith.subf %138, %143 : vector<3x16x16xf32>
      %145 = math.exp %144 : vector<3x16x16xf32>
      %cst_38 = arith.constant dense<0.000000e+00> : vector<3x16xf32>
      %146 = vector.multi_reduction <add>, %145, %cst_38 [2] : vector<3x16x16xf32> to vector<3x16xf32>
      %147 = vector.shape_cast %146 : vector<3x16xf32> to vector<3x16x1xf32>
      %148 = math.log %147 : vector<3x16x1xf32>
      %149 = vector.broadcast %148 : vector<3x16x1xf32> to vector<3x16x16xf32>
      %150 = arith.subf %142, %149 : vector<3x16x16xf32>
      %cst_39 = arith.constant dense<0xFF800000> : vector<3x16xf32>
      %151 = vector.multi_reduction <maximumf>, %150, %cst_39 [1] : vector<3x16x16xf32> to vector<3x16xf32>
      %152 = vector.shape_cast %151 : vector<3x16xf32> to vector<3x1x16xf32>
      %153 = vector.broadcast %152 : vector<3x1x16xf32> to vector<3x16x16xf32>
      %154 = arith.subf %150, %153 : vector<3x16x16xf32>
      %155 = vector.broadcast %152 : vector<3x1x16xf32> to vector<3x16x16xf32>
      %156 = arith.subf %150, %155 : vector<3x16x16xf32>
      %157 = math.exp %156 : vector<3x16x16xf32>
      %cst_40 = arith.constant dense<0.000000e+00> : vector<3x16xf32>
      %158 = vector.multi_reduction <add>, %157, %cst_40 [1] : vector<3x16x16xf32> to vector<3x16xf32>
      %159 = vector.shape_cast %158 : vector<3x16xf32> to vector<3x1x16xf32>
      %160 = math.log %159 : vector<3x1x16xf32>
      %161 = vector.broadcast %160 : vector<3x1x16xf32> to vector<3x16x16xf32>
      %162 = arith.subf %154, %161 : vector<3x16x16xf32>
      %c6_i32 = arith.constant 6 : i32
      %cst_41 = arith.constant dense<0xFF800000> : vector<3x16xf32>
      %163 = vector.multi_reduction <maximumf>, %162, %cst_41 [2] : vector<3x16x16xf32> to vector<3x16xf32>
      %164 = vector.shape_cast %163 : vector<3x16xf32> to vector<3x16x1xf32>
      %165 = vector.broadcast %164 : vector<3x16x1xf32> to vector<3x16x16xf32>
      %166 = arith.subf %162, %165 : vector<3x16x16xf32>
      %167 = vector.broadcast %164 : vector<3x16x1xf32> to vector<3x16x16xf32>
      %168 = arith.subf %162, %167 : vector<3x16x16xf32>
      %169 = math.exp %168 : vector<3x16x16xf32>
      %cst_42 = arith.constant dense<0.000000e+00> : vector<3x16xf32>
      %170 = vector.multi_reduction <add>, %169, %cst_42 [2] : vector<3x16x16xf32> to vector<3x16xf32>
      %171 = vector.shape_cast %170 : vector<3x16xf32> to vector<3x16x1xf32>
      %172 = math.log %171 : vector<3x16x1xf32>
      %173 = vector.broadcast %172 : vector<3x16x1xf32> to vector<3x16x16xf32>
      %174 = arith.subf %166, %173 : vector<3x16x16xf32>
      %cst_43 = arith.constant dense<0xFF800000> : vector<3x16xf32>
      %175 = vector.multi_reduction <maximumf>, %174, %cst_43 [1] : vector<3x16x16xf32> to vector<3x16xf32>
      %176 = vector.shape_cast %175 : vector<3x16xf32> to vector<3x1x16xf32>
      %177 = vector.broadcast %176 : vector<3x1x16xf32> to vector<3x16x16xf32>
      %178 = arith.subf %174, %177 : vector<3x16x16xf32>
      %179 = vector.broadcast %176 : vector<3x1x16xf32> to vector<3x16x16xf32>
      %180 = arith.subf %174, %179 : vector<3x16x16xf32>
      %181 = math.exp %180 : vector<3x16x16xf32>
      %cst_44 = arith.constant dense<0.000000e+00> : vector<3x16xf32>
      %182 = vector.multi_reduction <add>, %181, %cst_44 [1] : vector<3x16x16xf32> to vector<3x16xf32>
      %183 = vector.shape_cast %182 : vector<3x16xf32> to vector<3x1x16xf32>
      %184 = math.log %183 : vector<3x1x16xf32>
      %185 = vector.broadcast %184 : vector<3x1x16xf32> to vector<3x16x16xf32>
      %186 = arith.subf %178, %185 : vector<3x16x16xf32>
      %c7_i32 = arith.constant 7 : i32
      %cst_45 = arith.constant dense<0xFF800000> : vector<3x16xf32>
      %187 = vector.multi_reduction <maximumf>, %186, %cst_45 [2] : vector<3x16x16xf32> to vector<3x16xf32>
      %188 = vector.shape_cast %187 : vector<3x16xf32> to vector<3x16x1xf32>
      %189 = vector.broadcast %188 : vector<3x16x1xf32> to vector<3x16x16xf32>
      %190 = arith.subf %186, %189 : vector<3x16x16xf32>
      %191 = vector.broadcast %188 : vector<3x16x1xf32> to vector<3x16x16xf32>
      %192 = arith.subf %186, %191 : vector<3x16x16xf32>
      %193 = math.exp %192 : vector<3x16x16xf32>
      %cst_46 = arith.constant dense<0.000000e+00> : vector<3x16xf32>
      %194 = vector.multi_reduction <add>, %193, %cst_46 [2] : vector<3x16x16xf32> to vector<3x16xf32>
      %195 = vector.shape_cast %194 : vector<3x16xf32> to vector<3x16x1xf32>
      %196 = math.log %195 : vector<3x16x1xf32>
      %197 = vector.broadcast %196 : vector<3x16x1xf32> to vector<3x16x16xf32>
      %198 = arith.subf %190, %197 : vector<3x16x16xf32>
      %cst_47 = arith.constant dense<0xFF800000> : vector<3x16xf32>
      %199 = vector.multi_reduction <maximumf>, %198, %cst_47 [1] : vector<3x16x16xf32> to vector<3x16xf32>
      %200 = vector.shape_cast %199 : vector<3x16xf32> to vector<3x1x16xf32>
      %201 = vector.broadcast %200 : vector<3x1x16xf32> to vector<3x16x16xf32>
      %202 = arith.subf %198, %201 : vector<3x16x16xf32>
      %203 = vector.broadcast %200 : vector<3x1x16xf32> to vector<3x16x16xf32>
      %204 = arith.subf %198, %203 : vector<3x16x16xf32>
      %205 = math.exp %204 : vector<3x16x16xf32>
      %cst_48 = arith.constant dense<0.000000e+00> : vector<3x16xf32>
      %206 = vector.multi_reduction <add>, %205, %cst_48 [1] : vector<3x16x16xf32> to vector<3x16xf32>
      %207 = vector.shape_cast %206 : vector<3x16xf32> to vector<3x1x16xf32>
      %208 = math.log %207 : vector<3x1x16xf32>
      %209 = vector.broadcast %208 : vector<3x1x16xf32> to vector<3x16x16xf32>
      %210 = arith.subf %202, %209 : vector<3x16x16xf32>
      %c8_i32 = arith.constant 8 : i32
      %cst_49 = arith.constant dense<0xFF800000> : vector<3x16xf32>
      %211 = vector.multi_reduction <maximumf>, %210, %cst_49 [2] : vector<3x16x16xf32> to vector<3x16xf32>
      %212 = vector.shape_cast %211 : vector<3x16xf32> to vector<3x16x1xf32>
      %213 = vector.broadcast %212 : vector<3x16x1xf32> to vector<3x16x16xf32>
      %214 = arith.subf %210, %213 : vector<3x16x16xf32>
      %215 = vector.broadcast %212 : vector<3x16x1xf32> to vector<3x16x16xf32>
      %216 = arith.subf %210, %215 : vector<3x16x16xf32>
      %217 = math.exp %216 : vector<3x16x16xf32>
      %cst_50 = arith.constant dense<0.000000e+00> : vector<3x16xf32>
      %218 = vector.multi_reduction <add>, %217, %cst_50 [2] : vector<3x16x16xf32> to vector<3x16xf32>
      %219 = vector.shape_cast %218 : vector<3x16xf32> to vector<3x16x1xf32>
      %220 = math.log %219 : vector<3x16x1xf32>
      %221 = vector.broadcast %220 : vector<3x16x1xf32> to vector<3x16x16xf32>
      %222 = arith.subf %214, %221 : vector<3x16x16xf32>
      %cst_51 = arith.constant dense<0xFF800000> : vector<3x16xf32>
      %223 = vector.multi_reduction <maximumf>, %222, %cst_51 [1] : vector<3x16x16xf32> to vector<3x16xf32>
      %224 = vector.shape_cast %223 : vector<3x16xf32> to vector<3x1x16xf32>
      %225 = vector.broadcast %224 : vector<3x1x16xf32> to vector<3x16x16xf32>
      %226 = arith.subf %222, %225 : vector<3x16x16xf32>
      %227 = vector.broadcast %224 : vector<3x1x16xf32> to vector<3x16x16xf32>
      %228 = arith.subf %222, %227 : vector<3x16x16xf32>
      %229 = math.exp %228 : vector<3x16x16xf32>
      %cst_52 = arith.constant dense<0.000000e+00> : vector<3x16xf32>
      %230 = vector.multi_reduction <add>, %229, %cst_52 [1] : vector<3x16x16xf32> to vector<3x16xf32>
      %231 = vector.shape_cast %230 : vector<3x16xf32> to vector<3x1x16xf32>
      %232 = math.log %231 : vector<3x1x16xf32>
      %233 = vector.broadcast %232 : vector<3x1x16xf32> to vector<3x16x16xf32>
      %234 = arith.subf %226, %233 : vector<3x16x16xf32>
      %c9_i32 = arith.constant 9 : i32
      %cst_53 = arith.constant dense<0xFF800000> : vector<3x16xf32>
      %235 = vector.multi_reduction <maximumf>, %234, %cst_53 [2] : vector<3x16x16xf32> to vector<3x16xf32>
      %236 = vector.shape_cast %235 : vector<3x16xf32> to vector<3x16x1xf32>
      %237 = vector.broadcast %236 : vector<3x16x1xf32> to vector<3x16x16xf32>
      %238 = arith.subf %234, %237 : vector<3x16x16xf32>
      %239 = vector.broadcast %236 : vector<3x16x1xf32> to vector<3x16x16xf32>
      %240 = arith.subf %234, %239 : vector<3x16x16xf32>
      %241 = math.exp %240 : vector<3x16x16xf32>
      %cst_54 = arith.constant dense<0.000000e+00> : vector<3x16xf32>
      %242 = vector.multi_reduction <add>, %241, %cst_54 [2] : vector<3x16x16xf32> to vector<3x16xf32>
      %243 = vector.shape_cast %242 : vector<3x16xf32> to vector<3x16x1xf32>
      %244 = math.log %243 : vector<3x16x1xf32>
      %245 = vector.broadcast %244 : vector<3x16x1xf32> to vector<3x16x16xf32>
      %246 = arith.subf %238, %245 : vector<3x16x16xf32>
      %cst_55 = arith.constant dense<0xFF800000> : vector<3x16xf32>
      %247 = vector.multi_reduction <maximumf>, %246, %cst_55 [1] : vector<3x16x16xf32> to vector<3x16xf32>
      %248 = vector.shape_cast %247 : vector<3x16xf32> to vector<3x1x16xf32>
      %249 = vector.broadcast %248 : vector<3x1x16xf32> to vector<3x16x16xf32>
      %250 = arith.subf %246, %249 : vector<3x16x16xf32>
      %251 = math.exp %250 : vector<3x16x16xf32>
      %cst_56 = arith.constant dense<0.000000e+00> : vector<3x16xf32>
      %252 = vector.multi_reduction <add>, %251, %cst_56 [1] : vector<3x16x16xf32> to vector<3x16xf32>
      %253 = vector.shape_cast %252 : vector<3x16xf32> to vector<3x1x16xf32>
      %254 = vector.broadcast %253 : vector<3x1x16xf32> to vector<3x16x16xf32>
      %255 = arith.divf %251, %254 : vector<3x16x16xf32>
      %cst_57 = arith.constant 0.000000e+00 : f32
      %256 = vector.shape_cast %11 : vector<3x16x1xi1> to vector<3x16x1xi1>
      %257 = vector.broadcast %256 : vector<3x16x1xi1> to vector<3x16x16xi1>
      %258 = vector.broadcast %cst_57 : f32 to vector<3x16x16xf32>
      %259 = arith.select %257, %255, %258 : vector<3x16x16xi1>, vector<3x16x16xf32>
      %260 = vector.shape_cast %259 : vector<3x16x16xf32> to vector<48x16xf32>
      %261 = arith.subf %260, %3 : vector<48x16xf32>
      %262 = arith.mulf %261, %261 : vector<48x16xf32>
      %263 = vector.shape_cast %262 : vector<48x16xf32> to vector<1x48x16xf32>
      %cst_58 = arith.constant dense<0.000000e+00> : vector<1xf32>
      %264 = vector.multi_reduction <add>, %263, %cst_58 [1, 2] : vector<1x48x16xf32> to vector<1xf32>
      %265 = vector.shape_cast %264 : vector<1xf32> to vector<1x1x1xf32>
      %266 = vector.extract %265[0, 0, 0] : f32 from vector<1x1x1xf32>
      %c0_59 = arith.constant 0 : index
      %c0_60 = arith.constant 0 : index
      %267 = vector.load %arg3[%c0_59, %c0_60] : memref<48x16xf32, #tpu.memory_space<vmem>>, vector<48x16xf32>
      tpu.vector_store %arg3[%c0_59, %c0_60], %260 {strides = array<i32>} : memref<48x16xf32, #tpu.memory_space<vmem>>, vector<48x16xf32>,
      %c1_i32_61 = arith.constant 1 : i32
      %268 = arith.addi %arg4, %c1_i32_61 : i32
      %cst_62 = arith.constant 1.000000e-10 : f32
      %269 = arith.cmpf olt, %266, %cst_62 : f32
      %270 = arith.extui %269 : i1 to i32
      scf.yield %268, %270 : i32, i32
    }
    return
  }
}

</mosaic_0001>

<bundles_post_ra>
// kernel: tpu_custom_call.1
= control target key start
LH: loop header
LB: loop body
LE: loop exit
PB: predicated region body
PF: predicated region fallthrough
CT: control target
= control target key end

     0   :  { %vm21_vm0 = vcmask 130048   ;;  %s2463_s9 = smov 0   ;;  %s3041_s0 = inlined_call_operand.vmem [shape: bf16[48,48], index: 0, kind: input, shape index: {}]   ;;  %s3042_s1 = inlined_call_operand.vmem [shape: f32[48,16], index: 1, kind: input, shape index: {}]   ;;  %s3043_s2 = inlined_call_operand.vmem [shape: f32[3,16,1], index: 2, kind: input, shape index: {}]   ;;  %s3044_s3 = inlined_call_operand.vmem [shape: f32[48,16], index: 3, kind: output, shape index: {}]  }
   0x1   :  { %v15_v0 = vld [vmem:[%s3042_s1] sm:$0xff]  ;;  %v16_v1 = vld [vmem:[%s3042_s1 + $0x8] sm:$0xff]  ;;  %v17_v2 = vld [vmem:[%s3042_s1 + $0x10] sm:$0xff] }
   0x2   :  { %22 = vst.msk [vmem:[%s3044_s3] sm:$0xff] %vm21_vm0, %v15_v0  ;;  %v18_v3 = vld [vmem:[%s3042_s1 + $0x18] sm:$0xff]  ;;  %v19_v4 = vld [vmem:[%s3042_s1 + $0x20] sm:$0xff]  ;;  %v20_v5 = vld [vmem:[%s3042_s1 + $0x28] sm:$0xff] }
   0x3   :  { %23 = vst.msk [vmem:[%s3044_s3 + $0x8] sm:$0xff] %vm21_vm0, %v16_v1 }
   0x4   :  { %24 = vst.msk [vmem:[%s3044_s3 + $0x10] sm:$0xff] %vm21_vm0, %v17_v2 }
   0x5   :  { %25 = vst.msk [vmem:[%s3044_s3 + $0x18] sm:$0xff] %vm21_vm0, %v18_v3 }
   0x6   :  { %26 = vst.msk [vmem:[%s3044_s3 + $0x20] sm:$0xff] %vm21_vm0, %v19_v4 }
   0x7   :  { %27 = vst.msk [vmem:[%s3044_s3 + $0x28] sm:$0xff] %vm21_vm0, %v20_v5 }
   0x8 LB: > { %v1948_v15 = vld [vmem:[%s3041_s0 + $0x8] sm:$0xff]  ;;  %v1947_v16 = vld [vmem:[%s3041_s0] sm:$0xff]  ;;  %vm67_vm1 = vcmask 392192   ;;  %v1949_v17 = vld [vmem:[%s3041_s0 + $0x10] sm:$0xff]  ;;  %v2400_v27 = vmov 0   ;;  %s1909_s9 = sadd.s32 1, %s2398_s9   ;;  %s2398_s9 = sphi %s2463_s9, %s1909_s9  }
   0x9   : > { %v2487_v11 = vld [vmem:[%s3044_s3] sm:$0xff]  ;;  %1967 = vset.pattern.permute.xlu1 %v2400_v27  ;;  %1968 = vset.pattern.permute.xlu2 %v2400_v27  ;;  %v216_v29 = vld [vmem:[%s3043_s2 + $0x8] sm:$0xff]  ;;  %v217_v35 = vld [vmem:[%s3043_s2 + $0x10] sm:$0xff]  ;;  %p31_p1 = scmp.lt.s32.totalorder %s1909_s9, 50 }
   0xa   : > { %101 = vxpose.xlu0.b32.start [1/6] (short) (narrow) %v2487_v11, 16  ;;  %v2495_v13 = vld [vmem:[%s3044_s3 + $0x8] sm:$0xff]  ;;  %v215_v26 = vld [vmem:[%s3043_s2] sm:$0xff]  ;;  %vm222_vm3 = vcmp.gt.f32.partialorder %v216_v29, 0.5  ;;  %vm223_vm5 = vcmp.gt.f32.partialorder %v217_v35, 0.5  ;;  %v218_v37 = vld [vmem:[%s3043_s2 + $0x18] sm:$0xff] }
   0xb   : > { %v2477_v8 = vld [vmem:[%s3044_s3 + $0x10] sm:$0xff]  ;;  %v49_v14 = vpack.c.bf16 %v2495_v13, %v2487_v11  ;;  %vm221_vm2 = vcmp.gt.f32.partialorder %v215_v26, 0.5  ;;  %v234_v30 = vsel %vm222_vm3, 1, %v2400_v27  ;;  %v219_v32 = vld [vmem:[%s3043_s2 + $0x20] sm:$0xff]  ;;  %v235_v36 = vsel %vm223_vm5, 1, %v2400_v27  ;;  %v220_v39 = vld [vmem:[%s3043_s2 + $0x28] sm:$0xff] }
   0xc   : > { %v2482_v10 = vld [vmem:[%s3044_s3 + $0x18] sm:$0xff]  ;;  %v233_v28 = vsel %vm221_vm2, 1, %v2400_v27  ;;  %vm225_vm4 = vcmp.gt.f32.partialorder %v219_v32, 0.5  ;;  %246 = vperm.xlu2 %1968, %v235_v36   ;;  %vm224_vm6 = vcmp.gt.f32.partialorder %v218_v37, 0.5  ;;  %vm226_vm7 = vcmp.gt.f32.partialorder %v220_v39, 0.5 }
   0xd   : > { %v41_v6 = vld [vmem:[%s3044_s3 + $0x20] sm:$0xff]  ;;  %v50_v12 = vpack.c.bf16 %v2482_v10, %v2477_v8  ;;  %240 = vperm.xlu1 %1967, %v233_v28   ;;  %v237_v33 = vsel %vm225_vm4, 1, %v2400_v27  ;;  %v236_v38 = vsel %vm224_vm6, 1, %v2400_v27  ;;  %v238_v40 = vsel %vm226_vm7, 1, %v2400_v27 }
   0xe   : > { %v42_v7 = vld [vmem:[%s3044_s3 + $0x28] sm:$0xff] }
   0xf   : > { %v51_v9 = vpack.c.bf16 %v42_v7, %v41_v6 }
  0x11   : > { %1950 = vmatpush.bf16.msra.mxu3 %v51_v9  ;;  %82 = vmatpush.bf16.msra.mxu0 %v51_v9 }
  0x12   : > { %102 = vxpose.xlu0.b32.cont [2/6] (short) (narrow) %v2495_v13, 16 }
  0x14   : > { %249 = vperm.xlu2 %1968, %v236_v38  }
  0x15   : > { %1951 = vmatpush.bf16.msra.mxu3 %v50_v12  ;;  %83 = vmatpush.bf16.msra.mxu0 %v50_v12 }
  0x16   : > { %243 = vperm.xlu1 %1967, %v234_v30  }
  0x19   : > { %1952 = vmatpush.bf16.msra.mxu3 %v49_v14  ;;  %84 = vmatpush.bf16.msra.mxu0 %v49_v14 }
  0x1a   : > { %103 = vxpose.xlu0.b32.cont [3/6] (short) (narrow) %v2477_v8, 16 }
  0x1c   : > { %1937 = vmatmul.msk.bf16.vlgmr.msra.gmra.mxu3 %vm67_vm1, %v1948_v15  ;;  %1936 = vmatmul.msk.bf16.vlgmr.msra.gmra.mxu0 %vm67_vm1, %v1947_v16 }
  0x1d   : > { %255 = vperm.xlu2 %1968, %v238_v40  }
  0x1e   : > { %252 = vperm.xlu1 %1967, %v237_v33  }
  0x22   : > { %104 = vxpose.xlu0.b32.cont [4/6] (short) (narrow) %v2482_v10, 16 }
  0x2a   : > { %105 = vxpose.xlu0.b32.cont [5/6] (short) (narrow) %v41_v6, 16 }
  0x2c   : > { %1938 = vmatmul.msk.bf16.gmra.mxu3 %vm67_vm1, %v1949_v17 }
  0x32   : > { %106 = vxpose.xlu0.b32.end [6/6] (short) (narrow) %v42_v7, 16 }
  0x66   : > { %v2552_v51 = vpop.permute.xlu2 %246 }
  0x67   : > { %vm259_vm10 = vcmp.eq.s32.totalorder %v2552_v51, 1 }
  0x6e   : > { %v2558_v56 = vpop.permute.xlu2 %249 }
  0x6f   : > { %vm260_vm11 = vcmp.eq.s32.totalorder %v2558_v56, 1 }
  0x77   : > { %v2570_v2 = vpop.permute.xlu2 %255 }
  0x78   : > { %vm262_vm13 = vcmp.eq.s32.totalorder %v2570_v2, 1 }
  0x7f   : > { %v2540_v41 = vpop.permute.xlu1 %240 }
  0x80   : > { %vm257_vm8 = vcmp.eq.s32.totalorder %v2540_v41, 1 }
  0x88   : > { %v2545_v45 = vpop.permute.xlu1 %243 }
  0x89   : > { %vm258_vm9 = vcmp.eq.s32.totalorder %v2545_v45, 1 }
  0x90   : > { %v2564_v61 = vpop.permute.xlu1 %252 }
  0x91   : > { %vm261_vm12 = vcmp.eq.s32.totalorder %v2564_v61, 1 }
  0x99   : > { %v86_v21 = vpop.f32.mrf.mxu0  ;;  %1969 = vset.pattern.permute.xlu0 %v2400_v27 }
  0x9f   : > { %v91_v18 = vpop.f32.mrf.mxu3 }
  0xa1   : > { %v88_v24 = vpop.f32.mrf.mxu0 }
  0xa7   : > { %v93_v19 = vpop.f32.mrf.mxu3 }
  0xae   : > { %v117_v23 = vpop.trf.xlu0 }
  0xaf   : > { %v96_v20 = vpop.f32.mrf.mxu3 }
  0xb6   : > { %v118_v25 = vpop.trf.xlu0 }
  0xb7   : > { %v98_v22 = vpop.f32.mrf.mxu3 }
  0xb8   : > { %149 = vmatpush.msra.mxu1 %v98_v22 }
  0xba   : > { %150 = vmatpush.msra.mxu1 %v96_v20 }
  0xbc   : > { %151 = vmatpush.msra.mxu1 %v93_v19 }
  0xbe   : > { %152 = vmatpush.msra.mxu1 %v91_v18 }
  0xc0   : > { %153 = vmatpush.msra.mxu1 %v88_v24 }
  0xc2   : > { %154 = vmatpush.msra.mxu1 %v86_v21 }
  0xc3   : > { %1939 = vmatmul.msk.f32.vlgmr.msra.gmra.mxu1 %vm67_vm1, %v117_v23 }
  0xcb   : > { %1940 = vmatmul.msk.f32.gmra.mxu1 %vm67_vm1, %v118_v25 }
 0x140   : > { %v156_v31 = vpop.f32.mrf.mxu1 }
 0x148   : > { %v159_v34 = vpop.f32.mrf.mxu1 }
 0x149   : > { %194 = vmatpush.msrb.mxu0 %v159_v34  ;;  %1953 = vmatpush.msra.mxu2 %v159_v34 }
 0x14b   : > { %195 = vmatpush.msrb.mxu0 %v156_v31  ;;  %1954 = vmatpush.msra.mxu2 %v156_v31 }
 0x14c   : > { %1941 = vmatmul.msk.f32.vlgmr.msrb.gmra.mxu0 %vm21_vm0, %v86_v21  ;;  %1942 = vmatmul.msk.f32.vlgmr.msra.gmra.mxu2 %vm21_vm0, %v88_v24 }
 0x154   : > { %1943 = vmatmul.msk.f32.gmra.mxu2 %vm21_vm0, %v91_v18 }
 0x15c   : > { %1944 = vmatmul.msk.f32.gmra.mxu2 %vm21_vm0, %v93_v19 }
 0x164   : > { %1945 = vmatmul.msk.f32.gmra.mxu2 %vm21_vm0, %v96_v20 }
 0x16c   : > { %1946 = vmatmul.msk.f32.gmra.mxu2 %vm21_vm0, %v98_v22 }
 0x1c9   : > { %v197_v42 = vpop.f32.mrf.mxu0 }
 0x1ca   : > { %v227_v43 = vmul.f32 200.0, %v197_v42 }
 0x1cc   : > { %v263_v44 = vsel %vm257_vm8, %v227_v43, -100.0 }
 0x1cd   : > { %v269_v46 = vsel %vm21_vm0, %v263_v44, -inf }
 0x1ce   : > { %270 = vmax.xlane.f32.xlu1 %v269_v46 }
 0x1cf   : > { %v200_v47 = vpop.f32.mrf.mxu2 }
 0x1d0   : > { %v228_v48 = vmul.f32 200.0, %v200_v47 }
 0x1d2   : > { %v264_v49 = vsel %vm258_vm9, %v228_v48, -100.0 }
 0x1d3   : > { %v272_v50 = vsel %vm21_vm0, %v264_v49, -inf }
 0x1d4   : > { %273 = vmax.xlane.f32.xlu2 %v272_v50 }
 0x1d7   : > { %v203_v52 = vpop.f32.mrf.mxu2 }
 0x1d8   : > { %v229_v53 = vmul.f32 200.0, %v203_v52 }
 0x1da   : > { %v265_v54 = vsel %vm259_vm10, %v229_v53, -100.0 }
 0x1db   : > { %v275_v55 = vsel %vm21_vm0, %v265_v54, -inf }
 0x1dc   : > { %276 = vmax.xlane.f32.xlu0 %v275_v55 }
 0x1df   : > { %v206_v57 = vpop.f32.mrf.mxu2 }
 0x1e0   : > { %v230_v58 = vmul.f32 200.0, %v206_v57 }
 0x1e2   : > { %v266_v59 = vsel %vm260_vm11, %v230_v58, -100.0 }
 0x1e3   : > { %v278_v60 = vsel %vm21_vm0, %v266_v59, -inf }
 0x1e4   : > { %279 = vmax.xlane.f32.xlu2 %v278_v60 }
 0x1e7   : > { %v209_v62 = vpop.f32.mrf.mxu2 }
 0x1e8   : > { %v231_v63 = vmul.f32 200.0, %v209_v62 }
 0x1ea   : > { %v267_v0 = vsel %vm261_vm12, %v231_v63, -100.0 }
 0x1eb   : > { %v281_v1 = vsel %vm21_vm0, %v267_v0, -inf }
 0x1ec   : > { %282 = vmax.xlane.f32.xlu1 %v281_v1 }
 0x1ef   : > { %v212_v3 = vpop.f32.mrf.mxu2 }
 0x1f0   : > { %v232_v4 = vmul.f32 200.0, %v212_v3 }
 0x1f2   : > { %v268_v5 = vsel %vm262_vm13, %v232_v4, -100.0 }
 0x1f3   : > { %v284_v6 = vsel %vm21_vm0, %v268_v5, -inf }
 0x1f4   : > { %285 = vmax.xlane.f32.xlu2 %v284_v6 }
 0x241   : > { %v271_v7 = vpop.xlane.xlu1 %270 }
 0x242   : > { %v287_v9 = vsub.f32 %v263_v44, %v271_v7 }
 0x244   : > { %v293_v12 = vmul.f32 1.442695, %v287_v9 }
 0x246   : > { %1970 = vpow2.f32 %v293_v12 }
 0x247   : > { %v274_v14 = vpop.xlane.xlu2 %273 }
 0x248   : > { %v288_v15 = vsub.f32 %v264_v49, %v274_v14 }
 0x24a   : > { %v295_v16 = vmul.f32 1.442695, %v288_v15 }
 0x24c   : > { %v1971_v17 = vpop.eup %1970  ;;  %1972 = vpow2.f32 %v295_v16 }
 0x24d   : > { %v305_v18 = vsel %vm21_vm0, %v1971_v17, 0.0 }
 0x24e   : > { %306 = vadd.xlane.f32.xlu1 %v305_v18 }
 0x24f   : > { %v277_v19 = vpop.xlane.xlu0 %276 }
 0x250   : > { %v289_v20 = vsub.f32 %v265_v54, %v277_v19 }
 0x252   : > { %v1973_v21 = vpop.eup %1972  ;;  %v297_v22 = vmul.f32 1.442695, %v289_v20 }
 0x253   : > { %v308_v23 = vsel %vm21_vm0, %v1973_v21, 0.0 }
 0x254   : > { %309 = vadd.xlane.f32.xlu2 %v308_v23  ;;  %1974 = vpow2.f32 %v297_v22 }
 0x257   : > { %v280_v24 = vpop.xlane.xlu2 %279 }
 0x258   : > { %v290_v25 = vsub.f32 %v266_v59, %v280_v24 }
 0x25a   : > { %v1975_v26 = vpop.eup %1974  ;;  %v299_v27 = vmul.f32 1.442695, %v290_v25 }
 0x25b   : > { %v311_v28 = vsel %vm21_vm0, %v1975_v26, 0.0 }
 0x25c   : > { %312 = vadd.xlane.f32.xlu1 %v311_v28  ;;  %1976 = vpow2.f32 %v299_v27 }
 0x25f   : > { %v283_v29 = vpop.xlane.xlu1 %282 }
 0x260   : > { %v2579_v30 = vsub.f32 %v267_v0, %v283_v29 }
 0x262   : > { %v1977_v31 = vpop.eup %1976  ;;  %v301_v32 = vmul.f32 1.442695, %v2579_v30 }
 0x263   : > { %v314_v33 = vsel %vm21_vm0, %v1977_v31, 0.0 }
 0x264   : > { %315 = vadd.xlane.f32.xlu2 %v314_v33  ;;  %1978 = vpow2.f32 %v301_v32 }
 0x267   : > { %v286_v34 = vpop.xlane.xlu2 %285 }
 0x268   : > { %v2583_v35 = vsub.f32 %v268_v5, %v286_v34 }
 0x26a   : > { %v1979_v36 = vpop.eup %1978  ;;  %v303_v37 = vmul.f32 1.442695, %v2583_v35 }
 0x26b   : > { %v317_v38 = vsel %vm21_vm0, %v1979_v36, 0.0 }
 0x26c   : > { %318 = vadd.xlane.f32.xlu1 %v317_v38  ;;  %1980 = vpow2.f32 %v303_v37 }
 0x272   : > { %v1981_v39 = vpop.eup %1980 }
 0x273   : > { %v320_v40 = vsel %vm21_vm0, %v1981_v39, 0.0 }
 0x274   : > { %321 = vadd.xlane.f32.xlu2 %v320_v40 }
 0x2c1   : > { %v307_v42 = vpop.xlane.xlu1 %306 }
 0x2c2   : > { %1982 = vlog2.f32 %v307_v42 }
 0x2c7   : > { %v310_v43 = vpop.xlane.xlu2 %309 }
 0x2c8   : > { %v1983_v44 = vpop.eup %1982  ;;  %1984 = vlog2.f32 %v310_v43 }
 0x2c9   : > { %v324_v46 = vmul.f32 0.6931472, %v1983_v44 }
 0x2cb   : > { %v335_v48 = vsub.f32 %v287_v9, %v324_v46 }
 0x2cd   : > { %v341_v53 = vsel %vm21_vm0, %v335_v48, -inf }
 0x2ce   : > { %v1985_v47 = vpop.eup %1984 }
 0x2cf   : > { %v326_v49 = vmul.f32 0.6931472, %v1985_v47  ;;  %v313_v50 = vpop.xlane.xlu1 %312 }
 0x2d0   : > { %1986 = vlog2.f32 %v313_v50 }
 0x2d1   : > { %v336_v52 = vsub.f32 %v288_v15, %v326_v49 }
 0x2d3   : > { %v342_v54 = vsel %vm21_vm0, %v336_v52, -inf }
 0x2d4   : > { %v343_v55 = vmax.f32 %v341_v53, %v342_v54 }
 0x2d6   : > { %v344_v57 = vrot.slane %v343_v55, 4  ;;  %v1987_v59 = vpop.eup %1986 }
 0x2d7   : > { %v316_v58 = vpop.xlane.xlu2 %315  ;;  %v328_v63 = vmul.f32 0.6931472, %v1987_v59 }
 0x2d8   : > { %v345_v60 = vmax.f32 %v343_v55, %v344_v57  ;;  %1988 = vlog2.f32 %v316_v58 }
 0x2d9   : > { %v337_v4 = vsub.f32 %v289_v20, %v328_v63 }
 0x2da   : > { %v346_v62 = vrot.slane %v345_v60, 2 }
 0x2db   : > { %v350_v15 = vsel %vm21_vm0, %v337_v4, -inf }
 0x2dc   : > { %v347_v0 = vmax.f32 %v345_v60, %v346_v62 }
 0x2de   : > { %v1989_v1 = vpop.eup %1988  ;;  %v348_v3 = vrot.slane %v347_v0, 1 }
 0x2df   : > { %v330_v5 = vmul.f32 0.6931472, %v1989_v1  ;;  %v319_v6 = vpop.xlane.xlu1 %318 }
 0x2e0   : > { %v349_v7 = vmax.f32 %v347_v0, %v348_v3  ;;  %1990 = vlog2.f32 %v319_v6 }
 0x2e1   : > { %v338_v9 = vsub.f32 %v290_v25, %v330_v5 }
 0x2e2   : > { %v2590_v12 = vsub.f32 %v335_v48, %v349_v7  ;;  %v2592_v14 = vsub.f32 %v336_v52, %v349_v7 }
 0x2e3   : > { %v351_v16 = vsel %vm21_vm0, %v338_v9, -inf }
 0x2e4   : > { %v352_v17 = vmax.f32 %v350_v15, %v351_v16  ;;  %v374_v18 = vmul.f32 1.442695, %v2590_v12  ;;  %v376_v19 = vmul.f32 1.442695, %v2592_v14 }
 0x2e6   : > { %v353_v21 = vrot.slane %v352_v17, 4  ;;  %1992 = vpow2.f32 %v374_v18  ;;  %v1991_v22 = vpop.eup %1990 }
 0x2e7   : > { %v322_v20 = vpop.xlane.xlu2 %321  ;;  %1994 = vpow2.f32 %v376_v19  ;;  %v332_v25 = vmul.f32 0.6931472, %v1991_v22 }
 0x2e8   : > { %v354_v23 = vmax.f32 %v352_v17, %v353_v21  ;;  %1996 = vlog2.f32 %v322_v20 }
 0x2e9   : > { %v339_v34 = vsub.f32 %v2579_v30, %v332_v25 }
 0x2ea   : > { %v355_v24 = vrot.slane %v354_v23, 2 }
 0x2eb   : > { %v359_v44 = vsel %vm21_vm0, %v339_v34, -inf }
 0x2ec   : > { %v1993_v26 = vpop.eup %1992  ;;  %v356_v27 = vmax.f32 %v354_v23, %v355_v24 }
 0x2ed   : > { %v1995_v28 = vpop.eup %1994  ;;  %v386_v29 = vsel %vm21_vm0, %v1993_v26, 0.0 }
 0x2ee   : > { %v1997_v31 = vpop.eup %1996  ;;  %v387_v32 = vsel %vm21_vm0, %v1995_v28, 0.0  ;;  %v357_v33 = vrot.slane %v356_v27, 1 }
 0x2ef   : > { %v334_v36 = vmul.f32 0.6931472, %v1997_v31  ;;  %v388_v37 = vadd.f32 %v387_v32, %v386_v29 }
 0x2f0   : > { %v358_v38 = vmax.f32 %v356_v27, %v357_v33 }
 0x2f1   : > { %v340_v39 = vsub.f32 %v2583_v35, %v334_v36  ;;  %v389_v40 = vrot.slane %v388_v37, 4 }
 0x2f2   : > { %v370_v42 = vsub.f32 %v337_v4, %v358_v38  ;;  %v371_v43 = vsub.f32 %v338_v9, %v358_v38 }
 0x2f3   : > { %v360_v46 = vsel %vm21_vm0, %v340_v39, -inf  ;;  %v390_v47 = vadd.f32 %v389_v40, %v388_v37 }
 0x2f4   : > { %v361_v48 = vmax.f32 %v359_v44, %v360_v46  ;;  %v378_v49 = vmul.f32 1.442695, %v370_v42  ;;  %v380_v50 = vmul.f32 1.442695, %v371_v43 }
 0x2f5   : > { %v391_v52 = vrot.slane %v390_v47, 2 }
 0x2f6   : > { %v362_v53 = vrot.slane %v361_v48, 4  ;;  %1998 = vpow2.f32 %v378_v49 }
 0x2f7   : > { %v392_v30 = vadd.f32 %v391_v52, %v390_v47  ;;  %2000 = vpow2.f32 %v380_v50 }
 0x2f8   : > { %v363_v54 = vmax.f32 %v361_v48, %v362_v53 }
 0x2f9   : > { %v393_v55 = vrot.slane %v392_v30, 1 }
 0x2fa   : > { %v364_v57 = vrot.slane %v363_v54, 2 }
 0x2fb   : > { %v394_v35 = vadd.f32 %v393_v55, %v392_v30 }
 0x2fc   : > { %v1999_v58 = vpop.eup %1998  ;;  %v365_v59 = vmax.f32 %v363_v54, %v364_v57 }
 0x2fd   : > { %v2001_v60 = vpop.eup %2000  ;;  %2002 = vlog2.f32 %v394_v35  ;;  %v395_v62 = vsel %vm21_vm0, %v1999_v58, 0.0 }
 0x2fe   : > { %v396_v63 = vsel %vm21_vm0, %v2001_v60, 0.0  ;;  %v366_v0 = vrot.slane %v365_v59, 1 }
 0x2ff   : > { %v397_v1 = vadd.f32 %v396_v63, %v395_v62 }
 0x300   : > { %v367_v3 = vmax.f32 %v365_v59, %v366_v0 }
 0x301   : > { %v398_v4 = vrot.slane %v397_v1, 4 }
 0x302   : > { %v372_v5 = vsub.f32 %v339_v34, %v367_v3  ;;  %v373_v6 = vsub.f32 %v340_v39, %v367_v3 }
 0x303   : > { %v2003_v7 = vpop.eup %2002  ;;  %v399_v9 = vadd.f32 %v398_v4, %v397_v1 }
 0x304   : > { %v414_v15 = vmul.f32 0.6931472, %v2003_v7  ;;  %v382_v16 = vmul.f32 1.442695, %v372_v5  ;;  %v384_v17 = vmul.f32 1.442695, %v373_v6 }
 0x305   : > { %v400_v18 = vrot.slane %v399_v9, 2 }
 0x306   : > { %v420_v19 = vsub.f32 %v2592_v14, %v414_v15  ;;  %v419_v21 = vsub.f32 %v2590_v12, %v414_v15  ;;  %2004 = vpow2.f32 %v382_v16 }
 0x307   : > { %v401_v20 = vadd.f32 %v400_v18, %v399_v9  ;;  %2006 = vpow2.f32 %v384_v17 }
 0x308   : > { %v428_v22 = vsel %vm21_vm0, %v420_v19, -inf  ;;  %v425_v23 = vsel %vm21_vm0, %v419_v21, -inf }
 0x309   : > { %429 = vmax.xlane.f32.xlu2 %v428_v22  ;;  %426 = vmax.xlane.f32.xlu1 %v425_v23  ;;  %v402_v24 = vrot.slane %v401_v20, 1 }
 0x30b   : > { %v403_v25 = vadd.f32 %v402_v24, %v401_v20 }
 0x30c   : > { %v2005_v26 = vpop.eup %2004 }
 0x30d   : > { %v2007_v27 = vpop.eup %2006  ;;  %2008 = vlog2.f32 %v403_v25  ;;  %v404_v28 = vsel %vm21_vm0, %v2005_v26, 0.0 }
 0x30e   : > { %v405_v14 = vsel %vm21_vm0, %v2007_v27, 0.0 }
 0x30f   : > { %v406_v29 = vadd.f32 %v405_v14, %v404_v28 }
 0x311   : > { %v407_v12 = vrot.slane %v406_v29, 4 }
 0x313   : > { %v2009_v31 = vpop.eup %2008  ;;  %v408_v32 = vadd.f32 %v407_v12, %v406_v29 }
 0x314   : > { %v416_v33 = vmul.f32 0.6931472, %v2009_v31 }
 0x315   : > { %v409_v34 = vrot.slane %v408_v32, 2 }
 0x316   : > { %v422_v36 = vsub.f32 %v371_v43, %v416_v33  ;;  %v421_v37 = vsub.f32 %v370_v42, %v416_v33 }
 0x317   : > { %v410_v38 = vadd.f32 %v409_v34, %v408_v32 }
 0x318   : > { %v434_v39 = vsel %vm21_vm0, %v422_v36, -inf  ;;  %v431_v40 = vsel %vm21_vm0, %v421_v37, -inf }
 0x319   : > { %435 = vmax.xlane.f32.xlu2 %v434_v39  ;;  %432 = vmax.xlane.f32.xlu1 %v431_v40  ;;  %v411_v44 = vrot.slane %v410_v38, 1 }
 0x31b   : > { %v412_v46 = vadd.f32 %v411_v44, %v410_v38 }
 0x31d   : > { %2010 = vlog2.f32 %v412_v46 }
 0x323   : > { %v2011_v47 = vpop.eup %2010 }
 0x324   : > { %v418_v48 = vmul.f32 0.6931472, %v2011_v47 }
 0x326   : > { %v424_v49 = vsub.f32 %v373_v6, %v418_v48  ;;  %v423_v50 = vsub.f32 %v372_v5, %v418_v48 }
 0x328   : > { %v440_v52 = vsel %vm21_vm0, %v424_v49, -inf  ;;  %v437_v53 = vsel %vm21_vm0, %v423_v50, -inf }
 0x329   : > { %441 = vmax.xlane.f32.xlu2 %v440_v52  ;;  %438 = vmax.xlane.f32.xlu1 %v437_v53 }
 0x37c   : > { %v430_v42 = vpop.xlane.xlu2 %429  ;;  %v427_v43 = vpop.xlane.xlu1 %426 }
 0x37d   : > { %v444_v30 = vsub.f32 %v420_v19, %v430_v42  ;;  %v443_v54 = vsub.f32 %v419_v21, %v427_v43 }
 0x37f   : > { %v451_v55 = vmul.f32 1.442695, %v444_v30  ;;  %v449_v57 = vmul.f32 1.442695, %v443_v54 }
 0x381   : > { %2012 = vpow2.f32 %v451_v55 }
 0x382   : > { %2014 = vpow2.f32 %v449_v57 }
 0x387   : > { %v2013_v35 = vpop.eup %2012 }
 0x388   : > { %v2015_v58 = vpop.eup %2014  ;;  %v464_v59 = vsel %vm21_vm0, %v2013_v35, 0.0 }
 0x389   : > { %465 = vadd.xlane.f32.xlu2 %v464_v59  ;;  %v461_v60 = vsel %vm21_vm0, %v2015_v58, 0.0 }
 0x38a   : > { %462 = vadd.xlane.f32.xlu1 %v461_v60 }
 0x38c   : > { %v436_v62 = vpop.xlane.xlu2 %435  ;;  %v433_v63 = vpop.xlane.xlu1 %432 }
 0x38d   : > { %v446_v0 = vsub.f32 %v422_v36, %v436_v62  ;;  %v445_v1 = vsub.f32 %v421_v37, %v433_v63 }
 0x38f   : > { %v455_v3 = vmul.f32 1.442695, %v446_v0  ;;  %v453_v4 = vmul.f32 1.442695, %v445_v1 }
 0x391   : > { %2016 = vpow2.f32 %v455_v3 }
 0x392   : > { %2018 = vpow2.f32 %v453_v4 }
 0x397   : > { %v2017_v5 = vpop.eup %2016 }
 0x398   : > { %v2019_v6 = vpop.eup %2018  ;;  %v470_v7 = vsel %vm21_vm0, %v2017_v5, 0.0 }
 0x399   : > { %471 = vadd.xlane.f32.xlu2 %v470_v7  ;;  %v467_v9 = vsel %vm21_vm0, %v2019_v6, 0.0 }
 0x39a   : > { %468 = vadd.xlane.f32.xlu1 %v467_v9 }
 0x39c   : > { %v442_v15 = vpop.xlane.xlu2 %441  ;;  %v439_v16 = vpop.xlane.xlu1 %438 }
 0x39d   : > { %v2620_v17 = vsub.f32 %v424_v49, %v442_v15  ;;  %v2622_v18 = vsub.f32 %v423_v50, %v439_v16 }
 0x39f   : > { %v459_v19 = vmul.f32 1.442695, %v2620_v17  ;;  %v457_v21 = vmul.f32 1.442695, %v2622_v18 }
 0x3a1   : > { %2020 = vpow2.f32 %v459_v19 }
 0x3a2   : > { %2022 = vpow2.f32 %v457_v21 }
 0x3a7   : > { %v2021_v20 = vpop.eup %2020 }
 0x3a8   : > { %v2023_v22 = vpop.eup %2022  ;;  %v476_v23 = vsel %vm21_vm0, %v2021_v20, 0.0 }
 0x3a9   : > { %477 = vadd.xlane.f32.xlu2 %v476_v23  ;;  %v473_v24 = vsel %vm21_vm0, %v2023_v22, 0.0 }
 0x3aa   : > { %474 = vadd.xlane.f32.xlu1 %v473_v24 }
 0x3fc   : > { %v466_v25 = vpop.xlane.xlu2 %465 }
 0x3fd   : > { %2024 = vlog2.f32 %v466_v25  ;;  %v463_v26 = vpop.xlane.xlu1 %462 }
 0x3fe   : > { %2026 = vlog2.f32 %v463_v26 }
 0x403   : > { %v2025_v27 = vpop.eup %2024 }
 0x404   : > { %v2027_v28 = vpop.eup %2026  ;;  %v482_v14 = vmul.f32 0.6931472, %v2025_v27 }
 0x405   : > { %v480_v29 = vmul.f32 0.6931472, %v2027_v28 }
 0x406   : > { %v492_v12 = vsub.f32 %v444_v30, %v482_v14 }
 0x407   : > { %v491_v31 = vsub.f32 %v443_v54, %v480_v29 }
 0x408   : > { %v498_v32 = vsel %vm21_vm0, %v492_v12, -inf }
 0x409   : > { %v497_v33 = vsel %vm21_vm0, %v491_v31, -inf }
 0x40a   : > { %v499_v34 = vmax.f32 %v497_v33, %v498_v32 }
 0x40c   : > { %v500_v36 = vrot.slane %v499_v34, 4  ;;  %v472_v37 = vpop.xlane.xlu2 %471 }
 0x40d   : > { %2028 = vlog2.f32 %v472_v37  ;;  %v469_v38 = vpop.xlane.xlu1 %468 }
 0x40e   : > { %v501_v39 = vmax.f32 %v499_v34, %v500_v36  ;;  %2030 = vlog2.f32 %v469_v38 }
 0x410   : > { %v502_v40 = vrot.slane %v501_v39, 2 }
 0x412   : > { %v503_v44 = vmax.f32 %v501_v39, %v502_v40 }
 0x413   : > { %v2029_v46 = vpop.eup %2028 }
 0x414   : > { %v2031_v47 = vpop.eup %2030  ;;  %v504_v48 = vrot.slane %v503_v44, 1  ;;  %v486_v49 = vmul.f32 0.6931472, %v2029_v46 }
 0x415   : > { %v484_v50 = vmul.f32 0.6931472, %v2031_v47 }
 0x416   : > { %v505_v52 = vmax.f32 %v503_v44, %v504_v48  ;;  %v494_v53 = vsub.f32 %v446_v0, %v486_v49 }
 0x417   : > { %v493_v42 = vsub.f32 %v445_v1, %v484_v50 }
 0x418   : > { %v2630_v43 = vsub.f32 %v491_v31, %v505_v52  ;;  %v507_v30 = vsel %vm21_vm0, %v494_v53, -inf  ;;  %v2633_v54 = vsub.f32 %v492_v12, %v505_v52 }
 0x419   : > { %v506_v55 = vsel %vm21_vm0, %v493_v42, -inf }
 0x41a   : > { %v530_v57 = vmul.f32 1.442695, %v2630_v43  ;;  %v508_v35 = vmax.f32 %v506_v55, %v507_v30  ;;  %v532_v58 = vmul.f32 1.442695, %v2633_v54 }
 0x41c   : > { %2032 = vpow2.f32 %v530_v57  ;;  %v509_v59 = vrot.slane %v508_v35, 4  ;;  %v478_v60 = vpop.xlane.xlu2 %477 }
 0x41d   : > { %2034 = vlog2.f32 %v478_v60  ;;  %v475_v62 = vpop.xlane.xlu1 %474 }
 0x41e   : > { %v510_v63 = vmax.f32 %v508_v35, %v509_v59  ;;  %2036 = vlog2.f32 %v475_v62 }
 0x41f   : > { %2038 = vpow2.f32 %v532_v58 }
 0x420   : > { %v511_v0 = vrot.slane %v510_v63, 2 }
 0x422   : > { %v2033_v1 = vpop.eup %2032  ;;  %v512_v3 = vmax.f32 %v510_v63, %v511_v0 }
 0x423   : > { %v2035_v4 = vpop.eup %2034  ;;  %v542_v6 = vsel %vm21_vm0, %v2033_v1, 0.0 }
 0x424   : > { %v2037_v5 = vpop.eup %2036  ;;  %v513_v7 = vrot.slane %v512_v3, 1  ;;  %v490_v9 = vmul.f32 0.6931472, %v2035_v4 }
 0x425   : > { %v2039_v15 = vpop.eup %2038  ;;  %v488_v16 = vmul.f32 0.6931472, %v2037_v5 }
 0x426   : > { %v514_v19 = vmax.f32 %v512_v3, %v513_v7  ;;  %v496_v21 = vsub.f32 %v2620_v17, %v490_v9  ;;  %v543_v20 = vsel %vm21_vm0, %v2039_v15, 0.0 }
 0x427   : > { %v495_v22 = vsub.f32 %v2622_v18, %v488_v16  ;;  %v544_v23 = vadd.f32 %v543_v20, %v542_v6 }
 0x428   : > { %v526_v24 = vsub.f32 %v493_v42, %v514_v19  ;;  %v516_v25 = vsel %vm21_vm0, %v496_v21, -inf  ;;  %v527_v26 = vsub.f32 %v494_v53, %v514_v19 }
 0x429   : > { %v515_v27 = vsel %vm21_vm0, %v495_v22, -inf  ;;  %v545_v28 = vrot.slane %v544_v23, 4 }
 0x42a   : > { %v534_v14 = vmul.f32 1.442695, %v526_v24  ;;  %v517_v29 = vmax.f32 %v515_v27, %v516_v25  ;;  %v536_v12 = vmul.f32 1.442695, %v527_v26 }
 0x42b   : > { %v546_v31 = vadd.f32 %v545_v28, %v544_v23 }
 0x42c   : > { %2040 = vpow2.f32 %v534_v14  ;;  %v518_v32 = vrot.slane %v517_v29, 4 }
 0x42d   : > { %v547_v33 = vrot.slane %v546_v31, 2  ;;  %2042 = vpow2.f32 %v536_v12 }
 0x42e   : > { %v519_v17 = vmax.f32 %v517_v29, %v518_v32 }
 0x42f   : > { %v548_v34 = vadd.f32 %v547_v33, %v546_v31 }
 0x430   : > { %v520_v36 = vrot.slane %v519_v17, 2 }
 0x431   : > { %v549_v18 = vrot.slane %v548_v34, 1 }
 0x432   : > { %v2041_v37 = vpop.eup %2040  ;;  %v521_v38 = vmax.f32 %v519_v17, %v520_v36 }
 0x433   : > { %v2043_v39 = vpop.eup %2042  ;;  %v551_v40 = vsel %vm21_vm0, %v2041_v37, 0.0  ;;  %v550_v44 = vadd.f32 %v549_v18, %v548_v34 }
 0x434   : > { %v522_v46 = vrot.slane %v521_v38, 1  ;;  %v552_v47 = vsel %vm21_vm0, %v2043_v39, 0.0 }
 0x435   : > { %2044 = vlog2.f32 %v550_v44  ;;  %v553_v48 = vadd.f32 %v552_v47, %v551_v40 }
 0x436   : > { %v523_v49 = vmax.f32 %v521_v38, %v522_v46 }
 0x437   : > { %v554_v50 = vrot.slane %v553_v48, 4 }
 0x438   : > { %v528_v52 = vsub.f32 %v495_v22, %v523_v49  ;;  %v529_v53 = vsub.f32 %v496_v21, %v523_v49 }
 0x439   : > { %v555_v42 = vadd.f32 %v554_v50, %v553_v48 }
 0x43a   : > { %v538_v30 = vmul.f32 1.442695, %v528_v52  ;;  %v540_v55 = vmul.f32 1.442695, %v529_v53 }
 0x43b   : > { %v2045_v57 = vpop.eup %2044  ;;  %v556_v35 = vrot.slane %v555_v42, 2 }
 0x43c   : > { %2046 = vpow2.f32 %v538_v30  ;;  %v570_v58 = vmul.f32 0.6931472, %v2045_v57 }
 0x43d   : > { %v557_v59 = vadd.f32 %v556_v35, %v555_v42  ;;  %2048 = vpow2.f32 %v540_v55 }
 0x43e   : > { %v576_v60 = vsub.f32 %v2633_v54, %v570_v58  ;;  %v575_v62 = vsub.f32 %v2630_v43, %v570_v58 }
 0x43f   : > { %v558_v63 = vrot.slane %v557_v59, 1 }
 0x440   : > { %v584_v0 = vsel %vm21_vm0, %v576_v60, -inf  ;;  %v581_v1 = vsel %vm21_vm0, %v575_v62, -inf }
 0x441   : > { %585 = vmax.xlane.f32.xlu2 %v584_v0  ;;  %582 = vmax.xlane.f32.xlu1 %v581_v1  ;;  %v559_v3 = vadd.f32 %v558_v63, %v557_v59 }
 0x442   : > { %v2047_v4 = vpop.eup %2046 }
 0x443   : > { %v2049_v5 = vpop.eup %2048  ;;  %v560_v6 = vsel %vm21_vm0, %v2047_v4, 0.0  ;;  %2050 = vlog2.f32 %v559_v3 }
 0x444   : > { %v561_v7 = vsel %vm21_vm0, %v2049_v5, 0.0 }
 0x445   : > { %v562_v9 = vadd.f32 %v561_v7, %v560_v6 }
 0x447   : > { %v563_v15 = vrot.slane %v562_v9, 4 }
 0x449   : > { %v2051_v54 = vpop.eup %2050  ;;  %v564_v16 = vadd.f32 %v563_v15, %v562_v9 }
 0x44a   : > { %v572_v43 = vmul.f32 0.6931472, %v2051_v54 }
 0x44b   : > { %v565_v19 = vrot.slane %v564_v16, 2 }
 0x44c   : > { %v578_v21 = vsub.f32 %v527_v26, %v572_v43  ;;  %v577_v20 = vsub.f32 %v526_v24, %v572_v43 }
 0x44d   : > { %v566_v22 = vadd.f32 %v565_v19, %v564_v16 }
 0x44e   : > { %v590_v23 = vsel %vm21_vm0, %v578_v21, -inf  ;;  %v587_v25 = vsel %vm21_vm0, %v577_v20, -inf }
 0x44f   : > { %591 = vmax.xlane.f32.xlu0 %v590_v23  ;;  %588 = vmax.xlane.f32.xlu1 %v587_v25  ;;  %v567_v27 = vrot.slane %v566_v22, 1 }
 0x451   : > { %v568_v28 = vadd.f32 %v567_v27, %v566_v22 }
 0x453   : > { %2052 = vlog2.f32 %v568_v28 }
 0x459   : > { %v2053_v14 = vpop.eup %2052 }
 0x45a   : > { %v574_v29 = vmul.f32 0.6931472, %v2053_v14 }
 0x45c   : > { %v580_v12 = vsub.f32 %v529_v53, %v574_v29  ;;  %v579_v31 = vsub.f32 %v528_v52, %v574_v29 }
 0x45e   : > { %v596_v32 = vsel %vm21_vm0, %v580_v12, -inf  ;;  %v593_v33 = vsel %vm21_vm0, %v579_v31, -inf }
 0x45f   : > { %597 = vmax.xlane.f32.xlu1 %v596_v32  ;;  %594 = vmax.xlane.f32.xlu2 %v593_v33 }
 0x4b4   : > { %v586_v24 = vpop.xlane.xlu2 %585  ;;  %v583_v26 = vpop.xlane.xlu1 %582 }
 0x4b5   : > { %v600_v17 = vsub.f32 %v576_v60, %v586_v24  ;;  %v599_v34 = vsub.f32 %v575_v62, %v583_v26 }
 0x4b7   : > { %v607_v36 = vmul.f32 1.442695, %v600_v17  ;;  %v605_v18 = vmul.f32 1.442695, %v599_v34 }
 0x4b9   : > { %2054 = vpow2.f32 %v607_v36 }
 0x4ba   : > { %2056 = vpow2.f32 %v605_v18 }
 0x4bf   : > { %v2055_v37 = vpop.eup %2054 }
 0x4c0   : > { %v2057_v38 = vpop.eup %2056  ;;  %v620_v39 = vsel %vm21_vm0, %v2055_v37, 0.0 }
 0x4c1   : > { %621 = vadd.xlane.f32.xlu2 %v620_v39  ;;  %v617_v40 = vsel %vm21_vm0, %v2057_v38, 0.0 }
 0x4c2   : > { %618 = vadd.xlane.f32.xlu0 %v617_v40  ;;  %v592_v44 = vpop.xlane.xlu0 %591  ;;  %v589_v46 = vpop.xlane.xlu1 %588 }
 0x4c3   : > { %v602_v47 = vsub.f32 %v578_v21, %v592_v44  ;;  %v601_v48 = vsub.f32 %v577_v20, %v589_v46 }
 0x4c5   : > { %v611_v49 = vmul.f32 1.442695, %v602_v47  ;;  %v609_v50 = vmul.f32 1.442695, %v601_v48 }
 0x4c7   : > { %2058 = vpow2.f32 %v611_v49 }
 0x4c8   : > { %2060 = vpow2.f32 %v609_v50 }
 0x4cd   : > { %v2059_v52 = vpop.eup %2058 }
 0x4ce   : > { %v2061_v53 = vpop.eup %2060  ;;  %v626_v42 = vsel %vm21_vm0, %v2059_v52, 0.0 }
 0x4cf   : > { %627 = vadd.xlane.f32.xlu0 %v626_v42  ;;  %v623_v30 = vsel %vm21_vm0, %v2061_v53, 0.0 }
 0x4d0   : > { %624 = vadd.xlane.f32.xlu1 %v623_v30 }
 0x4d2   : > { %v595_v55 = vpop.xlane.xlu2 %594  ;;  %v598_v57 = vpop.xlane.xlu1 %597 }
 0x4d3   : > { %v2660_v35 = vsub.f32 %v579_v31, %v595_v55  ;;  %v2662_v58 = vsub.f32 %v580_v12, %v598_v57 }
 0x4d5   : > { %v613_v59 = vmul.f32 1.442695, %v2660_v35  ;;  %v615_v60 = vmul.f32 1.442695, %v2662_v58 }
 0x4d7   : > { %2062 = vpow2.f32 %v613_v59 }
 0x4d8   : > { %2064 = vpow2.f32 %v615_v60 }
 0x4dd   : > { %v2063_v62 = vpop.eup %2062 }
 0x4de   : > { %v2065_v63 = vpop.eup %2064  ;;  %v629_v0 = vsel %vm21_vm0, %v2063_v62, 0.0 }
 0x4df   : > { %630 = vadd.xlane.f32.xlu2 %v629_v0  ;;  %v632_v1 = vsel %vm21_vm0, %v2065_v63, 0.0 }
 0x4e0   : > { %633 = vadd.xlane.f32.xlu1 %v632_v1 }
 0x534   : > { %v622_v3 = vpop.xlane.xlu2 %621 }
 0x535   : > { %2066 = vlog2.f32 %v622_v3  ;;  %v619_v4 = vpop.xlane.xlu0 %618 }
 0x536   : > { %2068 = vlog2.f32 %v619_v4 }
 0x53b   : > { %v2067_v5 = vpop.eup %2066 }
 0x53c   : > { %v2069_v6 = vpop.eup %2068  ;;  %v638_v7 = vmul.f32 0.6931472, %v2067_v5 }
 0x53d   : > { %v636_v9 = vmul.f32 0.6931472, %v2069_v6 }
 0x53e   : > { %v648_v15 = vsub.f32 %v600_v17, %v638_v7 }
 0x53f   : > { %v647_v54 = vsub.f32 %v599_v34, %v636_v9 }
 0x540   : > { %v654_v16 = vsel %vm21_vm0, %v648_v15, -inf }
 0x541   : > { %v653_v43 = vsel %vm21_vm0, %v647_v54, -inf }
 0x542   : > { %v655_v19 = vmax.f32 %v653_v43, %v654_v16  ;;  %v628_v21 = vpop.xlane.xlu0 %627 }
 0x543   : > { %2070 = vlog2.f32 %v628_v21  ;;  %v625_v20 = vpop.xlane.xlu1 %624 }
 0x544   : > { %v656_v22 = vrot.slane %v655_v19, 4  ;;  %2072 = vlog2.f32 %v625_v20 }
 0x546   : > { %v657_v23 = vmax.f32 %v655_v19, %v656_v22 }
 0x548   : > { %v658_v25 = vrot.slane %v657_v23, 2 }
 0x549   : > { %v2071_v27 = vpop.eup %2070 }
 0x54a   : > { %v2073_v28 = vpop.eup %2072  ;;  %v659_v14 = vmax.f32 %v657_v23, %v658_v25  ;;  %v642_v29 = vmul.f32 0.6931472, %v2071_v27 }
 0x54b   : > { %v640_v12 = vmul.f32 0.6931472, %v2073_v28 }
 0x54c   : > { %v660_v31 = vrot.slane %v659_v14, 1  ;;  %v650_v32 = vsub.f32 %v602_v47, %v642_v29 }
 0x54d   : > { %v649_v33 = vsub.f32 %v601_v48, %v640_v12 }
 0x54e   : > { %v661_v24 = vmax.f32 %v659_v14, %v660_v31  ;;  %v663_v26 = vsel %vm21_vm0, %v650_v32, -inf }
 0x54f   : > { %v662_v17 = vsel %vm21_vm0, %v649_v33, -inf }
 0x550   : > { %v2672_v34 = vsub.f32 %v647_v54, %v661_v24  ;;  %v664_v36 = vmax.f32 %v662_v17, %v663_v26  ;;  %v2674_v18 = vsub.f32 %v648_v15, %v661_v24 }
 0x552   : > { %v686_v37 = vmul.f32 1.442695, %v2672_v34  ;;  %v665_v38 = vrot.slane %v664_v36, 4  ;;  %v631_v39 = vpop.xlane.xlu2 %630  ;;  %v688_v40 = vmul.f32 1.442695, %v2674_v18 }
 0x553   : > { %2074 = vlog2.f32 %v631_v39  ;;  %v634_v44 = vpop.xlane.xlu1 %633 }
 0x554   : > { %2076 = vpow2.f32 %v686_v37  ;;  %v666_v46 = vmax.f32 %v664_v36, %v665_v38 }
 0x555   : > { %2078 = vlog2.f32 %v634_v44 }
 0x556   : > { %v667_v47 = vrot.slane %v666_v46, 2  ;;  %2080 = vpow2.f32 %v688_v40 }
 0x558   : > { %v668_v48 = vmax.f32 %v666_v46, %v667_v47 }
 0x559   : > { %v2075_v49 = vpop.eup %2074 }
 0x55a   : > { %v2077_v50 = vpop.eup %2076  ;;  %v669_v52 = vrot.slane %v668_v48, 1  ;;  %v644_v53 = vmul.f32 0.6931472, %v2075_v49 }
 0x55b   : > { %v2079_v42 = vpop.eup %2078  ;;  %v698_v30 = vsel %vm21_vm0, %v2077_v50, 0.0 }
 0x55c   : > { %v2081_v55 = vpop.eup %2080  ;;  %v670_v57 = vmax.f32 %v668_v48, %v669_v52  ;;  %v651_v59 = vsub.f32 %v2660_v35, %v644_v53  ;;  %v646_v60 = vmul.f32 0.6931472, %v2079_v42 }
 0x55d   : > { %v699_v62 = vsel %vm21_vm0, %v2081_v55, 0.0 }
 0x55e   : > { %v682_v63 = vsub.f32 %v649_v33, %v670_v57  ;;  %v671_v0 = vsel %vm21_vm0, %v651_v59, -inf  ;;  %v652_v1 = vsub.f32 %v2662_v58, %v646_v60  ;;  %v700_v3 = vadd.f32 %v699_v62, %v698_v30 }
 0x55f   : > { %v683_v4 = vsub.f32 %v650_v32, %v670_v57 }
 0x560   : > { %v690_v5 = vmul.f32 1.442695, %v682_v63  ;;  %v672_v6 = vsel %vm21_vm0, %v652_v1, -inf  ;;  %v701_v7 = vrot.slane %v700_v3, 4 }
 0x561   : > { %v673_v9 = vmax.f32 %v671_v0, %v672_v6  ;;  %v692_v15 = vmul.f32 1.442695, %v683_v4 }
 0x562   : > { %2082 = vpow2.f32 %v690_v5  ;;  %v702_v54 = vadd.f32 %v701_v7, %v700_v3 }
 0x563   : > { %v674_v16 = vrot.slane %v673_v9, 4  ;;  %2084 = vpow2.f32 %v692_v15 }
 0x564   : > { %v703_v35 = vrot.slane %v702_v54, 2 }
 0x565   : > { %v675_v43 = vmax.f32 %v673_v9, %v674_v16 }
 0x566   : > { %v704_v19 = vadd.f32 %v703_v35, %v702_v54 }
 0x567   : > { %v676_v21 = vrot.slane %v675_v43, 2 }
 0x568   : > { %v2083_v20 = vpop.eup %2082  ;;  %v705_v22 = vrot.slane %v704_v19, 1 }
 0x569   : > { %v2085_v23 = vpop.eup %2084  ;;  %v707_v58 = vsel %vm21_vm0, %v2083_v20, 0.0  ;;  %v677_v25 = vmax.f32 %v675_v43, %v676_v21 }
 0x56a   : > { %v706_v27 = vadd.f32 %v705_v22, %v704_v19  ;;  %v708_v28 = vsel %vm21_vm0, %v2085_v23, 0.0 }
 0x56b   : > { %v709_v14 = vadd.f32 %v708_v28, %v707_v58  ;;  %v678_v29 = vrot.slane %v677_v25, 1 }
 0x56c   : > { %2086 = vlog2.f32 %v706_v27 }
 0x56d   : > { %v710_v12 = vrot.slane %v709_v14, 4  ;;  %v679_v31 = vmax.f32 %v677_v25, %v678_v29 }
 0x56f   : > { %v711_v32 = vadd.f32 %v710_v12, %v709_v14  ;;  %v684_v33 = vsub.f32 %v651_v59, %v679_v31  ;;  %v685_v24 = vsub.f32 %v652_v1, %v679_v31 }
 0x571   : > { %v712_v26 = vrot.slane %v711_v32, 2  ;;  %v694_v17 = vmul.f32 1.442695, %v684_v33  ;;  %v696_v36 = vmul.f32 1.442695, %v685_v24 }
 0x572   : > { %v2087_v37 = vpop.eup %2086 }
 0x573   : > { %v726_v38 = vmul.f32 0.6931472, %v2087_v37  ;;  %v713_v39 = vadd.f32 %v712_v26, %v711_v32  ;;  %2088 = vpow2.f32 %v694_v17 }
 0x574   : > { %2090 = vpow2.f32 %v696_v36 }
 0x575   : > { %v732_v40 = vsub.f32 %v2674_v18, %v726_v38  ;;  %v731_v44 = vsub.f32 %v2672_v34, %v726_v38  ;;  %v714_v46 = vrot.slane %v713_v39, 1 }
 0x577   : > { %v740_v47 = vsel %vm21_vm0, %v732_v40, -inf  ;;  %v737_v48 = vsel %vm21_vm0, %v731_v44, -inf  ;;  %v715_v49 = vadd.f32 %v714_v46, %v713_v39 }
 0x578   : > { %741 = vmax.xlane.f32.xlu2 %v740_v47  ;;  %738 = vmax.xlane.f32.xlu0 %v737_v48 }
 0x579   : > { %v2089_v50 = vpop.eup %2088  ;;  %2092 = vlog2.f32 %v715_v49 }
 0x57a   : > { %v2091_v52 = vpop.eup %2090  ;;  %v716_v53 = vsel %vm21_vm0, %v2089_v50, 0.0 }
 0x57b   : > { %v717_v42 = vsel %vm21_vm0, %v2091_v52, 0.0 }
 0x57c   : > { %v718_v30 = vadd.f32 %v717_v42, %v716_v53 }
 0x57e   : > { %v719_v55 = vrot.slane %v718_v30, 4 }
 0x57f   : > { %v2093_v18 = vpop.eup %2092 }
 0x580   : > { %v728_v57 = vmul.f32 0.6931472, %v2093_v18  ;;  %v720_v34 = vadd.f32 %v719_v55, %v718_v30 }
 0x582   : > { %v734_v59 = vsub.f32 %v683_v4, %v728_v57  ;;  %v733_v60 = vsub.f32 %v682_v63, %v728_v57  ;;  %v721_v62 = vrot.slane %v720_v34, 2 }
 0x584   : > { %v746_v0 = vsel %vm21_vm0, %v734_v59, -inf  ;;  %v743_v1 = vsel %vm21_vm0, %v733_v60, -inf  ;;  %v722_v3 = vadd.f32 %v721_v62, %v720_v34 }
 0x585   : > { %747 = vmax.xlane.f32.xlu0 %v746_v0  ;;  %744 = vmax.xlane.f32.xlu1 %v743_v1 }
 0x586   : > { %v723_v5 = vrot.slane %v722_v3, 1 }
 0x588   : > { %v724_v6 = vadd.f32 %v723_v5, %v722_v3 }
 0x58a   : > { %2094 = vlog2.f32 %v724_v6 }
 0x590   : > { %v2095_v7 = vpop.eup %2094 }
 0x591   : > { %v730_v9 = vmul.f32 0.6931472, %v2095_v7 }
 0x593   : > { %v736_v15 = vsub.f32 %v685_v24, %v730_v9  ;;  %v735_v54 = vsub.f32 %v684_v33, %v730_v9 }
 0x595   : > { %v752_v16 = vsel %vm21_vm0, %v736_v15, -inf  ;;  %v749_v4 = vsel %vm21_vm0, %v735_v54, -inf }
 0x596   : > { %753 = vmax.xlane.f32.xlu1 %v752_v16  ;;  %750 = vmax.xlane.f32.xlu2 %v749_v4 }
 0x5eb   : > { %v742_v63 = vpop.xlane.xlu2 %741  ;;  %v739_v35 = vpop.xlane.xlu0 %738 }
 0x5ec   : > { %v756_v43 = vsub.f32 %v732_v40, %v742_v63  ;;  %v755_v19 = vsub.f32 %v731_v44, %v739_v35 }
 0x5ee   : > { %v763_v21 = vmul.f32 1.442695, %v756_v43  ;;  %v761_v20 = vmul.f32 1.442695, %v755_v19 }
 0x5f0   : > { %2096 = vpow2.f32 %v761_v20 }
 0x5f1   : > { %2098 = vpow2.f32 %v763_v21 }
 0x5f6   : > { %v2097_v22 = vpop.eup %2096 }
 0x5f7   : > { %v2099_v23 = vpop.eup %2098  ;;  %v773_v58 = vsel %vm21_vm0, %v2097_v22, 0.0 }
 0x5f8   : > { %774 = vadd.xlane.f32.xlu0 %v773_v58  ;;  %v776_v25 = vsel %vm21_vm0, %v2099_v23, 0.0  ;;  %v748_v27 = vpop.xlane.xlu0 %747  ;;  %v745_v28 = vpop.xlane.xlu1 %744 }
 0x5f9   : > { %777 = vadd.xlane.f32.xlu2 %v776_v25  ;;  %v758_v14 = vsub.f32 %v734_v59, %v748_v27  ;;  %v757_v29 = vsub.f32 %v733_v60, %v745_v28 }
 0x5fb   : > { %v767_v12 = vmul.f32 1.442695, %v758_v14  ;;  %v765_v31 = vmul.f32 1.442695, %v757_v29 }
 0x5fd   : > { %2100 = vpow2.f32 %v767_v12 }
 0x5fe   : > { %2102 = vpow2.f32 %v765_v31 }
 0x603   : > { %v2101_v32 = vpop.eup %2100 }
 0x604   : > { %v2103_v33 = vpop.eup %2102  ;;  %v782_v24 = vsel %vm21_vm0, %v2101_v32, 0.0 }
 0x605   : > { %783 = vadd.xlane.f32.xlu0 %v782_v24  ;;  %v779_v26 = vsel %vm21_vm0, %v2103_v33, 0.0 }
 0x606   : > { %780 = vadd.xlane.f32.xlu1 %v779_v26 }
 0x609   : > { %v751_v17 = vpop.xlane.xlu2 %750  ;;  %v754_v36 = vpop.xlane.xlu1 %753 }
 0x60a   : > { %v2700_v37 = vsub.f32 %v735_v54, %v751_v17  ;;  %v2702_v38 = vsub.f32 %v736_v15, %v754_v36 }
 0x60c   : > { %v769_v39 = vmul.f32 1.442695, %v2700_v37  ;;  %v771_v40 = vmul.f32 1.442695, %v2702_v38 }
 0x60e   : > { %2104 = vpow2.f32 %v769_v39 }
 0x60f   : > { %2106 = vpow2.f32 %v771_v40 }
 0x614   : > { %v2105_v44 = vpop.eup %2104 }
 0x615   : > { %v2107_v46 = vpop.eup %2106  ;;  %v785_v47 = vsel %vm21_vm0, %v2105_v44, 0.0 }
 0x616   : > { %786 = vadd.xlane.f32.xlu2 %v785_v47  ;;  %v788_v48 = vsel %vm21_vm0, %v2107_v46, 0.0 }
 0x617   : > { %789 = vadd.xlane.f32.xlu1 %v788_v48 }
 0x66b   : > { %v775_v49 = vpop.xlane.xlu0 %774 }
 0x66c   : > { %2108 = vlog2.f32 %v775_v49  ;;  %v778_v50 = vpop.xlane.xlu2 %777 }
 0x66d   : > { %2110 = vlog2.f32 %v778_v50 }
 0x672   : > { %v2109_v52 = vpop.eup %2108 }
 0x673   : > { %v2111_v53 = vpop.eup %2110  ;;  %v792_v42 = vmul.f32 0.6931472, %v2109_v52 }
 0x674   : > { %v794_v30 = vmul.f32 0.6931472, %v2111_v53 }
 0x675   : > { %v803_v55 = vsub.f32 %v755_v19, %v792_v42 }
 0x676   : > { %v804_v18 = vsub.f32 %v756_v43, %v794_v30 }
 0x677   : > { %v809_v57 = vsel %vm21_vm0, %v803_v55, -inf }
 0x678   : > { %v810_v34 = vsel %vm21_vm0, %v804_v18, -inf  ;;  %v784_v59 = vpop.xlane.xlu0 %783 }
 0x679   : > { %v811_v60 = vmax.f32 %v809_v57, %v810_v34  ;;  %2112 = vlog2.f32 %v784_v59  ;;  %v781_v62 = vpop.xlane.xlu1 %780 }
 0x67a   : > { %2114 = vlog2.f32 %v781_v62 }
 0x67b   : > { %v812_v0 = vrot.slane %v811_v60, 4 }
 0x67d   : > { %v813_v1 = vmax.f32 %v811_v60, %v812_v0 }
 0x67f   : > { %v2113_v3 = vpop.eup %2112  ;;  %v814_v5 = vrot.slane %v813_v1, 2 }
 0x680   : > { %v2115_v6 = vpop.eup %2114  ;;  %v798_v7 = vmul.f32 0.6931472, %v2113_v3 }
 0x681   : > { %v796_v9 = vmul.f32 0.6931472, %v2115_v6  ;;  %v815_v15 = vmax.f32 %v813_v1, %v814_v5 }
 0x682   : > { %v806_v54 = vsub.f32 %v758_v14, %v798_v7 }
 0x683   : > { %v805_v16 = vsub.f32 %v757_v29, %v796_v9  ;;  %v816_v4 = vrot.slane %v815_v15, 1 }
 0x684   : > { %v819_v63 = vsel %vm21_vm0, %v806_v54, -inf }
 0x685   : > { %v818_v35 = vsel %vm21_vm0, %v805_v16, -inf  ;;  %v817_v43 = vmax.f32 %v815_v15, %v816_v4 }
 0x686   : > { %v820_v19 = vmax.f32 %v818_v35, %v819_v63 }
 0x687   : > { %v2712_v21 = vsub.f32 %v803_v55, %v817_v43  ;;  %v2714_v20 = vsub.f32 %v804_v18, %v817_v43 }
 0x688   : > { %v821_v22 = vrot.slane %v820_v19, 4 }
 0x689   : > { %v787_v23 = vpop.xlane.xlu2 %786  ;;  %v842_v58 = vmul.f32 1.442695, %v2712_v21  ;;  %v844_v25 = vmul.f32 1.442695, %v2714_v20 }
 0x68a   : > { %v822_v27 = vmax.f32 %v820_v19, %v821_v22  ;;  %2116 = vlog2.f32 %v787_v23  ;;  %v790_v28 = vpop.xlane.xlu1 %789 }
 0x68b   : > { %2118 = vlog2.f32 %v790_v28 }
 0x68c   : > { %v823_v14 = vrot.slane %v822_v27, 2  ;;  %2120 = vpow2.f32 %v842_v58 }
 0x68d   : > { %2122 = vpow2.f32 %v844_v25 }
 0x68e   : > { %v824_v29 = vmax.f32 %v822_v27, %v823_v14 }
 0x690   : > { %v2117_v12 = vpop.eup %2116  ;;  %v825_v31 = vrot.slane %v824_v29, 1 }
 0x691   : > { %v2119_v32 = vpop.eup %2118  ;;  %v800_v33 = vmul.f32 0.6931472, %v2117_v12 }
 0x692   : > { %v2121_v24 = vpop.eup %2120  ;;  %v826_v26 = vmax.f32 %v824_v29, %v825_v31  ;;  %v802_v17 = vmul.f32 0.6931472, %v2119_v32 }
 0x693   : > { %v2123_v36 = vpop.eup %2122  ;;  %v807_v39 = vsub.f32 %v2700_v37, %v800_v33  ;;  %v854_v40 = vsel %vm21_vm0, %v2121_v24, 0.0 }
 0x694   : > { %v838_v44 = vsub.f32 %v805_v16, %v826_v26  ;;  %v808_v46 = vsub.f32 %v2702_v38, %v802_v17  ;;  %v855_v47 = vsel %vm21_vm0, %v2123_v36, 0.0  ;;  %v839_v48 = vsub.f32 %v806_v54, %v826_v26 }
 0x695   : > { %v827_v49 = vsel %vm21_vm0, %v807_v39, -inf  ;;  %v856_v50 = vadd.f32 %v855_v47, %v854_v40 }
 0x696   : > { %v846_v52 = vmul.f32 1.442695, %v838_v44  ;;  %v828_v53 = vsel %vm21_vm0, %v808_v46, -inf  ;;  %v848_v42 = vmul.f32 1.442695, %v839_v48 }
 0x697   : > { %v829_v30 = vmax.f32 %v827_v49, %v828_v53  ;;  %v857_v55 = vrot.slane %v856_v50, 4 }
 0x698   : > { %2124 = vpow2.f32 %v846_v52 }
 0x699   : > { %v830_v18 = vrot.slane %v829_v30, 4  ;;  %v858_v37 = vadd.f32 %v857_v55, %v856_v50  ;;  %2126 = vpow2.f32 %v848_v42 }
 0x69b   : > { %v831_v57 = vmax.f32 %v829_v30, %v830_v18  ;;  %v859_v34 = vrot.slane %v858_v37, 2 }
 0x69d   : > { %v860_v59 = vadd.f32 %v859_v34, %v858_v37  ;;  %v832_v38 = vrot.slane %v831_v57, 2 }
 0x69e   : > { %v2125_v60 = vpop.eup %2124 }
 0x69f   : > { %v2127_v62 = vpop.eup %2126  ;;  %v863_v0 = vsel %vm21_vm0, %v2125_v60, 0.0  ;;  %v861_v1 = vrot.slane %v860_v59, 1  ;;  %v833_v3 = vmax.f32 %v831_v57, %v832_v38 }
 0x6a0   : > { %v864_v5 = vsel %vm21_vm0, %v2127_v62, 0.0 }
 0x6a1   : > { %v862_v6 = vadd.f32 %v861_v1, %v860_v59  ;;  %v865_v7 = vadd.f32 %v864_v5, %v863_v0  ;;  %v834_v9 = vrot.slane %v833_v3, 1 }
 0x6a3   : > { %2128 = vlog2.f32 %v862_v6  ;;  %v866_v15 = vrot.slane %v865_v7, 4  ;;  %v835_v54 = vmax.f32 %v833_v3, %v834_v9 }
 0x6a5   : > { %v867_v16 = vadd.f32 %v866_v15, %v865_v7  ;;  %v840_v4 = vsub.f32 %v807_v39, %v835_v54  ;;  %v841_v63 = vsub.f32 %v808_v46, %v835_v54 }
 0x6a7   : > { %v868_v35 = vrot.slane %v867_v16, 2  ;;  %v850_v43 = vmul.f32 1.442695, %v840_v4  ;;  %v852_v19 = vmul.f32 1.442695, %v841_v63 }
 0x6a9   : > { %v2129_v22 = vpop.eup %2128  ;;  %v869_v23 = vadd.f32 %v868_v35, %v867_v16  ;;  %2130 = vpow2.f32 %v850_v43 }
 0x6aa   : > { %v882_v58 = vmul.f32 0.6931472, %v2129_v22  ;;  %2132 = vpow2.f32 %v852_v19 }
 0x6ab   : > { %v870_v25 = vrot.slane %v869_v23, 1 }
 0x6ac   : > { %v888_v27 = vsub.f32 %v2714_v20, %v882_v58  ;;  %v887_v28 = vsub.f32 %v2712_v21, %v882_v58 }
 0x6ad   : > { %v871_v14 = vadd.f32 %v870_v25, %v869_v23 }
 0x6ae   : > { %v896_v29 = vsel %vm21_vm0, %v888_v27, -inf  ;;  %v893_v12 = vsel %vm21_vm0, %v887_v28, -inf }
 0x6af   : > { %v2131_v31 = vpop.eup %2130  ;;  %897 = vmax.xlane.f32.xlu2 %v896_v29  ;;  %894 = vmax.xlane.f32.xlu0 %v893_v12  ;;  %2134 = vlog2.f32 %v871_v14 }
 0x6b0   : > { %v2133_v32 = vpop.eup %2132  ;;  %v872_v33 = vsel %vm21_vm0, %v2131_v31, 0.0 }
 0x6b1   : > { %v873_v24 = vsel %vm21_vm0, %v2133_v32, 0.0 }
 0x6b2   : > { %v874_v26 = vadd.f32 %v873_v24, %v872_v33 }
 0x6b4   : > { %v875_v17 = vrot.slane %v874_v26, 4 }
 0x6b5   : > { %v2135_v36 = vpop.eup %2134 }
 0x6b6   : > { %v884_v20 = vmul.f32 0.6931472, %v2135_v36  ;;  %v876_v39 = vadd.f32 %v875_v17, %v874_v26 }
 0x6b8   : > { %v890_v21 = vsub.f32 %v839_v48, %v884_v20  ;;  %v889_v40 = vsub.f32 %v838_v44, %v884_v20  ;;  %v877_v46 = vrot.slane %v876_v39, 2 }
 0x6ba   : > { %v902_v47 = vsel %vm21_vm0, %v890_v21, -inf  ;;  %v899_v49 = vsel %vm21_vm0, %v889_v40, -inf  ;;  %v878_v50 = vadd.f32 %v877_v46, %v876_v39 }
 0x6bb   : > { %903 = vmax.xlane.f32.xlu0 %v902_v47  ;;  %900 = vmax.xlane.f32.xlu1 %v899_v49 }
 0x6bc   : > { %v879_v52 = vrot.slane %v878_v50, 1 }
 0x6be   : > { %v880_v53 = vadd.f32 %v879_v52, %v878_v50 }
 0x6c0   : > { %2136 = vlog2.f32 %v880_v53 }
 0x6c6   : > { %v2137_v42 = vpop.eup %2136 }
 0x6c7   : > { %v886_v30 = vmul.f32 0.6931472, %v2137_v42 }
 0x6c9   : > { %v892_v55 = vsub.f32 %v841_v63, %v886_v30  ;;  %v891_v18 = vsub.f32 %v840_v4, %v886_v30 }
 0x6cb   : > { %v908_v37 = vsel %vm21_vm0, %v892_v55, -inf  ;;  %v905_v48 = vsel %vm21_vm0, %v891_v18, -inf }
 0x6cc   : > { %909 = vmax.xlane.f32.xlu1 %v908_v37  ;;  %906 = vmax.xlane.f32.xlu2 %v905_v48 }
 0x722   : > { %v895_v44 = vpop.xlane.xlu0 %894  ;;  %v898_v57 = vpop.xlane.xlu2 %897 }
 0x723   : > { %v911_v34 = vsub.f32 %v887_v28, %v895_v44  ;;  %v912_v59 = vsub.f32 %v888_v27, %v898_v57 }
 0x725   : > { %v917_v38 = vmul.f32 1.442695, %v911_v34  ;;  %v919_v60 = vmul.f32 1.442695, %v912_v59 }
 0x727   : > { %2138 = vpow2.f32 %v917_v38 }
 0x728   : > { %2140 = vpow2.f32 %v919_v60 }
 0x72d   : > { %v2139_v62 = vpop.eup %2138 }
 0x72e   : > { %v2141_v0 = vpop.eup %2140  ;;  %v929_v1 = vsel %vm21_vm0, %v2139_v62, 0.0  ;;  %v904_v3 = vpop.xlane.xlu0 %903 }
 0x72f   : > { %v901_v5 = vpop.xlane.xlu1 %900  ;;  %930 = vadd.xlane.f32.xlu0 %v929_v1  ;;  %v932_v6 = vsel %vm21_vm0, %v2141_v0, 0.0  ;;  %v914_v7 = vsub.f32 %v890_v21, %v904_v3 }
 0x730   : > { %v913_v9 = vsub.f32 %v889_v40, %v901_v5  ;;  %933 = vadd.xlane.f32.xlu2 %v932_v6 }
 0x731   : > { %v923_v15 = vmul.f32 1.442695, %v914_v7 }
 0x732   : > { %v921_v54 = vmul.f32 1.442695, %v913_v9 }
 0x733   : > { %2142 = vpow2.f32 %v923_v15 }
 0x734   : > { %2144 = vpow2.f32 %v921_v54 }
 0x739   : > { %v2143_v16 = vpop.eup %2142 }
 0x73a   : > { %v2145_v4 = vpop.eup %2144  ;;  %v938_v63 = vsel %vm21_vm0, %v2143_v16, 0.0 }
 0x73b   : > { %939 = vadd.xlane.f32.xlu0 %v938_v63  ;;  %v935_v35 = vsel %vm21_vm0, %v2145_v4, 0.0 }
 0x73c   : > { %936 = vadd.xlane.f32.xlu1 %v935_v35 }
 0x73f   : > { %v907_v43 = vpop.xlane.xlu2 %906  ;;  %v910_v19 = vpop.xlane.xlu1 %909 }
 0x740   : > { %v2740_v22 = vsub.f32 %v891_v18, %v907_v43  ;;  %v2742_v23 = vsub.f32 %v892_v55, %v910_v19 }
 0x742   : > { %v925_v58 = vmul.f32 1.442695, %v2740_v22  ;;  %v927_v25 = vmul.f32 1.442695, %v2742_v23 }
 0x744   : > { %2146 = vpow2.f32 %v925_v58 }
 0x745   : > { %2148 = vpow2.f32 %v927_v25 }
 0x74a   : > { %v2147_v27 = vpop.eup %2146 }
 0x74b   : > { %v2149_v28 = vpop.eup %2148  ;;  %v941_v14 = vsel %vm21_vm0, %v2147_v27, 0.0 }
 0x74c   : > { %942 = vadd.xlane.f32.xlu2 %v941_v14  ;;  %v944_v29 = vsel %vm21_vm0, %v2149_v28, 0.0 }
 0x74d   : > { %945 = vadd.xlane.f32.xlu1 %v944_v29 }
 0x7a2   : > { %v931_v12 = vpop.xlane.xlu0 %930 }
 0x7a3   : > { %2150 = vlog2.f32 %v931_v12  ;;  %v934_v31 = vpop.xlane.xlu2 %933 }
 0x7a4   : > { %2152 = vlog2.f32 %v934_v31 }
 0x7a9   : > { %v2151_v32 = vpop.eup %2150 }
 0x7aa   : > { %v2153_v33 = vpop.eup %2152  ;;  %v948_v24 = vmul.f32 0.6931472, %v2151_v32 }
 0x7ab   : > { %v950_v26 = vmul.f32 0.6931472, %v2153_v33 }
 0x7ac   : > { %v959_v17 = vsub.f32 %v911_v34, %v948_v24 }
 0x7ad   : > { %v960_v36 = vsub.f32 %v912_v59, %v950_v26 }
 0x7ae   : > { %v965_v20 = vsel %vm21_vm0, %v959_v17, -inf  ;;  %v940_v39 = vpop.xlane.xlu0 %939 }
 0x7af   : > { %v966_v21 = vsel %vm21_vm0, %v960_v36, -inf  ;;  %2154 = vlog2.f32 %v940_v39  ;;  %v937_v40 = vpop.xlane.xlu1 %936 }
 0x7b0   : > { %v967_v46 = vmax.f32 %v965_v20, %v966_v21  ;;  %2156 = vlog2.f32 %v937_v40 }
 0x7b2   : > { %v968_v47 = vrot.slane %v967_v46, 4 }
 0x7b4   : > { %v969_v49 = vmax.f32 %v967_v46, %v968_v47 }
 0x7b5   : > { %v2155_v50 = vpop.eup %2154 }
 0x7b6   : > { %v2157_v52 = vpop.eup %2156  ;;  %v954_v53 = vmul.f32 0.6931472, %v2155_v50  ;;  %v970_v42 = vrot.slane %v969_v49, 2 }
 0x7b7   : > { %v952_v30 = vmul.f32 0.6931472, %v2157_v52 }
 0x7b8   : > { %v962_v55 = vsub.f32 %v914_v7, %v954_v53  ;;  %v971_v18 = vmax.f32 %v969_v49, %v970_v42 }
 0x7b9   : > { %v961_v37 = vsub.f32 %v913_v9, %v952_v30 }
 0x7ba   : > { %v975_v48 = vsel %vm21_vm0, %v962_v55, -inf  ;;  %v972_v44 = vrot.slane %v971_v18, 1 }
 0x7bb   : > { %v974_v57 = vsel %vm21_vm0, %v961_v37, -inf }
 0x7bc   : > { %v976_v34 = vmax.f32 %v974_v57, %v975_v48  ;;  %v973_v59 = vmax.f32 %v971_v18, %v972_v44 }
 0x7be   : > { %v977_v38 = vrot.slane %v976_v34, 4  ;;  %v2752_v60 = vsub.f32 %v959_v17, %v973_v59  ;;  %v2754_v62 = vsub.f32 %v960_v36, %v973_v59 }
 0x7bf   : > { %v943_v0 = vpop.xlane.xlu2 %942 }
 0x7c0   : > { %v978_v1 = vmax.f32 %v976_v34, %v977_v38  ;;  %2158 = vlog2.f32 %v943_v0  ;;  %v946_v3 = vpop.xlane.xlu1 %945  ;;  %v998_v5 = vmul.f32 1.442695, %v2752_v60  ;;  %v1000_v6 = vmul.f32 1.442695, %v2754_v62 }
 0x7c1   : > { %2160 = vlog2.f32 %v946_v3 }
 0x7c2   : > { %v979_v7 = vrot.slane %v978_v1, 2  ;;  %2162 = vpow2.f32 %v998_v5 }
 0x7c3   : > { %2164 = vpow2.f32 %v1000_v6 }
 0x7c4   : > { %v980_v9 = vmax.f32 %v978_v1, %v979_v7 }
 0x7c6   : > { %v2159_v15 = vpop.eup %2158  ;;  %v981_v54 = vrot.slane %v980_v9, 1 }
 0x7c7   : > { %v2161_v16 = vpop.eup %2160  ;;  %v956_v4 = vmul.f32 0.6931472, %v2159_v15 }
 0x7c8   : > { %v2163_v63 = vpop.eup %2162  ;;  %v982_v35 = vmax.f32 %v980_v9, %v981_v54  ;;  %v958_v43 = vmul.f32 0.6931472, %v2161_v16 }
 0x7c9   : > { %v2165_v19 = vpop.eup %2164  ;;  %v963_v58 = vsub.f32 %v2740_v22, %v956_v4  ;;  %v1010_v25 = vsel %vm21_vm0, %v2163_v63, 0.0 }
 0x7ca   : > { %v994_v27 = vsub.f32 %v961_v37, %v982_v35  ;;  %v964_v28 = vsub.f32 %v2742_v23, %v958_v43  ;;  %v1011_v14 = vsel %vm21_vm0, %v2165_v19, 0.0  ;;  %v995_v29 = vsub.f32 %v962_v55, %v982_v35 }
 0x7cb   : > { %v983_v12 = vsel %vm21_vm0, %v963_v58, -inf  ;;  %v1012_v31 = vadd.f32 %v1011_v14, %v1010_v25 }
 0x7cc   : > { %v1002_v32 = vmul.f32 1.442695, %v994_v27  ;;  %v984_v33 = vsel %vm21_vm0, %v964_v28, -inf  ;;  %v1004_v24 = vmul.f32 1.442695, %v995_v29 }
 0x7cd   : > { %v985_v26 = vmax.f32 %v983_v12, %v984_v33  ;;  %v1013_v17 = vrot.slane %v1012_v31, 4 }
 0x7ce   : > { %2166 = vpow2.f32 %v1002_v32 }
 0x7cf   : > { %v986_v36 = vrot.slane %v985_v26, 4  ;;  %v1014_v22 = vadd.f32 %v1013_v17, %v1012_v31  ;;  %2168 = vpow2.f32 %v1004_v24 }
 0x7d1   : > { %v987_v20 = vmax.f32 %v985_v26, %v986_v36  ;;  %v1015_v39 = vrot.slane %v1014_v22, 2 }
 0x7d3   : > { %v1016_v21 = vadd.f32 %v1015_v39, %v1014_v22  ;;  %v988_v23 = vrot.slane %v987_v20, 2 }
 0x7d4   : > { %v2167_v40 = vpop.eup %2166 }
 0x7d5   : > { %v2169_v46 = vpop.eup %2168  ;;  %v1019_v47 = vsel %vm21_vm0, %v2167_v40, 0.0  ;;  %v1017_v49 = vrot.slane %v1016_v21, 1  ;;  %v989_v50 = vmax.f32 %v987_v20, %v988_v23 }
 0x7d6   : > { %v1020_v52 = vsel %vm21_vm0, %v2169_v46, 0.0 }
 0x7d7   : > { %v1018_v53 = vadd.f32 %v1017_v49, %v1016_v21  ;;  %v1021_v42 = vadd.f32 %v1020_v52, %v1019_v47  ;;  %v990_v30 = vrot.slane %v989_v50, 1 }
 0x7d9   : > { %2170 = vlog2.f32 %v1018_v53  ;;  %v1022_v55 = vrot.slane %v1021_v42, 4  ;;  %v991_v18 = vmax.f32 %v989_v50, %v990_v30 }
 0x7db   : > { %v1023_v37 = vadd.f32 %v1022_v55, %v1021_v42  ;;  %v996_v48 = vsub.f32 %v963_v58, %v991_v18  ;;  %v997_v44 = vsub.f32 %v964_v28, %v991_v18 }
 0x7dd   : > { %v1024_v57 = vrot.slane %v1023_v37, 2  ;;  %v1006_v34 = vmul.f32 1.442695, %v996_v48  ;;  %v1008_v59 = vmul.f32 1.442695, %v997_v44 }
 0x7df   : > { %v2171_v38 = vpop.eup %2170  ;;  %v1025_v0 = vadd.f32 %v1024_v57, %v1023_v37  ;;  %2172 = vpow2.f32 %v1006_v34 }
 0x7e0   : > { %v1038_v1 = vmul.f32 0.6931472, %v2171_v38  ;;  %2174 = vpow2.f32 %v1008_v59 }
 0x7e1   : > { %v1026_v3 = vrot.slane %v1025_v0, 1 }
 0x7e2   : > { %v1044_v5 = vsub.f32 %v2754_v62, %v1038_v1  ;;  %v1043_v6 = vsub.f32 %v2752_v60, %v1038_v1 }
 0x7e3   : > { %v1027_v7 = vadd.f32 %v1026_v3, %v1025_v0 }
 0x7e4   : > { %v1052_v9 = vsel %vm21_vm0, %v1044_v5, -inf  ;;  %v1049_v15 = vsel %vm21_vm0, %v1043_v6, -inf }
 0x7e5   : > { %v2173_v54 = vpop.eup %2172  ;;  %1053 = vmax.xlane.f32.xlu2 %v1052_v9  ;;  %1050 = vmax.xlane.f32.xlu0 %v1049_v15  ;;  %2176 = vlog2.f32 %v1027_v7 }
 0x7e6   : > { %v2175_v16 = vpop.eup %2174  ;;  %v1028_v4 = vsel %vm21_vm0, %v2173_v54, 0.0 }
 0x7e7   : > { %v1029_v63 = vsel %vm21_vm0, %v2175_v16, 0.0 }
 0x7e8   : > { %v1030_v35 = vadd.f32 %v1029_v63, %v1028_v4 }
 0x7ea   : > { %v1031_v43 = vrot.slane %v1030_v35, 4 }
 0x7eb   : > { %v2177_v19 = vpop.eup %2176 }
 0x7ec   : > { %v1040_v62 = vmul.f32 0.6931472, %v2177_v19  ;;  %v1032_v58 = vadd.f32 %v1031_v43, %v1030_v35 }
 0x7ee   : > { %v1046_v60 = vsub.f32 %v995_v29, %v1040_v62  ;;  %v1045_v25 = vsub.f32 %v994_v27, %v1040_v62  ;;  %v1033_v28 = vrot.slane %v1032_v58, 2 }
 0x7f0   : > { %v1058_v14 = vsel %vm21_vm0, %v1046_v60, -inf  ;;  %v1055_v12 = vsel %vm21_vm0, %v1045_v25, -inf  ;;  %v1034_v31 = vadd.f32 %v1033_v28, %v1032_v58 }
 0x7f1   : > { %1059 = vmax.xlane.f32.xlu0 %v1058_v14  ;;  %1056 = vmax.xlane.f32.xlu1 %v1055_v12 }
 0x7f2   : > { %v1035_v32 = vrot.slane %v1034_v31, 1 }
 0x7f4   : > { %v1036_v33 = vadd.f32 %v1035_v32, %v1034_v31 }
 0x7f6   : > { %2178 = vlog2.f32 %v1036_v33 }
 0x7fc   : > { %v2179_v24 = vpop.eup %2178 }
 0x7fd   : > { %v1042_v26 = vmul.f32 0.6931472, %v2179_v24 }
 0x7ff   : > { %v1048_v17 = vsub.f32 %v997_v44, %v1042_v26  ;;  %v1047_v36 = vsub.f32 %v996_v48, %v1042_v26 }
 0x801   : > { %v1064_v22 = vsel %vm21_vm0, %v1048_v17, -inf  ;;  %v1061_v29 = vsel %vm21_vm0, %v1047_v36, -inf }
 0x802   : > { %1065 = vmax.xlane.f32.xlu1 %v1064_v22  ;;  %1062 = vmax.xlane.f32.xlu2 %v1061_v29 }
 0x858   : > { %v1051_v27 = vpop.xlane.xlu0 %1050  ;;  %v1054_v20 = vpop.xlane.xlu2 %1053 }
 0x859   : > { %v1067_v39 = vsub.f32 %v1043_v6, %v1051_v27  ;;  %v1068_v21 = vsub.f32 %v1044_v5, %v1054_v20 }
 0x85b   : > { %v1073_v23 = vmul.f32 1.442695, %v1067_v39  ;;  %v1075_v40 = vmul.f32 1.442695, %v1068_v21 }
 0x85d   : > { %2180 = vpow2.f32 %v1073_v23 }
 0x85e   : > { %2182 = vpow2.f32 %v1075_v40 }
 0x863   : > { %v2181_v46 = vpop.eup %2180 }
 0x864   : > { %v2183_v47 = vpop.eup %2182  ;;  %v1085_v49 = vsel %vm21_vm0, %v2181_v46, 0.0  ;;  %v1060_v50 = vpop.xlane.xlu0 %1059 }
 0x865   : > { %v1057_v52 = vpop.xlane.xlu1 %1056  ;;  %1086 = vadd.xlane.f32.xlu0 %v1085_v49  ;;  %v1088_v53 = vsel %vm21_vm0, %v2183_v47, 0.0  ;;  %v1070_v42 = vsub.f32 %v1046_v60, %v1060_v50 }
 0x866   : > { %v1069_v30 = vsub.f32 %v1045_v25, %v1057_v52  ;;  %1089 = vadd.xlane.f32.xlu2 %v1088_v53 }
 0x867   : > { %v1079_v55 = vmul.f32 1.442695, %v1070_v42 }
 0x868   : > { %v1077_v18 = vmul.f32 1.442695, %v1069_v30 }
 0x869   : > { %2184 = vpow2.f32 %v1079_v55 }
 0x86a   : > { %2186 = vpow2.f32 %v1077_v18 }
 0x86f   : > { %v2185_v37 = vpop.eup %2184 }
 0x870   : > { %v2187_v48 = vpop.eup %2186  ;;  %v1094_v44 = vsel %vm21_vm0, %v2185_v37, 0.0 }
 0x871   : > { %1095 = vadd.xlane.f32.xlu0 %v1094_v44  ;;  %v1091_v57 = vsel %vm21_vm0, %v2187_v48, 0.0 }
 0x872   : > { %1092 = vadd.xlane.f32.xlu1 %v1091_v57 }
 0x875   : > { %v1063_v34 = vpop.xlane.xlu2 %1062  ;;  %v1066_v59 = vpop.xlane.xlu1 %1065 }
 0x876   : > { %v2780_v38 = vsub.f32 %v1047_v36, %v1063_v34  ;;  %v2782_v0 = vsub.f32 %v1048_v17, %v1066_v59 }
 0x878   : > { %v1081_v1 = vmul.f32 1.442695, %v2780_v38  ;;  %v1083_v3 = vmul.f32 1.442695, %v2782_v0 }
 0x87a   : > { %2188 = vpow2.f32 %v1081_v1 }
 0x87b   : > { %2190 = vpow2.f32 %v1083_v3 }
 0x880   : > { %v2189_v5 = vpop.eup %2188 }
 0x881   : > { %v2191_v6 = vpop.eup %2190  ;;  %v1097_v7 = vsel %vm21_vm0, %v2189_v5, 0.0 }
 0x882   : > { %1098 = vadd.xlane.f32.xlu2 %v1097_v7  ;;  %v1100_v9 = vsel %vm21_vm0, %v2191_v6, 0.0 }
 0x883   : > { %1101 = vadd.xlane.f32.xlu1 %v1100_v9 }
 0x8d8   : > { %v1087_v15 = vpop.xlane.xlu0 %1086 }
 0x8d9   : > { %2192 = vlog2.f32 %v1087_v15  ;;  %v1090_v54 = vpop.xlane.xlu2 %1089 }
 0x8da   : > { %2194 = vlog2.f32 %v1090_v54 }
 0x8df   : > { %v2193_v16 = vpop.eup %2192 }
 0x8e0   : > { %v2195_v4 = vpop.eup %2194  ;;  %v1104_v63 = vmul.f32 0.6931472, %v2193_v16 }
 0x8e1   : > { %v1106_v35 = vmul.f32 0.6931472, %v2195_v4 }
 0x8e2   : > { %v1115_v43 = vsub.f32 %v1067_v39, %v1104_v63 }
 0x8e3   : > { %v1116_v19 = vsub.f32 %v1068_v21, %v1106_v35 }
 0x8e4   : > { %v1121_v62 = vsel %vm21_vm0, %v1115_v43, -inf  ;;  %v1096_v58 = vpop.xlane.xlu0 %1095 }
 0x8e5   : > { %v1122_v60 = vsel %vm21_vm0, %v1116_v19, -inf  ;;  %2196 = vlog2.f32 %v1096_v58  ;;  %v1093_v25 = vpop.xlane.xlu1 %1092 }
 0x8e6   : > { %v1123_v28 = vmax.f32 %v1121_v62, %v1122_v60  ;;  %2198 = vlog2.f32 %v1093_v25 }
 0x8e8   : > { %v1124_v14 = vrot.slane %v1123_v28, 4 }
 0x8ea   : > { %v1125_v12 = vmax.f32 %v1123_v28, %v1124_v14 }
 0x8eb   : > { %v2197_v31 = vpop.eup %2196 }
 0x8ec   : > { %v2199_v32 = vpop.eup %2198  ;;  %v1110_v33 = vmul.f32 0.6931472, %v2197_v31  ;;  %v1126_v24 = vrot.slane %v1125_v12, 2 }
 0x8ed   : > { %v1108_v26 = vmul.f32 0.6931472, %v2199_v32 }
 0x8ee   : > { %v1118_v17 = vsub.f32 %v1070_v42, %v1110_v33  ;;  %v1127_v36 = vmax.f32 %v1125_v12, %v1126_v24 }
 0x8ef   : > { %v1117_v22 = vsub.f32 %v1069_v30, %v1108_v26 }
 0x8f0   : > { %v1131_v29 = vsel %vm21_vm0, %v1118_v17, -inf  ;;  %v1128_v27 = vrot.slane %v1127_v36, 1 }
 0x8f1   : > { %v1130_v20 = vsel %vm21_vm0, %v1117_v22, -inf }
 0x8f2   : > { %v1132_v39 = vmax.f32 %v1130_v20, %v1131_v29  ;;  %v1129_v21 = vmax.f32 %v1127_v36, %v1128_v27 }
 0x8f4   : > { %v1133_v23 = vrot.slane %v1132_v39, 4  ;;  %v2792_v40 = vsub.f32 %v1115_v43, %v1129_v21  ;;  %v2794_v46 = vsub.f32 %v1116_v19, %v1129_v21 }
 0x8f5   : > { %v1099_v47 = vpop.xlane.xlu2 %1098 }
 0x8f6   : > { %v1134_v49 = vmax.f32 %v1132_v39, %v1133_v23  ;;  %2200 = vlog2.f32 %v1099_v47  ;;  %v1102_v50 = vpop.xlane.xlu1 %1101  ;;  %v1154_v52 = vmul.f32 1.442695, %v2792_v40  ;;  %v1156_v53 = vmul.f32 1.442695, %v2794_v46 }
 0x8f7   : > { %2202 = vlog2.f32 %v1102_v50 }
 0x8f8   : > { %v1135_v42 = vrot.slane %v1134_v49, 2  ;;  %2204 = vpow2.f32 %v1154_v52 }
 0x8f9   : > { %2206 = vpow2.f32 %v1156_v53 }
 0x8fa   : > { %v1136_v30 = vmax.f32 %v1134_v49, %v1135_v42 }
 0x8fc   : > { %v2201_v55 = vpop.eup %2200  ;;  %v1137_v18 = vrot.slane %v1136_v30, 1 }
 0x8fd   : > { %v2203_v37 = vpop.eup %2202  ;;  %v1112_v48 = vmul.f32 0.6931472, %v2201_v55 }
 0x8fe   : > { %v2205_v44 = vpop.eup %2204  ;;  %v1138_v57 = vmax.f32 %v1136_v30, %v1137_v18  ;;  %v1114_v34 = vmul.f32 0.6931472, %v2203_v37 }
 0x8ff   : > { %v2207_v59 = vpop.eup %2206  ;;  %v1119_v1 = vsub.f32 %v2780_v38, %v1112_v48  ;;  %v1166_v3 = vsel %vm21_vm0, %v2205_v44, 0.0 }
 0x900   : > { %v1150_v5 = vsub.f32 %v1117_v22, %v1138_v57  ;;  %v1120_v6 = vsub.f32 %v2782_v0, %v1114_v34  ;;  %v1167_v7 = vsel %vm21_vm0, %v2207_v59, 0.0  ;;  %v1151_v9 = vsub.f32 %v1118_v17, %v1138_v57 }
 0x901   : > { %v1139_v15 = vsel %vm21_vm0, %v1119_v1, -inf  ;;  %v1168_v54 = vadd.f32 %v1167_v7, %v1166_v3 }
 0x902   : > { %v1158_v16 = vmul.f32 1.442695, %v1150_v5  ;;  %v1140_v4 = vsel %vm21_vm0, %v1120_v6, -inf  ;;  %v1160_v63 = vmul.f32 1.442695, %v1151_v9 }
 0x903   : > { %v1141_v35 = vmax.f32 %v1139_v15, %v1140_v4  ;;  %v1169_v43 = vrot.slane %v1168_v54, 4 }
 0x904   : > { %2208 = vpow2.f32 %v1158_v16 }
 0x905   : > { %v1142_v19 = vrot.slane %v1141_v35, 4  ;;  %v1170_v38 = vadd.f32 %v1169_v43, %v1168_v54  ;;  %2210 = vpow2.f32 %v1160_v63 }
 0x907   : > { %v1143_v62 = vmax.f32 %v1141_v35, %v1142_v19  ;;  %v1171_v58 = vrot.slane %v1170_v38, 2 }
 0x909   : > { %v1172_v60 = vadd.f32 %v1171_v58, %v1170_v38  ;;  %v1144_v0 = vrot.slane %v1143_v62, 2 }
 0x90a   : > { %v2209_v25 = vpop.eup %2208 }
 0x90b   : > { %v2211_v28 = vpop.eup %2210  ;;  %v1175_v14 = vsel %vm21_vm0, %v2209_v25, 0.0  ;;  %v1173_v12 = vrot.slane %v1172_v60, 1  ;;  %v1145_v31 = vmax.f32 %v1143_v62, %v1144_v0 }
 0x90c   : > { %v1176_v32 = vsel %vm21_vm0, %v2211_v28, 0.0 }
 0x90d   : > { %v1174_v33 = vadd.f32 %v1173_v12, %v1172_v60  ;;  %v1177_v24 = vadd.f32 %v1176_v32, %v1175_v14  ;;  %v1146_v26 = vrot.slane %v1145_v31, 1 }
 0x90f   : > { %2212 = vlog2.f32 %v1174_v33  ;;  %v1178_v17 = vrot.slane %v1177_v24, 4  ;;  %v1147_v36 = vmax.f32 %v1145_v31, %v1146_v26 }
 0x911   : > { %v1179_v22 = vadd.f32 %v1178_v17, %v1177_v24  ;;  %v1152_v29 = vsub.f32 %v1119_v1, %v1147_v36  ;;  %v1153_v27 = vsub.f32 %v1120_v6, %v1147_v36 }
 0x913   : > { %v1180_v20 = vrot.slane %v1179_v22, 2  ;;  %v1162_v39 = vmul.f32 1.442695, %v1152_v29  ;;  %v1164_v21 = vmul.f32 1.442695, %v1153_v27 }
 0x915   : > { %v2213_v23 = vpop.eup %2212  ;;  %v1181_v47 = vadd.f32 %v1180_v20, %v1179_v22  ;;  %2214 = vpow2.f32 %v1162_v39 }
 0x916   : > { %v1194_v49 = vmul.f32 0.6931472, %v2213_v23  ;;  %2216 = vpow2.f32 %v1164_v21 }
 0x917   : > { %v1182_v50 = vrot.slane %v1181_v47, 1 }
 0x918   : > { %v1200_v52 = vsub.f32 %v2794_v46, %v1194_v49  ;;  %v1199_v53 = vsub.f32 %v2792_v40, %v1194_v49 }
 0x919   : > { %v1183_v42 = vadd.f32 %v1182_v50, %v1181_v47 }
 0x91a   : > { %v1208_v30 = vsel %vm21_vm0, %v1200_v52, -inf  ;;  %v1205_v55 = vsel %vm21_vm0, %v1199_v53, -inf }
 0x91b   : > { %v2215_v18 = vpop.eup %2214  ;;  %1209 = vmax.xlane.f32.xlu2 %v1208_v30  ;;  %1206 = vmax.xlane.f32.xlu0 %v1205_v55  ;;  %2218 = vlog2.f32 %v1183_v42 }
 0x91c   : > { %v2217_v37 = vpop.eup %2216  ;;  %v1184_v48 = vsel %vm21_vm0, %v2215_v18, 0.0 }
 0x91d   : > { %v1185_v44 = vsel %vm21_vm0, %v2217_v37, 0.0 }
 0x91e   : > { %v1186_v57 = vadd.f32 %v1185_v44, %v1184_v48 }
 0x920   : > { %v1187_v34 = vrot.slane %v1186_v57, 4 }
 0x921   : > { %v2219_v59 = vpop.eup %2218 }
 0x922   : > { %v1196_v46 = vmul.f32 0.6931472, %v2219_v59  ;;  %v1188_v1 = vadd.f32 %v1187_v34, %v1186_v57 }
 0x924   : > { %v1202_v40 = vsub.f32 %v1151_v9, %v1196_v46  ;;  %v1201_v3 = vsub.f32 %v1150_v5, %v1196_v46  ;;  %v1189_v6 = vrot.slane %v1188_v1, 2 }
 0x926   : > { %v1214_v7 = vsel %vm21_vm0, %v1202_v40, -inf  ;;  %v1211_v15 = vsel %vm21_vm0, %v1201_v3, -inf  ;;  %v1190_v54 = vadd.f32 %v1189_v6, %v1188_v1 }
 0x927   : > { %1215 = vmax.xlane.f32.xlu0 %v1214_v7  ;;  %1212 = vmax.xlane.f32.xlu1 %v1211_v15 }
 0x928   : > { %v1191_v16 = vrot.slane %v1190_v54, 1 }
 0x92a   : > { %v1192_v4 = vadd.f32 %v1191_v16, %v1190_v54 }
 0x92c   : > { %2220 = vlog2.f32 %v1192_v4 }
 0x932   : > { %v2221_v63 = vpop.eup %2220 }
 0x933   : > { %v1198_v35 = vmul.f32 0.6931472, %v2221_v63 }
 0x935   : > { %v1204_v43 = vsub.f32 %v1153_v27, %v1198_v35  ;;  %v1203_v19 = vsub.f32 %v1152_v29, %v1198_v35 }
 0x937   : > { %v1220_v38 = vsel %vm21_vm0, %v1204_v43, -inf  ;;  %v1217_v9 = vsel %vm21_vm0, %v1203_v19, -inf }
 0x938   : > { %1221 = vmax.xlane.f32.xlu1 %v1220_v38  ;;  %1218 = vmax.xlane.f32.xlu2 %v1217_v9 }
 0x98e   : > { %v1207_v5 = vpop.xlane.xlu0 %1206  ;;  %v1210_v62 = vpop.xlane.xlu2 %1209 }
 0x98f   : > { %v1223_v58 = vsub.f32 %v1199_v53, %v1207_v5  ;;  %v1224_v60 = vsub.f32 %v1200_v52, %v1210_v62 }
 0x991   : > { %v1229_v0 = vmul.f32 1.442695, %v1223_v58  ;;  %v1231_v25 = vmul.f32 1.442695, %v1224_v60 }
 0x993   : > { %2222 = vpow2.f32 %v1229_v0 }
 0x994   : > { %2224 = vpow2.f32 %v1231_v25 }
 0x999   : > { %v2223_v28 = vpop.eup %2222 }
 0x99a   : > { %v2225_v14 = vpop.eup %2224  ;;  %v1241_v12 = vsel %vm21_vm0, %v2223_v28, 0.0  ;;  %v1216_v31 = vpop.xlane.xlu0 %1215 }
 0x99b   : > { %v1213_v32 = vpop.xlane.xlu1 %1212  ;;  %1242 = vadd.xlane.f32.xlu0 %v1241_v12  ;;  %v1244_v33 = vsel %vm21_vm0, %v2225_v14, 0.0  ;;  %v1226_v24 = vsub.f32 %v1202_v40, %v1216_v31 }
 0x99c   : > { %v1225_v26 = vsub.f32 %v1201_v3, %v1213_v32  ;;  %1245 = vadd.xlane.f32.xlu2 %v1244_v33 }
 0x99d   : > { %v1235_v17 = vmul.f32 1.442695, %v1226_v24 }
 0x99e   : > { %v1233_v36 = vmul.f32 1.442695, %v1225_v26 }
 0x99f   : > { %2226 = vpow2.f32 %v1235_v17 }
 0x9a0   : > { %2228 = vpow2.f32 %v1233_v36 }
 0x9a5   : > { %v2227_v22 = vpop.eup %2226 }
 0x9a6   : > { %v2229_v29 = vpop.eup %2228  ;;  %v1250_v27 = vsel %vm21_vm0, %v2227_v22, 0.0 }
 0x9a7   : > { %1251 = vadd.xlane.f32.xlu0 %v1250_v27  ;;  %v1247_v20 = vsel %vm21_vm0, %v2229_v29, 0.0 }
 0x9a8   : > { %1248 = vadd.xlane.f32.xlu1 %v1247_v20 }
 0x9ab   : > { %v1219_v39 = vpop.xlane.xlu2 %1218  ;;  %v1222_v21 = vpop.xlane.xlu1 %1221 }
 0x9ac   : > { %v2820_v23 = vsub.f32 %v1203_v19, %v1219_v39  ;;  %v2822_v47 = vsub.f32 %v1204_v43, %v1222_v21 }
 0x9ae   : > { %v1237_v49 = vmul.f32 1.442695, %v2820_v23  ;;  %v1239_v50 = vmul.f32 1.442695, %v2822_v47 }
 0x9b0   : > { %2230 = vpow2.f32 %v1237_v49 }
 0x9b1   : > { %2232 = vpow2.f32 %v1239_v50 }
 0x9b6   : > { %v2231_v52 = vpop.eup %2230 }
 0x9b7   : > { %v2233_v53 = vpop.eup %2232  ;;  %v1253_v42 = vsel %vm21_vm0, %v2231_v52, 0.0 }
 0x9b8   : > { %1254 = vadd.xlane.f32.xlu2 %v1253_v42  ;;  %v1256_v30 = vsel %vm21_vm0, %v2233_v53, 0.0 }
 0x9b9   : > { %1257 = vadd.xlane.f32.xlu1 %v1256_v30 }
 0xa0e   : > { %v1243_v55 = vpop.xlane.xlu0 %1242 }
 0xa0f   : > { %2234 = vlog2.f32 %v1243_v55  ;;  %v1246_v18 = vpop.xlane.xlu2 %1245 }
 0xa10   : > { %2236 = vlog2.f32 %v1246_v18 }
 0xa15   : > { %v2235_v37 = vpop.eup %2234 }
 0xa16   : > { %v2237_v48 = vpop.eup %2236  ;;  %v1260_v44 = vmul.f32 0.6931472, %v2235_v37 }
 0xa17   : > { %v1262_v57 = vmul.f32 0.6931472, %v2237_v48 }
 0xa18   : > { %v1271_v34 = vsub.f32 %v1223_v58, %v1260_v44 }
 0xa19   : > { %v1272_v59 = vsub.f32 %v1224_v60, %v1262_v57 }
 0xa1a   : > { %v1277_v46 = vsel %vm21_vm0, %v1271_v34, -inf  ;;  %v1252_v1 = vpop.xlane.xlu0 %1251 }
 0xa1b   : > { %v1278_v40 = vsel %vm21_vm0, %v1272_v59, -inf  ;;  %2238 = vlog2.f32 %v1252_v1  ;;  %v1249_v3 = vpop.xlane.xlu1 %1248 }
 0xa1c   : > { %v1279_v6 = vmax.f32 %v1277_v46, %v1278_v40  ;;  %2240 = vlog2.f32 %v1249_v3 }
 0xa1e   : > { %v1280_v7 = vrot.slane %v1279_v6, 4 }
 0xa20   : > { %v1281_v15 = vmax.f32 %v1279_v6, %v1280_v7 }
 0xa21   : > { %v2239_v54 = vpop.eup %2238 }
 0xa22   : > { %v2241_v16 = vpop.eup %2240  ;;  %v1266_v4 = vmul.f32 0.6931472, %v2239_v54  ;;  %v1282_v63 = vrot.slane %v1281_v15, 2 }
 0xa23   : > { %v1264_v35 = vmul.f32 0.6931472, %v2241_v16 }
 0xa24   : > { %v1274_v43 = vsub.f32 %v1226_v24, %v1266_v4  ;;  %v1283_v19 = vmax.f32 %v1281_v15, %v1282_v63 }
 0xa25   : > { %v1273_v38 = vsub.f32 %v1225_v26, %v1264_v35 }
 0xa26   : > { %v1287_v9 = vsel %vm21_vm0, %v1274_v43, -inf  ;;  %v1284_v5 = vrot.slane %v1283_v19, 1 }
 0xa27   : > { %v1286_v62 = vsel %vm21_vm0, %v1273_v38, -inf }
 0xa28   : > { %v1288_v58 = vmax.f32 %v1286_v62, %v1287_v9  ;;  %v1285_v60 = vmax.f32 %v1283_v19, %v1284_v5 }
 0xa2a   : > { %v1289_v0 = vrot.slane %v1288_v58, 4  ;;  %v2832_v25 = vsub.f32 %v1271_v34, %v1285_v60  ;;  %v2834_v28 = vsub.f32 %v1272_v59, %v1285_v60 }
 0xa2b   : > { %v1255_v14 = vpop.xlane.xlu2 %1254 }
 0xa2c   : > { %v1290_v12 = vmax.f32 %v1288_v58, %v1289_v0  ;;  %2242 = vlog2.f32 %v1255_v14  ;;  %v1258_v31 = vpop.xlane.xlu1 %1257  ;;  %v1310_v32 = vmul.f32 1.442695, %v2832_v25  ;;  %v1312_v33 = vmul.f32 1.442695, %v2834_v28 }
 0xa2d   : > { %2244 = vlog2.f32 %v1258_v31 }
 0xa2e   : > { %v1291_v24 = vrot.slane %v1290_v12, 2  ;;  %2246 = vpow2.f32 %v1310_v32 }
 0xa2f   : > { %2248 = vpow2.f32 %v1312_v33 }
 0xa30   : > { %v1292_v26 = vmax.f32 %v1290_v12, %v1291_v24 }
 0xa32   : > { %v2243_v17 = vpop.eup %2242  ;;  %v1293_v36 = vrot.slane %v1292_v26, 1 }
 0xa33   : > { %v2245_v22 = vpop.eup %2244  ;;  %v1268_v29 = vmul.f32 0.6931472, %v2243_v17 }
 0xa34   : > { %v2247_v27 = vpop.eup %2246  ;;  %v1294_v20 = vmax.f32 %v1292_v26, %v1293_v36  ;;  %v1270_v39 = vmul.f32 0.6931472, %v2245_v22 }
 0xa35   : > { %v2249_v21 = vpop.eup %2248  ;;  %v1275_v49 = vsub.f32 %v2820_v23, %v1268_v29  ;;  %v1322_v50 = vsel %vm21_vm0, %v2247_v27, 0.0 }
 0xa36   : > { %v1306_v52 = vsub.f32 %v1273_v38, %v1294_v20  ;;  %v1276_v53 = vsub.f32 %v2822_v47, %v1270_v39  ;;  %v1323_v42 = vsel %vm21_vm0, %v2249_v21, 0.0  ;;  %v1307_v30 = vsub.f32 %v1274_v43, %v1294_v20 }
 0xa37   : > { %v1295_v55 = vsel %vm21_vm0, %v1275_v49, -inf  ;;  %v1324_v18 = vadd.f32 %v1323_v42, %v1322_v50 }
 0xa38   : > { %v1314_v37 = vmul.f32 1.442695, %v1306_v52  ;;  %v1296_v48 = vsel %vm21_vm0, %v1276_v53, -inf  ;;  %v1316_v44 = vmul.f32 1.442695, %v1307_v30 }
 0xa39   : > { %v1297_v57 = vmax.f32 %v1295_v55, %v1296_v48  ;;  %v1325_v34 = vrot.slane %v1324_v18, 4 }
 0xa3a   : > { %2250 = vpow2.f32 %v1314_v37 }
 0xa3b   : > { %v1298_v59 = vrot.slane %v1297_v57, 4  ;;  %v1326_v23 = vadd.f32 %v1325_v34, %v1324_v18  ;;  %2252 = vpow2.f32 %v1316_v44 }
 0xa3d   : > { %v1299_v46 = vmax.f32 %v1297_v57, %v1298_v59  ;;  %v1327_v1 = vrot.slane %v1326_v23, 2 }
 0xa3f   : > { %v1328_v40 = vadd.f32 %v1327_v1, %v1326_v23  ;;  %v1300_v47 = vrot.slane %v1299_v46, 2 }
 0xa40   : > { %v2251_v3 = vpop.eup %2250 }
 0xa41   : > { %v2253_v6 = vpop.eup %2252  ;;  %v1331_v7 = vsel %vm21_vm0, %v2251_v3, 0.0  ;;  %v1329_v15 = vrot.slane %v1328_v40, 1  ;;  %v1301_v54 = vmax.f32 %v1299_v46, %v1300_v47 }
 0xa42   : > { %v1332_v16 = vsel %vm21_vm0, %v2253_v6, 0.0 }
 0xa43   : > { %v1330_v4 = vadd.f32 %v1329_v15, %v1328_v40  ;;  %v1333_v63 = vadd.f32 %v1332_v16, %v1331_v7  ;;  %v1302_v35 = vrot.slane %v1301_v54, 1 }
 0xa45   : > { %2254 = vlog2.f32 %v1330_v4  ;;  %v1334_v43 = vrot.slane %v1333_v63, 4  ;;  %v1303_v19 = vmax.f32 %v1301_v54, %v1302_v35 }
 0xa47   : > { %v1335_v38 = vadd.f32 %v1334_v43, %v1333_v63  ;;  %v1308_v9 = vsub.f32 %v1275_v49, %v1303_v19  ;;  %v1309_v5 = vsub.f32 %v1276_v53, %v1303_v19 }
 0xa49   : > { %v1336_v62 = vrot.slane %v1335_v38, 2  ;;  %v1318_v58 = vmul.f32 1.442695, %v1308_v9  ;;  %v1320_v60 = vmul.f32 1.442695, %v1309_v5 }
 0xa4b   : > { %v2255_v0 = vpop.eup %2254  ;;  %v1337_v14 = vadd.f32 %v1336_v62, %v1335_v38  ;;  %2256 = vpow2.f32 %v1318_v58 }
 0xa4c   : > { %v1350_v12 = vmul.f32 0.6931472, %v2255_v0  ;;  %2258 = vpow2.f32 %v1320_v60 }
 0xa4d   : > { %v1338_v31 = vrot.slane %v1337_v14, 1 }
 0xa4e   : > { %v1356_v32 = vsub.f32 %v2834_v28, %v1350_v12  ;;  %v1355_v33 = vsub.f32 %v2832_v25, %v1350_v12 }
 0xa4f   : > { %v1339_v24 = vadd.f32 %v1338_v31, %v1337_v14 }
 0xa50   : > { %v1364_v26 = vsel %vm21_vm0, %v1356_v32, -inf  ;;  %v1361_v17 = vsel %vm21_vm0, %v1355_v33, -inf }
 0xa51   : > { %v2257_v36 = vpop.eup %2256  ;;  %1365 = vmax.xlane.f32.xlu2 %v1364_v26  ;;  %1362 = vmax.xlane.f32.xlu0 %v1361_v17  ;;  %2260 = vlog2.f32 %v1339_v24 }
 0xa52   : > { %v2259_v22 = vpop.eup %2258  ;;  %v1340_v29 = vsel %vm21_vm0, %v2257_v36, 0.0 }
 0xa53   : > { %v1341_v27 = vsel %vm21_vm0, %v2259_v22, 0.0 }
 0xa54   : > { %v1342_v20 = vadd.f32 %v1341_v27, %v1340_v29 }
 0xa56   : > { %v1343_v39 = vrot.slane %v1342_v20, 4 }
 0xa57   : > { %v2261_v21 = vpop.eup %2260 }
 0xa58   : > { %v1352_v28 = vmul.f32 0.6931472, %v2261_v21  ;;  %v1344_v49 = vadd.f32 %v1343_v39, %v1342_v20 }
 0xa5a   : > { %v1358_v25 = vsub.f32 %v1307_v30, %v1352_v28  ;;  %v1357_v50 = vsub.f32 %v1306_v52, %v1352_v28  ;;  %v1345_v53 = vrot.slane %v1344_v49, 2 }
 0xa5c   : > { %v1370_v42 = vsel %vm21_vm0, %v1358_v25, -inf  ;;  %v1367_v55 = vsel %vm21_vm0, %v1357_v50, -inf  ;;  %v1346_v18 = vadd.f32 %v1345_v53, %v1344_v49 }
 0xa5d   : > { %1371 = vmax.xlane.f32.xlu0 %v1370_v42  ;;  %1368 = vmax.xlane.f32.xlu1 %v1367_v55 }
 0xa5e   : > { %v1347_v37 = vrot.slane %v1346_v18, 1 }
 0xa60   : > { %v1348_v48 = vadd.f32 %v1347_v37, %v1346_v18 }
 0xa62   : > { %2262 = vlog2.f32 %v1348_v48 }
 0xa68   : > { %v2263_v44 = vpop.eup %2262 }
 0xa69   : > { %v1354_v57 = vmul.f32 0.6931472, %v2263_v44 }
 0xa6b   : > { %v1360_v34 = vsub.f32 %v1309_v5, %v1354_v57  ;;  %v1359_v59 = vsub.f32 %v1308_v9, %v1354_v57 }
 0xa6d   : > { %v1376_v23 = vsel %vm21_vm0, %v1360_v34, -inf  ;;  %v1373_v30 = vsel %vm21_vm0, %v1359_v59, -inf }
 0xa6e   : > { %1377 = vmax.xlane.f32.xlu1 %v1376_v23  ;;  %1374 = vmax.xlane.f32.xlu2 %v1373_v30 }
 0xac4   : > { %v1363_v52 = vpop.xlane.xlu0 %1362  ;;  %v1366_v46 = vpop.xlane.xlu2 %1365 }
 0xac5   : > { %v1379_v1 = vsub.f32 %v1355_v33, %v1363_v52  ;;  %v1380_v40 = vsub.f32 %v1356_v32, %v1366_v46 }
 0xac7   : > { %v1385_v47 = vmul.f32 1.442695, %v1379_v1  ;;  %v1387_v3 = vmul.f32 1.442695, %v1380_v40 }
 0xac9   : > { %2264 = vpow2.f32 %v1385_v47 }
 0xaca   : > { %2266 = vpow2.f32 %v1387_v3 }
 0xacf   : > { %v2265_v6 = vpop.eup %2264 }
 0xad0   : > { %v2267_v7 = vpop.eup %2266  ;;  %v1397_v15 = vsel %vm21_vm0, %v2265_v6, 0.0  ;;  %v1372_v54 = vpop.xlane.xlu0 %1371 }
 0xad1   : > { %v1369_v16 = vpop.xlane.xlu1 %1368  ;;  %1398 = vadd.xlane.f32.xlu0 %v1397_v15  ;;  %v1400_v4 = vsel %vm21_vm0, %v2267_v7, 0.0  ;;  %v1382_v63 = vsub.f32 %v1358_v25, %v1372_v54 }
 0xad2   : > { %v1381_v35 = vsub.f32 %v1357_v50, %v1369_v16  ;;  %1401 = vadd.xlane.f32.xlu2 %v1400_v4 }
 0xad3   : > { %v1391_v43 = vmul.f32 1.442695, %v1382_v63 }
 0xad4   : > { %v1389_v19 = vmul.f32 1.442695, %v1381_v35 }
 0xad5   : > { %2268 = vpow2.f32 %v1391_v43 }
 0xad6   : > { %2270 = vpow2.f32 %v1389_v19 }
 0xadb   : > { %v2269_v38 = vpop.eup %2268 }
 0xadc   : > { %v2271_v9 = vpop.eup %2270  ;;  %v1406_v5 = vsel %vm21_vm0, %v2269_v38, 0.0 }
 0xadd   : > { %1407 = vadd.xlane.f32.xlu0 %v1406_v5  ;;  %v1403_v62 = vsel %vm21_vm0, %v2271_v9, 0.0 }
 0xade   : > { %1404 = vadd.xlane.f32.xlu1 %v1403_v62 }
 0xae1   : > { %v1375_v58 = vpop.xlane.xlu2 %1374  ;;  %v1378_v60 = vpop.xlane.xlu1 %1377 }
 0xae2   : > { %v2860_v0 = vsub.f32 %v1359_v59, %v1375_v58  ;;  %v2862_v14 = vsub.f32 %v1360_v34, %v1378_v60 }
 0xae4   : > { %v1393_v12 = vmul.f32 1.442695, %v2860_v0  ;;  %v1395_v31 = vmul.f32 1.442695, %v2862_v14 }
 0xae6   : > { %2272 = vpow2.f32 %v1393_v12 }
 0xae7   : > { %2274 = vpow2.f32 %v1395_v31 }
 0xaec   : > { %v2273_v32 = vpop.eup %2272 }
 0xaed   : > { %v2275_v33 = vpop.eup %2274  ;;  %v1409_v24 = vsel %vm21_vm0, %v2273_v32, 0.0 }
 0xaee   : > { %1410 = vadd.xlane.f32.xlu2 %v1409_v24  ;;  %v1412_v26 = vsel %vm21_vm0, %v2275_v33, 0.0 }
 0xaef   : > { %1413 = vadd.xlane.f32.xlu1 %v1412_v26 }
 0xb44   : > { %v1399_v17 = vpop.xlane.xlu0 %1398 }
 0xb45   : > { %2276 = vlog2.f32 %v1399_v17  ;;  %v1402_v36 = vpop.xlane.xlu2 %1401 }
 0xb46   : > { %2278 = vlog2.f32 %v1402_v36 }
 0xb4b   : > { %v2277_v22 = vpop.eup %2276 }
 0xb4c   : > { %v2279_v29 = vpop.eup %2278  ;;  %v1416_v27 = vmul.f32 0.6931472, %v2277_v22 }
 0xb4d   : > { %v1418_v20 = vmul.f32 0.6931472, %v2279_v29 }
 0xb4e   : > { %v1427_v39 = vsub.f32 %v1379_v1, %v1416_v27 }
 0xb4f   : > { %v1428_v21 = vsub.f32 %v1380_v40, %v1418_v20 }
 0xb50   : > { %v1433_v28 = vsel %vm21_vm0, %v1427_v39, -inf  ;;  %v1408_v49 = vpop.xlane.xlu0 %1407 }
 0xb51   : > { %v1434_v25 = vsel %vm21_vm0, %v1428_v21, -inf  ;;  %2280 = vlog2.f32 %v1408_v49  ;;  %v1405_v50 = vpop.xlane.xlu1 %1404 }
 0xb52   : > { %v1435_v53 = vmax.f32 %v1433_v28, %v1434_v25  ;;  %2282 = vlog2.f32 %v1405_v50 }
 0xb54   : > { %v1436_v42 = vrot.slane %v1435_v53, 4 }
 0xb56   : > { %v1437_v55 = vmax.f32 %v1435_v53, %v1436_v42 }
 0xb57   : > { %v2281_v18 = vpop.eup %2280 }
 0xb58   : > { %v2283_v37 = vpop.eup %2282  ;;  %v1422_v48 = vmul.f32 0.6931472, %v2281_v18  ;;  %v1438_v44 = vrot.slane %v1437_v55, 2 }
 0xb59   : > { %v1420_v57 = vmul.f32 0.6931472, %v2283_v37 }
 0xb5a   : > { %v1430_v34 = vsub.f32 %v1382_v63, %v1422_v48  ;;  %v1439_v59 = vmax.f32 %v1437_v55, %v1438_v44 }
 0xb5b   : > { %v1429_v23 = vsub.f32 %v1381_v35, %v1420_v57 }
 0xb5c   : > { %v1443_v30 = vsel %vm21_vm0, %v1430_v34, -inf  ;;  %v1440_v52 = vrot.slane %v1439_v59, 1 }
 0xb5d   : > { %v1442_v46 = vsel %vm21_vm0, %v1429_v23, -inf }
 0xb5e   : > { %v1444_v1 = vmax.f32 %v1442_v46, %v1443_v30  ;;  %v1441_v40 = vmax.f32 %v1439_v59, %v1440_v52 }
 0xb60   : > { %v1445_v47 = vrot.slane %v1444_v1, 4  ;;  %v2872_v3 = vsub.f32 %v1427_v39, %v1441_v40  ;;  %v2874_v6 = vsub.f32 %v1428_v21, %v1441_v40 }
 0xb61   : > { %v1411_v7 = vpop.xlane.xlu2 %1410 }
 0xb62   : > { %v1446_v15 = vmax.f32 %v1444_v1, %v1445_v47  ;;  %2284 = vlog2.f32 %v1411_v7  ;;  %v1414_v54 = vpop.xlane.xlu1 %1413  ;;  %v1466_v16 = vmul.f32 1.442695, %v2872_v3  ;;  %v1468_v4 = vmul.f32 1.442695, %v2874_v6 }
 0xb63   : > { %2286 = vlog2.f32 %v1414_v54 }
 0xb64   : > { %v1447_v63 = vrot.slane %v1446_v15, 2  ;;  %2288 = vpow2.f32 %v1466_v16 }
 0xb65   : > { %2290 = vpow2.f32 %v1468_v4 }
 0xb66   : > { %v1448_v35 = vmax.f32 %v1446_v15, %v1447_v63 }
 0xb68   : > { %v2285_v43 = vpop.eup %2284  ;;  %v1449_v19 = vrot.slane %v1448_v35, 1 }
 0xb69   : > { %v2287_v38 = vpop.eup %2286  ;;  %v1424_v9 = vmul.f32 0.6931472, %v2285_v43 }
 0xb6a   : > { %v2289_v5 = vpop.eup %2288  ;;  %v1450_v62 = vmax.f32 %v1448_v35, %v1449_v19  ;;  %v1426_v58 = vmul.f32 0.6931472, %v2287_v38 }
 0xb6b   : > { %v2291_v60 = vpop.eup %2290  ;;  %v1431_v12 = vsub.f32 %v2860_v0, %v1424_v9  ;;  %v1478_v31 = vsel %vm21_vm0, %v2289_v5, 0.0 }
 0xb6c   : > { %v1462_v32 = vsub.f32 %v1429_v23, %v1450_v62  ;;  %v1432_v33 = vsub.f32 %v2862_v14, %v1426_v58  ;;  %v1479_v24 = vsel %vm21_vm0, %v2291_v60, 0.0  ;;  %v1463_v26 = vsub.f32 %v1430_v34, %v1450_v62 }
 0xb6d   : > { %v1451_v17 = vsel %vm21_vm0, %v1431_v12, -inf  ;;  %v1480_v36 = vadd.f32 %v1479_v24, %v1478_v31 }
 0xb6e   : > { %v1470_v22 = vmul.f32 1.442695, %v1462_v32  ;;  %v1452_v29 = vsel %vm21_vm0, %v1432_v33, -inf  ;;  %v1472_v27 = vmul.f32 1.442695, %v1463_v26 }
 0xb6f   : > { %v1453_v20 = vmax.f32 %v1451_v17, %v1452_v29  ;;  %v1481_v39 = vrot.slane %v1480_v36, 4 }
 0xb70   : > { %2292 = vpow2.f32 %v1470_v22 }
 0xb71   : > { %v1454_v21 = vrot.slane %v1453_v20, 4  ;;  %v1482_v0 = vadd.f32 %v1481_v39, %v1480_v36  ;;  %2294 = vpow2.f32 %v1472_v27 }
 0xb73   : > { %v1455_v28 = vmax.f32 %v1453_v20, %v1454_v21  ;;  %v1483_v49 = vrot.slane %v1482_v0, 2 }
 0xb75   : > { %v1484_v25 = vadd.f32 %v1483_v49, %v1482_v0  ;;  %v1456_v14 = vrot.slane %v1455_v28, 2 }
 0xb76   : > { %v2293_v50 = vpop.eup %2292 }
 0xb77   : > { %v2295_v53 = vpop.eup %2294  ;;  %v1487_v42 = vsel %vm21_vm0, %v2293_v50, 0.0  ;;  %v1485_v55 = vrot.slane %v1484_v25, 1  ;;  %v1457_v18 = vmax.f32 %v1455_v28, %v1456_v14 }
 0xb78   : > { %v1488_v37 = vsel %vm21_vm0, %v2295_v53, 0.0 }
 0xb79   : > { %v1486_v48 = vadd.f32 %v1485_v55, %v1484_v25  ;;  %v1489_v44 = vadd.f32 %v1488_v37, %v1487_v42  ;;  %v1458_v57 = vrot.slane %v1457_v18, 1 }
 0xb7b   : > { %2296 = vlog2.f32 %v1486_v48  ;;  %v1490_v34 = vrot.slane %v1489_v44, 4  ;;  %v1459_v59 = vmax.f32 %v1457_v18, %v1458_v57 }
 0xb7d   : > { %v1491_v23 = vadd.f32 %v1490_v34, %v1489_v44  ;;  %v1464_v30 = vsub.f32 %v1431_v12, %v1459_v59  ;;  %v1465_v52 = vsub.f32 %v1432_v33, %v1459_v59 }
 0xb7f   : > { %v1492_v46 = vrot.slane %v1491_v23, 2  ;;  %v1474_v1 = vmul.f32 1.442695, %v1464_v30  ;;  %v1476_v40 = vmul.f32 1.442695, %v1465_v52 }
 0xb81   : > { %v2297_v47 = vpop.eup %2296  ;;  %v1493_v7 = vadd.f32 %v1492_v46, %v1491_v23  ;;  %2298 = vpow2.f32 %v1474_v1 }
 0xb82   : > { %v1506_v15 = vmul.f32 0.6931472, %v2297_v47  ;;  %2300 = vpow2.f32 %v1476_v40 }
 0xb83   : > { %v1494_v54 = vrot.slane %v1493_v7, 1 }
 0xb84   : > { %v1512_v16 = vsub.f32 %v2874_v6, %v1506_v15  ;;  %v1511_v4 = vsub.f32 %v2872_v3, %v1506_v15 }
 0xb85   : > { %v1495_v63 = vadd.f32 %v1494_v54, %v1493_v7 }
 0xb86   : > { %v1520_v35 = vsel %vm21_vm0, %v1512_v16, -inf  ;;  %v1517_v43 = vsel %vm21_vm0, %v1511_v4, -inf }
 0xb87   : > { %v2299_v19 = vpop.eup %2298  ;;  %1521 = vmax.xlane.f32.xlu2 %v1520_v35  ;;  %1518 = vmax.xlane.f32.xlu0 %v1517_v43  ;;  %2302 = vlog2.f32 %v1495_v63 }
 0xb88   : > { %v2301_v38 = vpop.eup %2300  ;;  %v1496_v9 = vsel %vm21_vm0, %v2299_v19, 0.0 }
 0xb89   : > { %v1497_v5 = vsel %vm21_vm0, %v2301_v38, 0.0 }
 0xb8a   : > { %v1498_v62 = vadd.f32 %v1497_v5, %v1496_v9 }
 0xb8c   : > { %v1499_v58 = vrot.slane %v1498_v62, 4 }
 0xb8d   : > { %v2303_v60 = vpop.eup %2302 }
 0xb8e   : > { %v1508_v6 = vmul.f32 0.6931472, %v2303_v60  ;;  %v1500_v12 = vadd.f32 %v1499_v58, %v1498_v62 }
 0xb90   : > { %v1514_v3 = vsub.f32 %v1463_v26, %v1508_v6  ;;  %v1513_v31 = vsub.f32 %v1462_v32, %v1508_v6  ;;  %v1501_v33 = vrot.slane %v1500_v12, 2 }
 0xb92   : > { %v1526_v24 = vsel %vm21_vm0, %v1514_v3, -inf  ;;  %v1523_v17 = vsel %vm21_vm0, %v1513_v31, -inf  ;;  %v1502_v36 = vadd.f32 %v1501_v33, %v1500_v12 }
 0xb93   : > { %1527 = vmax.xlane.f32.xlu0 %v1526_v24  ;;  %1524 = vmax.xlane.f32.xlu1 %v1523_v17 }
 0xb94   : > { %v1503_v22 = vrot.slane %v1502_v36, 1 }
 0xb96   : > { %v1504_v29 = vadd.f32 %v1503_v22, %v1502_v36 }
 0xb98   : > { %2304 = vlog2.f32 %v1504_v29 }
 0xb9e   : > { %v2305_v27 = vpop.eup %2304 }
 0xb9f   : > { %v1510_v20 = vmul.f32 0.6931472, %v2305_v27 }
 0xba1   : > { %v1516_v39 = vsub.f32 %v1465_v52, %v1510_v20  ;;  %v1515_v21 = vsub.f32 %v1464_v30, %v1510_v20 }
 0xba3   : > { %v1532_v0 = vsel %vm21_vm0, %v1516_v39, -inf  ;;  %v1529_v26 = vsel %vm21_vm0, %v1515_v21, -inf }
 0xba4   : > { %1533 = vmax.xlane.f32.xlu1 %v1532_v0  ;;  %1530 = vmax.xlane.f32.xlu2 %v1529_v26 }
 0xbfa   : > { %v1519_v32 = vpop.xlane.xlu0 %1518  ;;  %v1522_v28 = vpop.xlane.xlu2 %1521 }
 0xbfb   : > { %v1535_v49 = vsub.f32 %v1511_v4, %v1519_v32  ;;  %v1536_v25 = vsub.f32 %v1512_v16, %v1522_v28 }
 0xbfd   : > { %v1541_v14 = vmul.f32 1.442695, %v1535_v49  ;;  %v1543_v50 = vmul.f32 1.442695, %v1536_v25 }
 0xbff   : > { %2306 = vpow2.f32 %v1541_v14 }
 0xc00   : > { %2308 = vpow2.f32 %v1543_v50 }
 0xc05   : > { %v2307_v53 = vpop.eup %2306 }
 0xc06   : > { %v2309_v42 = vpop.eup %2308  ;;  %v1553_v55 = vsel %vm21_vm0, %v2307_v53, 0.0  ;;  %v1528_v18 = vpop.xlane.xlu0 %1527 }
 0xc07   : > { %v1525_v37 = vpop.xlane.xlu1 %1524  ;;  %1554 = vadd.xlane.f32.xlu0 %v1553_v55  ;;  %v1556_v48 = vsel %vm21_vm0, %v2309_v42, 0.0  ;;  %v1538_v44 = vsub.f32 %v1514_v3, %v1528_v18 }
 0xc08   : > { %v1537_v57 = vsub.f32 %v1513_v31, %v1525_v37  ;;  %1557 = vadd.xlane.f32.xlu2 %v1556_v48 }
 0xc09   : > { %v1547_v34 = vmul.f32 1.442695, %v1538_v44 }
 0xc0a   : > { %v1545_v59 = vmul.f32 1.442695, %v1537_v57 }
 0xc0b   : > { %2310 = vpow2.f32 %v1547_v34 }
 0xc0c   : > { %2312 = vpow2.f32 %v1545_v59 }
 0xc11   : > { %v2311_v23 = vpop.eup %2310 }
 0xc12   : > { %v2313_v30 = vpop.eup %2312  ;;  %v1562_v52 = vsel %vm21_vm0, %v2311_v23, 0.0 }
 0xc13   : > { %1563 = vadd.xlane.f32.xlu0 %v1562_v52  ;;  %v1559_v46 = vsel %vm21_vm0, %v2313_v30, 0.0 }
 0xc14   : > { %1560 = vadd.xlane.f32.xlu1 %v1559_v46 }
 0xc17   : > { %v1531_v1 = vpop.xlane.xlu2 %1530  ;;  %v1534_v40 = vpop.xlane.xlu1 %1533 }
 0xc18   : > { %v2900_v47 = vsub.f32 %v1515_v21, %v1531_v1  ;;  %v2902_v7 = vsub.f32 %v1516_v39, %v1534_v40 }
 0xc1a   : > { %v1549_v15 = vmul.f32 1.442695, %v2900_v47  ;;  %v1551_v54 = vmul.f32 1.442695, %v2902_v7 }
 0xc1c   : > { %2314 = vpow2.f32 %v1549_v15 }
 0xc1d   : > { %2316 = vpow2.f32 %v1551_v54 }
 0xc22   : > { %v2315_v16 = vpop.eup %2314 }
 0xc23   : > { %v2317_v4 = vpop.eup %2316  ;;  %v1565_v63 = vsel %vm21_vm0, %v2315_v16, 0.0 }
 0xc24   : > { %1566 = vadd.xlane.f32.xlu2 %v1565_v63  ;;  %v1568_v35 = vsel %vm21_vm0, %v2317_v4, 0.0 }
 0xc25   : > { %1569 = vadd.xlane.f32.xlu1 %v1568_v35 }
 0xc7a   : > { %v1555_v43 = vpop.xlane.xlu0 %1554 }
 0xc7b   : > { %2318 = vlog2.f32 %v1555_v43  ;;  %v1558_v19 = vpop.xlane.xlu2 %1557 }
 0xc7c   : > { %2320 = vlog2.f32 %v1558_v19 }
 0xc81   : > { %v2319_v38 = vpop.eup %2318 }
 0xc82   : > { %v2321_v9 = vpop.eup %2320  ;;  %v1572_v5 = vmul.f32 0.6931472, %v2319_v38 }
 0xc83   : > { %v1574_v62 = vmul.f32 0.6931472, %v2321_v9 }
 0xc84   : > { %v1583_v58 = vsub.f32 %v1535_v49, %v1572_v5 }
 0xc85   : > { %v1584_v60 = vsub.f32 %v1536_v25, %v1574_v62 }
 0xc86   : > { %v1589_v6 = vsel %vm21_vm0, %v1583_v58, -inf  ;;  %v1564_v12 = vpop.xlane.xlu0 %1563 }
 0xc87   : > { %v1590_v3 = vsel %vm21_vm0, %v1584_v60, -inf  ;;  %2322 = vlog2.f32 %v1564_v12  ;;  %v1561_v31 = vpop.xlane.xlu1 %1560 }
 0xc88   : > { %v1591_v33 = vmax.f32 %v1589_v6, %v1590_v3  ;;  %2324 = vlog2.f32 %v1561_v31 }
 0xc8a   : > { %v1592_v24 = vrot.slane %v1591_v33, 4 }
 0xc8c   : > { %v1593_v17 = vmax.f32 %v1591_v33, %v1592_v24 }
 0xc8d   : > { %v2323_v36 = vpop.eup %2322 }
 0xc8e   : > { %v2325_v22 = vpop.eup %2324  ;;  %v1578_v29 = vmul.f32 0.6931472, %v2323_v36  ;;  %v1594_v27 = vrot.slane %v1593_v17, 2 }
 0xc8f   : > { %v1576_v20 = vmul.f32 0.6931472, %v2325_v22 }
 0xc90   : > { %v1586_v39 = vsub.f32 %v1538_v44, %v1578_v29  ;;  %v1595_v21 = vmax.f32 %v1593_v17, %v1594_v27 }
 0xc91   : > { %v1585_v0 = vsub.f32 %v1537_v57, %v1576_v20 }
 0xc92   : > { %v1599_v26 = vsel %vm21_vm0, %v1586_v39, -inf  ;;  %v1596_v32 = vrot.slane %v1595_v21, 1 }
 0xc93   : > { %v1598_v28 = vsel %vm21_vm0, %v1585_v0, -inf }
 0xc94   : > { %v1600_v49 = vmax.f32 %v1598_v28, %v1599_v26  ;;  %v1597_v25 = vmax.f32 %v1595_v21, %v1596_v32 }
 0xc96   : > { %v1601_v14 = vrot.slane %v1600_v49, 4  ;;  %v2912_v50 = vsub.f32 %v1583_v58, %v1597_v25  ;;  %v2914_v53 = vsub.f32 %v1584_v60, %v1597_v25 }
 0xc97   : > { %v1567_v42 = vpop.xlane.xlu2 %1566 }
 0xc98   : > { %v1602_v55 = vmax.f32 %v1600_v49, %v1601_v14  ;;  %2326 = vlog2.f32 %v1567_v42  ;;  %v1570_v18 = vpop.xlane.xlu1 %1569  ;;  %v1622_v37 = vmul.f32 1.442695, %v2912_v50  ;;  %v1624_v48 = vmul.f32 1.442695, %v2914_v53 }
 0xc99   : > { %2328 = vlog2.f32 %v1570_v18 }
 0xc9a   : > { %v1603_v44 = vrot.slane %v1602_v55, 2  ;;  %2330 = vpow2.f32 %v1622_v37 }
 0xc9b   : > { %2332 = vpow2.f32 %v1624_v48 }
 0xc9c   : > { %v1604_v57 = vmax.f32 %v1602_v55, %v1603_v44 }
 0xc9e   : > { %v2327_v34 = vpop.eup %2326  ;;  %v1605_v59 = vrot.slane %v1604_v57, 1 }
 0xc9f   : > { %v2329_v23 = vpop.eup %2328  ;;  %v1580_v30 = vmul.f32 0.6931472, %v2327_v34 }
 0xca0   : > { %v2331_v52 = vpop.eup %2330  ;;  %v1606_v46 = vmax.f32 %v1604_v57, %v1605_v59  ;;  %v1582_v1 = vmul.f32 0.6931472, %v2329_v23 }
 0xca1   : > { %v2333_v40 = vpop.eup %2332  ;;  %v1587_v15 = vsub.f32 %v2900_v47, %v1580_v30  ;;  %v1634_v54 = vsel %vm21_vm0, %v2331_v52, 0.0 }
 0xca2   : > { %v1618_v16 = vsub.f32 %v1585_v0, %v1606_v46  ;;  %v1588_v4 = vsub.f32 %v2902_v7, %v1582_v1  ;;  %v1635_v63 = vsel %vm21_vm0, %v2333_v40, 0.0  ;;  %v1619_v35 = vsub.f32 %v1586_v39, %v1606_v46 }
 0xca3   : > { %v1607_v43 = vsel %vm21_vm0, %v1587_v15, -inf  ;;  %v1636_v19 = vadd.f32 %v1635_v63, %v1634_v54 }
 0xca4   : > { %v1626_v38 = vmul.f32 1.442695, %v1618_v16  ;;  %v1608_v9 = vsel %vm21_vm0, %v1588_v4, -inf  ;;  %v1628_v5 = vmul.f32 1.442695, %v1619_v35 }
 0xca5   : > { %v1609_v62 = vmax.f32 %v1607_v43, %v1608_v9  ;;  %v1637_v58 = vrot.slane %v1636_v19, 4 }
 0xca6   : > { %2334 = vpow2.f32 %v1626_v38 }
 0xca7   : > { %v1610_v60 = vrot.slane %v1609_v62, 4  ;;  %v1638_v47 = vadd.f32 %v1637_v58, %v1636_v19  ;;  %2336 = vpow2.f32 %v1628_v5 }
 0xca9   : > { %v1611_v6 = vmax.f32 %v1609_v62, %v1610_v60  ;;  %v1639_v12 = vrot.slane %v1638_v47, 2 }
 0xcab   : > { %v1640_v3 = vadd.f32 %v1639_v12, %v1638_v47  ;;  %v1612_v7 = vrot.slane %v1611_v6, 2 }
 0xcac   : > { %v2335_v31 = vpop.eup %2334 }
 0xcad   : > { %v2337_v33 = vpop.eup %2336  ;;  %v1643_v24 = vsel %vm21_vm0, %v2335_v31, 0.0  ;;  %v1641_v17 = vrot.slane %v1640_v3, 1  ;;  %v1613_v36 = vmax.f32 %v1611_v6, %v1612_v7 }
 0xcae   : > { %v1644_v22 = vsel %vm21_vm0, %v2337_v33, 0.0 }
 0xcaf   : > { %v1642_v29 = vadd.f32 %v1641_v17, %v1640_v3  ;;  %v1645_v27 = vadd.f32 %v1644_v22, %v1643_v24  ;;  %v1614_v20 = vrot.slane %v1613_v36, 1 }
 0xcb1   : > { %2338 = vlog2.f32 %v1642_v29  ;;  %v1646_v39 = vrot.slane %v1645_v27, 4  ;;  %v1615_v21 = vmax.f32 %v1613_v36, %v1614_v20 }
 0xcb3   : > { %v1647_v0 = vadd.f32 %v1646_v39, %v1645_v27  ;;  %v1620_v26 = vsub.f32 %v1587_v15, %v1615_v21  ;;  %v1621_v32 = vsub.f32 %v1588_v4, %v1615_v21 }
 0xcb5   : > { %v1648_v28 = vrot.slane %v1647_v0, 2  ;;  %v1630_v49 = vmul.f32 1.442695, %v1620_v26  ;;  %v1632_v25 = vmul.f32 1.442695, %v1621_v32 }
 0xcb7   : > { %v2339_v14 = vpop.eup %2338  ;;  %v1649_v42 = vadd.f32 %v1648_v28, %v1647_v0  ;;  %2340 = vpow2.f32 %v1630_v49 }
 0xcb8   : > { %v1662_v55 = vmul.f32 0.6931472, %v2339_v14  ;;  %2342 = vpow2.f32 %v1632_v25 }
 0xcb9   : > { %v1650_v18 = vrot.slane %v1649_v42, 1 }
 0xcba   : > { %v1668_v37 = vsub.f32 %v2914_v53, %v1662_v55  ;;  %v1667_v48 = vsub.f32 %v2912_v50, %v1662_v55 }
 0xcbb   : > { %v1651_v44 = vadd.f32 %v1650_v18, %v1649_v42 }
 0xcbc   : > { %v1676_v57 = vsel %vm21_vm0, %v1668_v37, -inf  ;;  %v1673_v34 = vsel %vm21_vm0, %v1667_v48, -inf }
 0xcbd   : > { %v2341_v59 = vpop.eup %2340  ;;  %1677 = vmax.xlane.f32.xlu2 %v1676_v57  ;;  %1674 = vmax.xlane.f32.xlu0 %v1673_v34  ;;  %2344 = vlog2.f32 %v1651_v44 }
 0xcbe   : > { %v2343_v23 = vpop.eup %2342  ;;  %v1652_v30 = vsel %vm21_vm0, %v2341_v59, 0.0 }
 0xcbf   : > { %v1653_v52 = vsel %vm21_vm0, %v2343_v23, 0.0 }
 0xcc0   : > { %v1654_v46 = vadd.f32 %v1653_v52, %v1652_v30 }
 0xcc2   : > { %v1655_v1 = vrot.slane %v1654_v46, 4 }
 0xcc3   : > { %v2345_v40 = vpop.eup %2344 }
 0xcc4   : > { %v1664_v53 = vmul.f32 0.6931472, %v2345_v40  ;;  %v1656_v15 = vadd.f32 %v1655_v1, %v1654_v46 }
 0xcc6   : > { %v1670_v50 = vsub.f32 %v1619_v35, %v1664_v53  ;;  %v1669_v54 = vsub.f32 %v1618_v16, %v1664_v53  ;;  %v1657_v4 = vrot.slane %v1656_v15, 2 }
 0xcc8   : > { %v1682_v63 = vsel %vm21_vm0, %v1670_v50, -inf  ;;  %v1679_v43 = vsel %vm21_vm0, %v1669_v54, -inf  ;;  %v1658_v19 = vadd.f32 %v1657_v4, %v1656_v15 }
 0xcc9   : > { %1683 = vmax.xlane.f32.xlu0 %v1682_v63  ;;  %1680 = vmax.xlane.f32.xlu1 %v1679_v43 }
 0xcca   : > { %v1659_v38 = vrot.slane %v1658_v19, 1 }
 0xccc   : > { %v1660_v9 = vadd.f32 %v1659_v38, %v1658_v19 }
 0xcce   : > { %2346 = vlog2.f32 %v1660_v9 }
 0xcd4   : > { %v2347_v5 = vpop.eup %2346 }
 0xcd5   : > { %v1666_v62 = vmul.f32 0.6931472, %v2347_v5 }
 0xcd7   : > { %v1672_v58 = vsub.f32 %v1621_v32, %v1666_v62  ;;  %v1671_v60 = vsub.f32 %v1620_v26, %v1666_v62 }
 0xcd9   : > { %v1688_v47 = vsel %vm21_vm0, %v1672_v58, -inf  ;;  %v1685_v35 = vsel %vm21_vm0, %v1671_v60, -inf }
 0xcda   : > { %1689 = vmax.xlane.f32.xlu1 %v1688_v47  ;;  %1686 = vmax.xlane.f32.xlu2 %v1685_v35 }
 0xd30   : > { %v1675_v16 = vpop.xlane.xlu0 %1674  ;;  %v1678_v6 = vpop.xlane.xlu2 %1677 }
 0xd31   : > { %v1691_v12 = vsub.f32 %v1667_v48, %v1675_v16  ;;  %v1692_v3 = vsub.f32 %v1668_v37, %v1678_v6 }
 0xd33   : > { %v1697_v7 = vmul.f32 1.442695, %v1691_v12  ;;  %v1699_v31 = vmul.f32 1.442695, %v1692_v3 }
 0xd35   : > { %2348 = vpow2.f32 %v1697_v7 }
 0xd36   : > { %2350 = vpow2.f32 %v1699_v31 }
 0xd3b   : > { %v2349_v33 = vpop.eup %2348 }
 0xd3c   : > { %v2351_v24 = vpop.eup %2350  ;;  %v1709_v17 = vsel %vm21_vm0, %v2349_v33, 0.0  ;;  %v1684_v36 = vpop.xlane.xlu0 %1683 }
 0xd3d   : > { %v1681_v22 = vpop.xlane.xlu1 %1680  ;;  %1710 = vadd.xlane.f32.xlu0 %v1709_v17  ;;  %v1712_v29 = vsel %vm21_vm0, %v2351_v24, 0.0  ;;  %v1694_v27 = vsub.f32 %v1670_v50, %v1684_v36 }
 0xd3e   : > { %v1693_v20 = vsub.f32 %v1669_v54, %v1681_v22  ;;  %1713 = vadd.xlane.f32.xlu2 %v1712_v29 }
 0xd3f   : > { %v1703_v39 = vmul.f32 1.442695, %v1694_v27 }
 0xd40   : > { %v1701_v21 = vmul.f32 1.442695, %v1693_v20 }
 0xd41   : > { %2352 = vpow2.f32 %v1703_v39 }
 0xd42   : > { %2354 = vpow2.f32 %v1701_v21 }
 0xd47   : > { %v2353_v0 = vpop.eup %2352 }
 0xd48   : > { %v2355_v26 = vpop.eup %2354  ;;  %v1718_v32 = vsel %vm21_vm0, %v2353_v0, 0.0 }
 0xd49   : > { %1719 = vadd.xlane.f32.xlu0 %v1718_v32  ;;  %v1715_v28 = vsel %vm21_vm0, %v2355_v26, 0.0 }
 0xd4a   : > { %1716 = vadd.xlane.f32.xlu1 %v1715_v28 }
 0xd4d   : > { %v1687_v49 = vpop.xlane.xlu2 %1686  ;;  %v1690_v25 = vpop.xlane.xlu1 %1689 }
 0xd4e   : > { %v2940_v14 = vsub.f32 %v1671_v60, %v1687_v49  ;;  %v2942_v42 = vsub.f32 %v1672_v58, %v1690_v25 }
 0xd50   : > { %v1705_v55 = vmul.f32 1.442695, %v2940_v14  ;;  %v1707_v18 = vmul.f32 1.442695, %v2942_v42 }
 0xd52   : > { %2356 = vpow2.f32 %v1705_v55 }
 0xd53   : > { %2358 = vpow2.f32 %v1707_v18 }
 0xd58   : > { %v2357_v37 = vpop.eup %2356 }
 0xd59   : > { %v2359_v48 = vpop.eup %2358  ;;  %v1721_v44 = vsel %vm21_vm0, %v2357_v37, 0.0 }
 0xd5a   : > { %1722 = vadd.xlane.f32.xlu2 %v1721_v44  ;;  %v1724_v57 = vsel %vm21_vm0, %v2359_v48, 0.0 }
 0xd5b   : > { %1725 = vadd.xlane.f32.xlu1 %v1724_v57 }
 0xdb0   : > { %v1711_v34 = vpop.xlane.xlu0 %1710 }
 0xdb1   : > { %2360 = vlog2.f32 %v1711_v34  ;;  %v1714_v59 = vpop.xlane.xlu2 %1713 }
 0xdb2   : > { %2362 = vlog2.f32 %v1714_v59 }
 0xdb7   : > { %v2361_v23 = vpop.eup %2360 }
 0xdb8   : > { %v2363_v30 = vpop.eup %2362  ;;  %v1728_v52 = vmul.f32 0.6931472, %v2361_v23 }
 0xdb9   : > { %v1730_v46 = vmul.f32 0.6931472, %v2363_v30 }
 0xdba   : > { %v1739_v1 = vsub.f32 %v1691_v12, %v1728_v52 }
 0xdbb   : > { %v1740_v40 = vsub.f32 %v1692_v3, %v1730_v46 }
 0xdbc   : > { %v1745_v53 = vsel %vm21_vm0, %v1739_v1, -inf  ;;  %v1720_v15 = vpop.xlane.xlu0 %1719 }
 0xdbd   : > { %v1746_v50 = vsel %vm21_vm0, %v1740_v40, -inf  ;;  %2364 = vlog2.f32 %v1720_v15  ;;  %v1717_v54 = vpop.xlane.xlu1 %1716 }
 0xdbe   : > { %v1747_v4 = vmax.f32 %v1745_v53, %v1746_v50  ;;  %2366 = vlog2.f32 %v1717_v54 }
 0xdc0   : > { %v1748_v63 = vrot.slane %v1747_v4, 4 }
 0xdc2   : > { %v1749_v43 = vmax.f32 %v1747_v4, %v1748_v63 }
 0xdc3   : > { %v2365_v19 = vpop.eup %2364 }
 0xdc4   : > { %v2367_v38 = vpop.eup %2366  ;;  %v1750_v9 = vrot.slane %v1749_v43, 2  ;;  %v1734_v5 = vmul.f32 0.6931472, %v2365_v19 }
 0xdc5   : > { %v1732_v62 = vmul.f32 0.6931472, %v2367_v38 }
 0xdc6   : > { %v1751_v58 = vmax.f32 %v1749_v43, %v1750_v9  ;;  %v1742_v60 = vsub.f32 %v1694_v27, %v1734_v5 }
 0xdc7   : > { %v1741_v47 = vsub.f32 %v1693_v20, %v1732_v62 }
 0xdc8   : > { %v1752_v35 = vrot.slane %v1751_v58, 1  ;;  %v1755_v16 = vsel %vm21_vm0, %v1742_v60, -inf }
 0xdc9   : > { %v1754_v6 = vsel %vm21_vm0, %v1741_v47, -inf }
 0xdca   : > { %v1753_v12 = vmax.f32 %v1751_v58, %v1752_v35  ;;  %v1756_v3 = vmax.f32 %v1754_v6, %v1755_v16 }
 0xdcc   : > { %v1772_v7 = vsub.f32 %v1739_v1, %v1753_v12  ;;  %v1773_v31 = vsub.f32 %v1740_v40, %v1753_v12  ;;  %v1757_v33 = vrot.slane %v1756_v3, 4 }
 0xdcd   : > { %v1723_v24 = vpop.xlane.xlu2 %1722 }
 0xdce   : > { %v1778_v17 = vmul.f32 1.442695, %v1772_v7  ;;  %v1780_v36 = vmul.f32 1.442695, %v1773_v31  ;;  %v1758_v22 = vmax.f32 %v1756_v3, %v1757_v33  ;;  %2368 = vlog2.f32 %v1723_v24  ;;  %v1726_v29 = vpop.xlane.xlu1 %1725 }
 0xdcf   : > { %2370 = vlog2.f32 %v1726_v29 }
 0xdd0   : > { %2372 = vpow2.f32 %v1778_v17  ;;  %v1759_v27 = vrot.slane %v1758_v22, 2 }
 0xdd1   : > { %2374 = vpow2.f32 %v1780_v36 }
 0xdd2   : > { %v1760_v20 = vmax.f32 %v1758_v22, %v1759_v27 }
 0xdd4   : > { %v2369_v39 = vpop.eup %2368  ;;  %v1761_v21 = vrot.slane %v1760_v20, 1 }
 0xdd5   : > { %v2371_v0 = vpop.eup %2370  ;;  %v1736_v26 = vmul.f32 0.6931472, %v2369_v39 }
 0xdd6   : > { %v2952_v32 = vpop.eup %2372  ;;  %v1762_v28 = vmax.f32 %v1760_v20, %v1761_v21  ;;  %v1738_v49 = vmul.f32 0.6931472, %v2371_v0 }
 0xdd7   : > { %v2954_v25 = vpop.eup %2374  ;;  %v1790_v55 = vsel %vm21_vm0, %v2952_v32, 0.0  ;;  %v1743_v18 = vsub.f32 %v2940_v14, %v1736_v26 }
 0xdd8   : > { %v1791_v37 = vsel %vm21_vm0, %v2954_v25, 0.0  ;;  %v1774_v48 = vsub.f32 %v1741_v47, %v1762_v28  ;;  %v1775_v44 = vsub.f32 %v1742_v60, %v1762_v28  ;;  %v1744_v57 = vsub.f32 %v2942_v42, %v1738_v49 }
 0xdd9   : > { %v1792_v34 = vadd.f32 %v1791_v37, %v1790_v55  ;;  %v1763_v59 = vsel %vm21_vm0, %v1743_v18, -inf }
 0xdda   : > { %v1782_v23 = vmul.f32 1.442695, %v1774_v48  ;;  %v1784_v30 = vmul.f32 1.442695, %v1775_v44  ;;  %v1764_v52 = vsel %vm21_vm0, %v1744_v57, -inf }
 0xddb   : > { %v1793_v46 = vrot.slane %v1792_v34, 4  ;;  %v1765_v1 = vmax.f32 %v1763_v59, %v1764_v52 }
 0xddc   : > { %2376 = vpow2.f32 %v1782_v23 }
 0xddd   : > { %v1794_v40 = vadd.f32 %v1793_v46, %v1792_v34  ;;  %2378 = vpow2.f32 %v1784_v30  ;;  %v1766_v14 = vrot.slane %v1765_v1, 4 }
 0xddf   : > { %v1795_v53 = vrot.slane %v1794_v40, 2  ;;  %v1767_v15 = vmax.f32 %v1765_v1, %v1766_v14 }
 0xde1   : > { %v1796_v50 = vadd.f32 %v1795_v53, %v1794_v40  ;;  %v1768_v54 = vrot.slane %v1767_v15, 2 }
 0xde2   : > { %v2964_v4 = vpop.eup %2376 }
 0xde3   : > { %v2966_v42 = vpop.eup %2378  ;;  %v1797_v63 = vrot.slane %v1796_v50, 1  ;;  %v1799_v43 = vsel %vm21_vm0, %v2964_v4, 0.0  ;;  %v1769_v19 = vmax.f32 %v1767_v15, %v1768_v54 }
 0xde4   : > { %v1800_v38 = vsel %vm21_vm0, %v2966_v42, 0.0 }
 0xde5   : > { %v1798_v9 = vadd.f32 %v1797_v63, %v1796_v50  ;;  %v1801_v5 = vadd.f32 %v1800_v38, %v1799_v43  ;;  %v1770_v62 = vrot.slane %v1769_v19, 1 }
 0xde7   : > { %2380 = vrcp.f32 %v1798_v9  ;;  %v1802_v58 = vrot.slane %v1801_v5, 4  ;;  %v1771_v60 = vmax.f32 %v1769_v19, %v1770_v62  ;;  %v1828_v36 = vand.u32 2147483648, %v1798_v9 }
 0xde8   : > { %v1826_v29 = vand.u32 2147483647, %v1798_v9  ;;  %vm1822_vm15 = vweird.f32 %v1798_v9 }
 0xde9   : > { %v1803_v47 = vadd.f32 %v1802_v58, %v1801_v5  ;;  %v1776_v35 = vsub.f32 %v1743_v18, %v1771_v60  ;;  %v1777_v16 = vsub.f32 %v1744_v57, %v1771_v60  ;;  %v1829_v0 = vor.u32 1.1754944e-38, %v1828_v36 }
 0xdea   : > { %vm1827_vm2 = vcmp.eq.f32.partialorder %v1826_v29, 8.507059e+37  ;;  %v2390_v29 = vld [vmem:[%s3044_s3 + $0x20] sm:$0xff] }
 0xdeb   : > { %v1804_v6 = vrot.slane %v1803_v47, 2  ;;  %v1786_v12 = vmul.f32 1.442695, %v1776_v35  ;;  %v1788_v3 = vmul.f32 1.442695, %v1777_v16 }
 0xded   : > { %v2381_v7 = vpop.eup %2380  ;;  %v1805_v33 = vadd.f32 %v1804_v6, %v1803_v47  ;;  %2382 = vpow2.f32 %v1786_v12 }
 0xdee   : > { %v1818_v31 = vmul.f32 %v2381_v7, %v1798_v9  ;;  %2384 = vpow2.f32 %v1788_v3  ;;  %vm1823_vm14 = vweird.f32 %v2381_v7 }
 0xdef   : > { %v1806_v17 = vrot.slane %v1805_v33, 1  ;;  %vm1824_vm1 = vmor %vm1822_vm15, %vm1823_vm14 }
 0xdf0   : > { %v1819_v24 = vsub.f32 1.0, %v1818_v31 }
 0xdf1   : > { %v1807_v27 = vadd.f32 %v1806_v17, %v1805_v33 }
 0xdf2   : > { %v1820_v22 = vmul.f32 %v2381_v7, %v1819_v24 }
 0xdf3   : > { %v2972_v20 = vpop.eup %2382  ;;  %2386 = vrcp.f32 %v1807_v27  ;;  %v1844_v52 = vand.u32 2147483648, %v1807_v27  ;;  %v1842_v45 = vand.u32 2147483647, %v1807_v27  ;;  %vm1838_vm4 = vweird.f32 %v1807_v27 }
 0xdf4   : > { %v1821_v39 = vadd.f32 %v2381_v7, %v1820_v22  ;;  %v2974_v21 = vpop.eup %2384  ;;  %v1808_v26 = vsel %vm21_vm0, %v2972_v20, 0.0 }
 0xdf5   : > { %v1809_v49 = vsel %vm21_vm0, %v2974_v21, 0.0  ;;  %v1845_v14 = vor.u32 1.1754944e-38, %v1844_v52  ;;  %vm1843_vm6 = vcmp.eq.f32.partialorder %v1842_v45, 8.507059e+37 }
 0xdf6   : > { %v1825_v28 = vsel %vm1824_vm1, %v2381_v7, %v1821_v39  ;;  %v1810_v18 = vadd.f32 %v1809_v49, %v1808_v26 }
 0xdf7   : > { %v1830_v55 = vsel %vm1827_vm2, %v1829_v0, %v1825_v28 }
 0xdf8   : > { %v1832_v37 = vmul.f32 %v2954_v25, %v1830_v55  ;;  %v1831_v48 = vmul.f32 %v2952_v32, %v1830_v55  ;;  %v1811_v44 = vrot.slane %v1810_v18, 4 }
 0xdf9   : > { %v2387_v57 = vpop.eup %2386 }
 0xdfa   : > { %v1865_v34 = vsel %vm257_vm8, %v1831_v48, 0.0  ;;  %v1866_v59 = vsel %vm258_vm9, %v1832_v37, 0.0  ;;  %v1812_v23 = vadd.f32 %v1811_v44, %v1810_v18  ;;  %v1834_v30 = vmul.f32 %v2387_v57, %v1807_v27 }
 0xdfb   : > { %1903 = vst.msk [vmem:[%s3044_s3] sm:$0xff] %vm21_vm0, %v1865_v34  ;;  %vm1839_vm3 = vweird.f32 %v2387_v57 }
 0xdfc   : > { %1904 = vst.msk [vmem:[%s3044_s3 + $0x8] sm:$0xff] %vm21_vm0, %v1866_v59  ;;  %v1813_v32 = vrot.slane %v1812_v23, 2  ;;  %v1835_v25 = vsub.f32 1.0, %v1834_v30  ;;  %vm1840_vm5 = vmor %vm1838_vm4, %vm1839_vm3 }
 0xdfe   : > { %v1814_v41 = vadd.f32 %v1813_v32, %v1812_v23  ;;  %v1836_v46 = vmul.f32 %v2387_v57, %v1835_v25 }
 0xe00   : > { %v1815_v1 = vrot.slane %v1814_v41, 1  ;;  %v1837_v40 = vadd.f32 %v2387_v57, %v1836_v46 }
 0xe02   : > { %v1816_v53 = vadd.f32 %v1815_v1, %v1814_v41  ;;  %v1841_v15 = vsel %vm1840_vm5, %v2387_v57, %v1837_v40 }
 0xe03   : > { %v1846_v50 = vsel %vm1843_vm6, %v1845_v14, %v1841_v15 }
 0xe04   : > { %2388 = vrcp.f32 %v1816_v53  ;;  %v1847_v54 = vmul.f32 %v2964_v4, %v1846_v50  ;;  %v1848_v63 = vmul.f32 %v2966_v42, %v1846_v50  ;;  %v1871_v4 = vsub.f32 %v1865_v34, %v2487_v11 }
 0xe05   : > { %v1872_v42 = vsub.f32 %v1866_v59, %v2495_v13  ;;  %v1860_v5 = vand.u32 2147483648, %v1816_v53  ;;  %v1858_v47 = vand.u32 2147483647, %v1816_v53  ;;  %vm1854_vm8 = vweird.f32 %v1816_v53 }
 0xe06   : > { %v1867_v43 = vsel %vm259_vm10, %v1847_v54, 0.0  ;;  %v1868_v19 = vsel %vm260_vm11, %v1848_v63, 0.0  ;;  %v1877_v62 = vmul.f32 %v1871_v4, %v1871_v4 }
 0xe07   : > { %1905 = vst.msk [vmem:[%s3044_s3 + $0x10] sm:$0xff] %vm21_vm0, %v1867_v43  ;;  %v1873_v9 = vsub.f32 %v1867_v43, %v2477_v8  ;;  %v1878_v58 = vmul.f32 %v1872_v42, %v1872_v42  ;;  %v1861_v6 = vor.u32 1.1754944e-38, %v1860_v5  ;;  %v1874_v12 = vsub.f32 %v1868_v19, %v2482_v10 }
 0xe08   : > { %1906 = vst.msk [vmem:[%s3044_s3 + $0x18] sm:$0xff] %vm21_vm0, %v1868_v19  ;;  %v1883_v11 = vsel %vm21_vm0, %v1877_v62, 0.0  ;;  %vm1859_vm10 = vcmp.eq.f32.partialorder %v1858_v47, 8.507059e+37 }
 0xe09   : > { %v1879_v35 = vmul.f32 %v1873_v9, %v1873_v9  ;;  %v1884_v13 = vsel %vm21_vm0, %v1878_v58, 0.0  ;;  %v1880_v17 = vmul.f32 %v1874_v12, %v1874_v12 }
 0xe0a   : > { %v2389_v38 = vpop.eup %2388  ;;  %v1885_v24 = vadd.f32 %v1884_v13, %v1883_v11 }
 0xe0b   : > { %v1850_v51 = vmul.f32 %v2389_v38, %v1816_v53  ;;  %vm1855_vm7 = vweird.f32 %v2389_v38  ;;  %v1886_v7 = vsel %vm21_vm0, %v1879_v35, 0.0 }
 0xe0c   : > { %vm1856_vm9 = vmor %vm1854_vm8, %vm1855_vm7  ;;  %v1887_v22 = vadd.f32 %v1886_v7, %v1885_v24 }
 0xe0d   : > { %v1851_v56 = vsub.f32 1.0, %v1850_v51 }
 0xe0f   : > { %v1852_v60 = vmul.f32 %v2389_v38, %v1851_v56 }
 0xe11   : > { %v1853_v16 = vadd.f32 %v2389_v38, %v1852_v60 }
 0xe13   : > { %v1857_v3 = vsel %vm1856_vm9, %v2389_v38, %v1853_v16 }
 0xe14   : > { %v1862_v8 = vsel %vm1859_vm10, %v1861_v6, %v1857_v3 }
 0xe15   : > { %v1863_v31 = vmul.f32 %v2972_v20, %v1862_v8  ;;  %v1864_v33 = vmul.f32 %v2974_v21, %v1862_v8  ;;  %v2391_v20 = vld [vmem:[%s3044_s3 + $0x28] sm:$0xff]  ;;  %v1888_v21 = vsel %vm21_vm0, %v1880_v17, 0.0 }
 0xe16   : > { %v1889_v0 = vadd.f32 %v1888_v21, %v1887_v22 }
 0xe17   : > { %v1869_v36 = vsel %vm261_vm12, %v1863_v31, 0.0  ;;  %v1870_v10 = vsel %vm262_vm13, %v1864_v33, 0.0 }
 0xe18   : > { %v1875_v27 = vsub.f32 %v1869_v36, %v2390_v29  ;;  %v1876_v39 = vsub.f32 %v1870_v10, %v2391_v20  ;;  %1907 = vst.msk [vmem:[%s3044_s3 + $0x20] sm:$0xff] %vm21_vm0, %v1869_v36 }
 0xe19   : > { %1908 = vst.msk [vmem:[%s3044_s3 + $0x28] sm:$0xff] %vm21_vm0, %v1870_v10 }
 0xe1a   : > { %v1881_v61 = vmul.f32 %v1875_v27, %v1875_v27  ;;  %v1882_v2 = vmul.f32 %v1876_v39, %v1876_v39 }
 0xe1c   : > { %v1890_v26 = vsel %vm21_vm0, %v1881_v61, 0.0  ;;  %v1892_v49 = vsel %vm21_vm0, %v1882_v2, 0.0 }
 0xe1d   : > { %v1891_v28 = vadd.f32 %v1890_v26, %v1889_v0 }
 0xe1f   : > { %v1893_v55 = vadd.f32 %v1892_v49, %v1891_v28 }
 0xe21   : > { %1894 = vadd.xlane.f32.xlu0 %v1893_v55 }
 0xe94   : > { %v1895_v18 = vpop.xlane.xlu0 %1894 }
 0xe95   : > { %v1896_v37 = vrot.slane %v1895_v18, 4 }
 0xe97   : > { %v1897_v48 = vadd.f32 %v1896_v37, %v1895_v18 }
 0xe99   : > { %v1898_v44 = vrot.slane %v1897_v48, 2 }
 0xe9b   : > { %v1899_v57 = vadd.f32 %v1898_v44, %v1897_v48 }
 0xe9d   : > { %v1900_v34 = vrot.slane %v1899_v57, 1 }
 0xe9f   : > { %v1901_v59 = vadd.f32 %v1900_v34, %v1899_v57 }
 0xea1   : > { %1955 = vpush %v1901_v59 }
 0xed2   : > { %s1956_s28 = spop %1955 }
 0xed3   : > { %p1910_p0 = scmp.lt.f32.partialorder %s1956_s28, 1e-10 }
 0xed5   : > { %s1911_s29 = scalar_select %p1910_p0, 1, 0 }
 0xed7   : > { %p32_p2 = scmp.eq.s32.totalorder %s1911_s29, 0 }
 0xed9   : > { %p33_p3 = pnand %p32_p2, %p31_p1 }
 0xedb   :  { %36 = sbr.rel (!%p33_p3) target bundleno = 8 (0x8), region = 39 }

</bundles_post_ra>
